<compile_context>
chip_gen: v7x
topology: tpu7x:2x2x1
jax: 0.10.0
libtpu: 0.0.40
codegen_flags: <defaults>
</compile_context>

<pallas_src>
import jax
import jax.numpy as jnp
from jax.experimental import pallas as pl
from jax.experimental.pallas import tpu as pltpu

NEG_SLOPE = 0.01                 # nn.LeakyReLU default negative_slope
BN_EPS = 1e-5                    # nn.BatchNorm2d default eps
LANES = 128                      # TPU lane width
VMEM_LIMIT = 32 * 1024 * 1024    # explicit scoped-VMEM budget (safe on all gens)
CONV1_TILE_M = 256               # conv1 M-tile: pipelined DMA + megacore sharding


# ------------------------- Pallas kernels -----------------------------------

def _bn_lrelu(acc, g, b):
    """Training-mode BatchNorm (batch stats over rows, biased var) + LeakyReLU, f32."""
    m = acc.shape[0]
    mean = jnp.sum(acc, axis=0, keepdims=True) * (1.0 / m)
    cen = acc - mean
    var = jnp.sum(cen * cen, axis=0, keepdims=True) * (1.0 / m)
    y = cen * jax.lax.rsqrt(var + BN_EPS) * g + b
    return jnp.where(y >= 0, y, NEG_SLOPE * y)


def _conv_lrelu_kernel(a_ref, w_ref, o_ref):
    # bf16 operands -> f32 accumulate on the MXU, f32 LeakyReLU epilogue, bf16 store.
    acc = jnp.dot(a_ref[...], w_ref[...], preferred_element_type=jnp.float32)
    o_ref[...] = jnp.where(acc >= 0, acc, NEG_SLOPE * acc).astype(o_ref.dtype)


def _conv_bn_lrelu_kernel(a_ref, w_ref, g_ref, b_ref, o_ref):
    # Single full-M block: BN statistics are taken over all B*H*W rows at once.
    acc = jnp.dot(a_ref[...], w_ref[...], preferred_element_type=jnp.float32)
    o_ref[...] = _bn_lrelu(acc, g_ref[...], b_ref[...]).astype(o_ref.dtype)


def _head_kernel(a4_ref, w4_ref, g4_ref, b4_ref, txt_ref, wd1a_ref, wd1b_ref,
                 gd1_ref, bd1_ref, w2e_ref, o_ref):
    # conv4 (4x4, stride 2) + BN + LReLU                              (16B, 128)
    acc4 = jnp.dot(a4_ref[...], w4_ref[...], preferred_element_type=jnp.float32)
    x4 = _bn_lrelu(acc4, g4_ref[...], b4_ref[...]).astype(jnp.bfloat16)

    # channel-concat([x4, text]) + 1x1 conv == split-K matmul that shares one
    # f32 accumulator (no lane-concat needed in-kernel); then BN + LReLU.
    accd1 = (jnp.dot(x4, wd1a_ref[...], preferred_element_type=jnp.float32)
             + jnp.dot(txt_ref[...], wd1b_ref[...], preferred_element_type=jnp.float32))
    xd1 = _bn_lrelu(accd1, gd1_ref[...], bd1_ref[...])                # (16B,128) f32

    # final 4x4 "valid" conv (one scalar per batch) + sigmoid, all in f32:
    # per batch, multiply the 16 spatial rows by the (16,128) expanded weight and
    # reduce over rows+lanes (VALU/XLU work; no extra MXU pass, no bf16 rounding).
    w2e = w2e_ref[...].astype(jnp.float32)                            # (16, 128)
    nb = o_ref.shape[0]
    for b in range(nb):                                               # static, tiny
        pb = xd1[b * 16:(b + 1) * 16, :] * w2e                        # (16, 128)
        zb = jnp.sum(jnp.sum(pb, axis=1, keepdims=True), axis=0, keepdims=True)
        o_ref[b, :, :] = jnp.broadcast_to(jax.nn.sigmoid(zb), (16, LANES))


# ------------------------- pallas_call wrappers -------------------------------

def _zero_map(ndim):
    return lambda i: (0,) * ndim


def _conv1_call(a1, w1, tm):
    """conv1 + LeakyReLU, tiled over M (parallel grid -> pipelining / 2 TCs on v7x)."""
    m, k = a1.shape
    return pl.pallas_call(
        _conv_lrelu_kernel,
        out_shape=jax.ShapeDtypeStruct((m, LANES), jnp.bfloat16),
        grid=(m // tm,),
        in_specs=[pl.BlockSpec((tm, k), lambda i: (i, 0)),
                  pl.BlockSpec((k, LANES), lambda i: (0, 0))],
        out_specs=pl.BlockSpec((tm, LANES), lambda i: (i, 0)),
        compiler_params=pltpu.CompilerParams(
            dimension_semantics=("parallel",),
            vmem_limit_bytes=VMEM_LIMIT),
    )(a1, w1)


def _single_block_call(kernel, out_shape, out_dtype, *args):
    """Single-grid-step pallas_call: every operand is one full VMEM block."""
    return pl.pallas_call(
        kernel,
        out_shape=jax.ShapeDtypeStruct(out_shape, out_dtype),
        grid=(1,),
        in_specs=[pl.BlockSpec(a.shape, _zero_map(a.ndim)) for a in args],
        out_specs=pl.BlockSpec(out_shape, _zero_map(len(out_shape))),
        compiler_params=pltpu.CompilerParams(
            dimension_semantics=("arbitrary",),
            vmem_limit_bytes=VMEM_LIMIT),
    )(*args)


# ------------------------- layout plumbing (XLA) ------------------------------

def _pad_cols(x, n):
    return jnp.pad(x, ((0, 0), (0, n - x.shape[1])))


def _pad_rows(x, n):
    return jnp.pad(x, ((0, n - x.shape[0]), (0, 0)))


def _im2col_nhwc(x, k, stride, pad):
    """x: (B, H, W, C) -> (B*Ho*Wo, k*k*C), column order (kh, kw, c)."""
    if pad:
        x = jnp.pad(x, ((0, 0), (pad, pad), (pad, pad), (0, 0)))
    b, h, w, c = x.shape
    ho = (h - k) // stride + 1
    wo = (w - k) // stride + 1
    cols = [x[:, i:i + stride * ho:stride, j:j + stride * wo:stride, :]
            for i in range(k) for j in range(k)]
    p = jnp.stack(cols, axis=3)                       # (B, Ho, Wo, k*k, C)
    return p.reshape(b * ho * wo, k * k * c), ho, wo


# ------------------------- one-time parameter preprocessing -------------------

def preprocess_params(params):
    """Reshape / pad all weights into kernel-ready layouts once, outside the forward."""
    ndf = params["w1"].shape[0]

    def conv_w(w):
        co, ci, kh, kw = w.shape
        m = jnp.transpose(w, (2, 3, 1, 0)).reshape(kh * kw * ci, co)
        return _pad_cols(m, LANES).astype(jnp.bfloat16)   # K left un-padded (MXU pads)

    def vec(v):
        return _pad_cols(v.reshape(1, -1).astype(jnp.float32), LANES)

    # 1x1 conv weight split into (image-embedding rows, text rows): split-K matmul.
    wd1m = params["wd1"][:, :, 0, 0].T                     # (ndf*8 + text_dim, ndf)
    wd1a = _pad_cols(_pad_rows(wd1m[:ndf * 8], LANES), LANES).astype(jnp.bfloat16)
    wd1b = _pad_cols(_pad_rows(wd1m[ndf * 8:], LANES), LANES).astype(jnp.bfloat16)

    # final 4x4 conv weight expanded per spatial row (row h*4 + w -> wd2[0,:,h,w]),
    # shared across batches (broadcast in-kernel, no per-batch tiling).
    w2e = _pad_cols(jnp.transpose(params["wd2"][0], (1, 2, 0)).reshape(16, ndf),
                    LANES).astype(jnp.bfloat16)            # (16, 128)

    return {
        "w1": conv_w(params["w1"]),                        # (48, 128)
        "w2": conv_w(params["w2"]),                        # (256, 128)
        "w3": conv_w(params["w3"]),                        # (512, 128)
        "w4": conv_w(params["w4"]),                        # (1024, 128)
        "g2": vec(params["g2"]), "b2": vec(params["b2"]),
        "g3": vec(params["g3"]), "b3": vec(params["b3"]),
        "g4": vec(params["g4"]), "b4": vec(params["b4"]),
        "gd1": vec(params["gd1"]), "bd1": vec(params["bd1"]),
        "wd1a": wd1a, "wd1b": wd1b, "w2e": w2e,
    }


# ------------------------- Model forward --------------------------------------

@jax.jit
def mbs_discriminator_forward(image, text, prep):
    B = image.shape[0]
    ndf = prep["w2"].shape[0] // 16                       # conv2 K = 4*4*ndf

    # runtime-input prep (text): rows aligned with conv4 output rows (b, h, w)
    txt = jnp.repeat(text.reshape(B, -1), 16, axis=0)
    txt = _pad_cols(txt, LANES).astype(jnp.bfloat16)      # (16B, 128)

    # ---- extractor64 ----
    # TODO(synk): stride-2 4x4 patch extraction (im2col) between layers is cheap
    # XLA NHWC slicing; pulling it in-kernel would fuse the whole net into one call.
    x = jnp.transpose(image, (0, 2, 3, 1))                # NHWC
    a1, ho, wo = _im2col_nhwc(x, 4, 2, 1)                 # (B*32*32, 48), K not padded
    a1 = a1.astype(jnp.bfloat16)
    m1 = a1.shape[0]
    tm = CONV1_TILE_M if m1 % CONV1_TILE_M == 0 else m1
    rows1 = _conv1_call(a1, prep["w1"], tm)               # (m1, 128) bf16

    x = rows1[:, :ndf].reshape(B, ho, wo, ndf)
    a2, ho, wo = _im2col_nhwc(x, 4, 2, 1)                 # (B*16*16, 256)
    rows2 = _single_block_call(_conv_bn_lrelu_kernel, (a2.shape[0], LANES),
                               jnp.bfloat16, a2, prep["w2"], prep["g2"], prep["b2"])

    x = rows2[:, :ndf * 2].reshape(B, ho, wo, ndf * 2)
    a3, ho, wo = _im2col_nhwc(x, 4, 2, 1)                 # (B*8*8, 512)
    rows3 = _single_block_call(_conv_bn_lrelu_kernel, (a3.shape[0], LANES),
                               jnp.bfloat16, a3, prep["w3"], prep["g3"], prep["b3"])

    # ---- conv4 + BN + LReLU + concat(text) + discriminator head, fused ----
    x = rows3[:, :ndf * 4].reshape(B, ho, wo, ndf * 4)
    a4, ho, wo = _im2col_nhwc(x, 4, 2, 1)                 # (16B, 1024)
    head = _single_block_call(_head_kernel, (B, 16, LANES), jnp.float32,
                              a4, prep["w4"], prep["g4"], prep["b4"], txt,
                              prep["wd1a"], prep["wd1b"], prep["gd1"], prep["bd1"],
                              prep["w2e"])                # (B, 16, 128), all rows valid
    return head[:, 0, 0]                                  # (B,)


# ------------------------- Deterministic params -------------------------------

def init_params(key, text_dim, ndf, n_channels):
    ks = jax.random.split(key, 6)

    def w(k, shape):
        return (0.02 * jax.random.normal(k, shape)).astype(jnp.float32)

    return {
        "w1": w(ks[0], (ndf, n_channels, 4, 4)),
        "w2": w(ks[1], (ndf * 2, ndf, 4, 4)),
        "w3": w(ks[2], (ndf * 4, ndf * 2, 4, 4)),
        "w4": w(ks[3], (ndf * 8, ndf * 4, 4, 4)),
        "wd1": w(ks[4], (ndf, ndf * 8 + text_dim, 1, 1)),
        "wd2": w(ks[5], (1, ndf, 4, 4)),
        "g2": jnp.ones((ndf * 2,), jnp.float32), "b2": jnp.zeros((ndf * 2,), jnp.float32),
        "g3": jnp.ones((ndf * 4,), jnp.float32), "b3": jnp.zeros((ndf * 4,), jnp.float32),
        "g4": jnp.ones((ndf * 8,), jnp.float32), "b4": jnp.zeros((ndf * 8,), jnp.float32),
        "gd1": jnp.ones((ndf,), jnp.float32), "bd1": jnp.zeros((ndf,), jnp.float32),
    }


# ------------------------- Pure-JAX reference ---------------------------------

def ref_forward(image, text, params):
    def conv(x, w, s, p):
        return jax.lax.conv_general_dilated(
            x, w, (s, s), [(p, p), (p, p)],
            dimension_numbers=("NCHW", "OIHW", "NCHW"))

    def lrelu(x):
        return jnp.where(x >= 0, x, NEG_SLOPE * x)

    def bn(x, g, b):
        mean = jnp.mean(x, axis=(0, 2, 3), keepdims=True)
        var = jnp.mean((x - mean) ** 2, axis=(0, 2, 3), keepdims=True)
        return ((x - mean) * jax.lax.rsqrt(var + BN_EPS)
                * g.reshape(1, -1, 1, 1) + b.reshape(1, -1, 1, 1))

    x = lrelu(conv(image, params["w1"], 2, 1))
    x = lrelu(bn(conv(x, params["w2"], 2, 1), params["g2"], params["b2"]))
    x = lrelu(bn(conv(x, params["w3"], 2, 1), params["g3"], params["b3"]))
    x = lrelu(bn(conv(x, params["w4"], 2, 1), params["g4"], params["b4"]))
    emb = jnp.concatenate([x, jnp.tile(text, (1, 1, 4, 4))], axis=1)
    x = lrelu(bn(conv(emb, params["wd1"], 1, 0), params["gd1"], params["bd1"]))
    x = jax.nn.sigmoid(conv(x, params["wd2"], 1, 0))
    return jnp.squeeze(x)


# ------------------------- Main ------------------------------------------------

if __name__ == "__main__":
    # Spatial size must be 64 (4 stride-2 convs -> 4x4, matching the 4x4 text tile
    # and the final 4x4 valid conv). Keep ndf/text_dim small.
    B, n_channels, text_dim, ndf = 2, 3, 8, 16

    key = jax.random.PRNGKey(0)
    k_img, k_txt, k_par = jax.random.split(key, 3)
    image = jax.random.normal(k_img, (B, n_channels, 64, 64), jnp.float32)
    text = jax.random.normal(k_txt, (B, text_dim, 1, 1), jnp.float32)
    params = init_params(k_par, text_dim, ndf, n_channels)

    prep = preprocess_params(params)          # one-time weight prep, outside forward
    out = jax.block_until_ready(mbs_discriminator_forward(image, text, prep))
    ref = jax.block_until_ready(ref_forward(image, text, params))

    assert out.shape == (B,), out.shape
    assert bool(jnp.all(jnp.isfinite(out)))
    # Both paths use bf16 MXU passes (explicit here, default-precision in the XLA
    # conv reference), so compare at a bf16-level tolerance.
    err = float(jnp.max(jnp.abs(out - ref)))
    assert err < 2e-2, err
    print("KERNEL_OK")
</pallas_src>

<mosaic_0001>
module attributes {stable_mosaic.version = 11 : i64} {
  func.func @_conv_lrelu_kernel(%arg0: i32, %arg1: memref<256x48xbf16, #tpu.memory_space<vmem>>, %arg2: memref<48x128xbf16, #tpu.memory_space<vmem>>, %arg3: memref<256x128xbf16, #tpu.memory_space<vmem>>) attributes {dimension_semantics = [#tpu.dimension_semantics<parallel>], iteration_bounds = array<i64: 8>, scalar_prefetch = 0 : i64, scratch_operands = 0 : i64, tpu.core_type = #tpu.core_type<tc>, window_params = [{transform_indices = @transform_0, window_bounds = array<i64: 256, 48>}, {pipeline_mode = #tpu.pipeline_mode<synchronous>, transform_indices = @transform_1, window_bounds = array<i64: 48, 128>}, {transform_indices = @transform_2, window_bounds = array<i64: 256, 128>}]} {
    %c0 = arith.constant 0 : index
    %c0_0 = arith.constant 0 : index
    %0 = vector.load %arg1[%c0, %c0_0] : memref<256x48xbf16, #tpu.memory_space<vmem>>, vector<256x48xbf16>
    %c0_1 = arith.constant 0 : index
    %c0_2 = arith.constant 0 : index
    %1 = vector.load %arg2[%c0_1, %c0_2] : memref<48x128xbf16, #tpu.memory_space<vmem>>, vector<48x128xbf16>
    %cst = arith.constant dense<0.000000e+00> : vector<256x128xf32>
    %2 = tpu.matmul %0, %1, %cst {dimension_numbers = #tpu.dot_dimension_numbers<[1], [0], [0], [1], [0, 0, 1, 1], [], []>} : vector<256x48xbf16>, vector<48x128xbf16>, vector<256x128xf32> -> vector<256x128xf32>
    %cst_3 = arith.constant 0.000000e+00 : f32
    %3 = vector.broadcast %cst_3 : f32 to vector<256x128xf32>
    %4 = arith.cmpf oge, %2, %3 : vector<256x128xf32>
    %cst_4 = arith.constant 0.00999999977 : f32
    %5 = vector.broadcast %cst_4 : f32 to vector<256x128xf32>
    %6 = arith.mulf %5, %2 : vector<256x128xf32>
    %7 = arith.select %4, %2, %6 : vector<256x128xi1>, vector<256x128xf32>
    %8 = arith.truncf %7 : vector<256x128xf32> to vector<256x128xbf16>
    %c0_5 = arith.constant 0 : index
    %c0_6 = arith.constant 0 : index
    %9 = vector.load %arg3[%c0_5, %c0_6] : memref<256x128xbf16, #tpu.memory_space<vmem>>, vector<256x128xbf16>
    tpu.vector_store %arg3[%c0_5, %c0_6], %8 {strides = array<i32>} : memref<256x128xbf16, #tpu.memory_space<vmem>>, vector<256x128xbf16>,
    return
  }
  func.func @transform_0(%arg0: i32) -> (i32, i32) {
    %c0_i32 = arith.constant 0 : i32
    %c0_i32_0 = arith.constant 0 : i32
    return %arg0, %c0_i32 : i32, i32
  }
  func.func @transform_1(%arg0: i32) -> (i32, i32) {
    %c0_i32 = arith.constant 0 : i32
    %c0_i32_0 = arith.constant 0 : i32
    %c0_i32_1 = arith.constant 0 : i32
    return %c0_i32, %c0_i32_0 : i32, i32
  }
  func.func @transform_2(%arg0: i32) -> (i32, i32) {
    %c0_i32 = arith.constant 0 : i32
    %c0_i32_0 = arith.constant 0 : i32
    return %arg0, %c0_i32 : i32, i32
  }
}

module attributes {stable_mosaic.version = 11 : i64} {
  func.func @_conv_bn_lrelu_kernel(%arg0: i32, %arg1: memref<512x256xbf16, #tpu.memory_space<vmem>>, %arg2: memref<256x128xbf16, #tpu.memory_space<vmem>>, %arg3: memref<1x128xf32, #tpu.memory_space<vmem>>, %arg4: memref<1x128xf32, #tpu.memory_space<vmem>>, %arg5: memref<512x128xbf16, #tpu.memory_space<vmem>>) attributes {dimension_semantics = [#tpu.dimension_semantics<arbitrary>], iteration_bounds = array<i64: 1>, scalar_prefetch = 0 : i64, scratch_operands = 0 : i64, tpu.core_type = #tpu.core_type<tc>, window_params = [{pipeline_mode = #tpu.pipeline_mode<synchronous>, transform_indices = @transform_0, window_bounds = array<i64: 512, 256>}, {pipeline_mode = #tpu.pipeline_mode<synchronous>, transform_indices = @transform_1, window_bounds = array<i64: 256, 128>}, {pipeline_mode = #tpu.pipeline_mode<synchronous>, transform_indices = @transform_2, window_bounds = array<i64: 1, 128>}, {pipeline_mode = #tpu.pipeline_mode<synchronous>, transform_indices = @transform_3, window_bounds = array<i64: 1, 128>}, {pipeline_mode = #tpu.pipeline_mode<synchronous>, transform_indices = @transform_4, window_bounds = array<i64: 512, 128>}]} {
    %c0 = arith.constant 0 : index
    %c0_0 = arith.constant 0 : index
    %0 = vector.load %arg1[%c0, %c0_0] : memref<512x256xbf16, #tpu.memory_space<vmem>>, vector<512x256xbf16>
    %c0_1 = arith.constant 0 : index
    %c0_2 = arith.constant 0 : index
    %1 = vector.load %arg2[%c0_1, %c0_2] : memref<256x128xbf16, #tpu.memory_space<vmem>>, vector<256x128xbf16>
    %cst = arith.constant dense<0.000000e+00> : vector<512x128xf32>
    %2 = tpu.matmul %0, %1, %cst {dimension_numbers = #tpu.dot_dimension_numbers<[1], [0], [0], [1], [0, 0, 1, 1], [], []>} : vector<512x256xbf16>, vector<256x128xbf16>, vector<512x128xf32> -> vector<512x128xf32>
    %c0_3 = arith.constant 0 : index
    %c0_4 = arith.constant 0 : index
    %3 = vector.load %arg3[%c0_3, %c0_4] : memref<1x128xf32, #tpu.memory_space<vmem>>, vector<1x128xf32>
    %c0_5 = arith.constant 0 : index
    %c0_6 = arith.constant 0 : index
    %4 = vector.load %arg4[%c0_5, %c0_6] : memref<1x128xf32, #tpu.memory_space<vmem>>, vector<1x128xf32>
    %cst_7 = arith.constant dense<0.000000e+00> : vector<128xf32>
    %5 = vector.multi_reduction <add>, %2, %cst_7 [0] : vector<512x128xf32> to vector<128xf32>
    %6 = vector.shape_cast %5 : vector<128xf32> to vector<1x128xf32>
    %cst_8 = arith.constant 0.001953125 : f32
    %7 = vector.broadcast %cst_8 : f32 to vector<1x128xf32>
    %8 = arith.mulf %6, %7 : vector<1x128xf32>
    %9 = vector.broadcast %8 : vector<1x128xf32> to vector<512x128xf32>
    %10 = arith.subf %2, %9 : vector<512x128xf32>
    %11 = arith.mulf %10, %10 : vector<512x128xf32>
    %cst_9 = arith.constant dense<0.000000e+00> : vector<128xf32>
    %12 = vector.multi_reduction <add>, %11, %cst_9 [0] : vector<512x128xf32> to vector<128xf32>
    %13 = vector.shape_cast %12 : vector<128xf32> to vector<1x128xf32>
    %cst_10 = arith.constant 0.001953125 : f32
    %14 = vector.broadcast %cst_10 : f32 to vector<1x128xf32>
    %15 = arith.mulf %13, %14 : vector<1x128xf32>
    %cst_11 = arith.constant 9.99999974E-6 : f32
    %16 = vector.broadcast %cst_11 : f32 to vector<1x128xf32>
    %17 = arith.addf %15, %16 : vector<1x128xf32>
    %18 = math.rsqrt %17 : vector<1x128xf32>
    %19 = vector.broadcast %18 : vector<1x128xf32> to vector<512x128xf32>
    %20 = arith.mulf %10, %19 : vector<512x128xf32>
    %21 = vector.broadcast %3 : vector<1x128xf32> to vector<512x128xf32>
    %22 = arith.mulf %20, %21 : vector<512x128xf32>
    %23 = vector.broadcast %4 : vector<1x128xf32> to vector<512x128xf32>
    %24 = arith.addf %22, %23 : vector<512x128xf32>
    %cst_12 = arith.constant 0.000000e+00 : f32
    %25 = vector.broadcast %cst_12 : f32 to vector<512x128xf32>
    %26 = arith.cmpf oge, %24, %25 : vector<512x128xf32>
    %cst_13 = arith.constant 0.00999999977 : f32
    %27 = vector.broadcast %cst_13 : f32 to vector<512x128xf32>
    %28 = arith.mulf %27, %24 : vector<512x128xf32>
    %29 = arith.select %26, %24, %28 : vector<512x128xi1>, vector<512x128xf32>
    %30 = arith.truncf %29 : vector<512x128xf32> to vector<512x128xbf16>
    %c0_14 = arith.constant 0 : index
    %c0_15 = arith.constant 0 : index
    %31 = vector.load %arg5[%c0_14, %c0_15] : memref<512x128xbf16, #tpu.memory_space<vmem>>, vector<512x128xbf16>
    tpu.vector_store %arg5[%c0_14, %c0_15], %30 {strides = array<i32>} : memref<512x128xbf16, #tpu.memory_space<vmem>>, vector<512x128xbf16>,
    return
  }
  func.func @transform_0(%arg0: i32) -> (i32, i32) {
    %c0_i32 = arith.constant 0 : i32
    %c0_i32_0 = arith.constant 0 : i32
    %c0_i32_1 = arith.constant 0 : i32
    return %c0_i32, %c0_i32_0 : i32, i32
  }
  func.func @transform_1(%arg0: i32) -> (i32, i32) {
    %c0_i32 = arith.constant 0 : i32
    %c0_i32_0 = arith.constant 0 : i32
    %c0_i32_1 = arith.constant 0 : i32
    return %c0_i32, %c0_i32_0 : i32, i32
  }
  func.func @transform_2(%arg0: i32) -> (i32, i32) {
    %c0_i32 = arith.constant 0 : i32
    %c0_i32_0 = arith.constant 0 : i32
    %c0_i32_1 = arith.constant 0 : i32
    return %c0_i32, %c0_i32_0 : i32, i32
  }
  func.func @transform_3(%arg0: i32) -> (i32, i32) {
    %c0_i32 = arith.constant 0 : i32
    %c0_i32_0 = arith.constant 0 : i32
    %c0_i32_1 = arith.constant 0 : i32
    return %c0_i32, %c0_i32_0 : i32, i32
  }
  func.func @transform_4(%arg0: i32) -> (i32, i32) {
    %c0_i32 = arith.constant 0 : i32
    %c0_i32_0 = arith.constant 0 : i32
    %c0_i32_1 = arith.constant 0 : i32
    return %c0_i32, %c0_i32_0 : i32, i32
  }
}

module attributes {stable_mosaic.version = 11 : i64} {
  func.func @_conv_bn_lrelu_kernel(%arg0: i32, %arg1: memref<128x512xbf16, #tpu.memory_space<vmem>>, %arg2: memref<512x128xbf16, #tpu.memory_space<vmem>>, %arg3: memref<1x128xf32, #tpu.memory_space<vmem>>, %arg4: memref<1x128xf32, #tpu.memory_space<vmem>>, %arg5: memref<128x128xbf16, #tpu.memory_space<vmem>>) attributes {dimension_semantics = [#tpu.dimension_semantics<arbitrary>], iteration_bounds = array<i64: 1>, scalar_prefetch = 0 : i64, scratch_operands = 0 : i64, tpu.core_type = #tpu.core_type<tc>, window_params = [{pipeline_mode = #tpu.pipeline_mode<synchronous>, transform_indices = @transform_0, window_bounds = array<i64: 128, 512>}, {pipeline_mode = #tpu.pipeline_mode<synchronous>, transform_indices = @transform_1, window_bounds = array<i64: 512, 128>}, {pipeline_mode = #tpu.pipeline_mode<synchronous>, transform_indices = @transform_2, window_bounds = array<i64: 1, 128>}, {pipeline_mode = #tpu.pipeline_mode<synchronous>, transform_indices = @transform_3, window_bounds = array<i64: 1, 128>}, {pipeline_mode = #tpu.pipeline_mode<synchronous>, transform_indices = @transform_4, window_bounds = array<i64: 128, 128>}]} {
    %c0 = arith.constant 0 : index
    %c0_0 = arith.constant 0 : index
    %0 = vector.load %arg1[%c0, %c0_0] : memref<128x512xbf16, #tpu.memory_space<vmem>>, vector<128x512xbf16>
    %c0_1 = arith.constant 0 : index
    %c0_2 = arith.constant 0 : index
    %1 = vector.load %arg2[%c0_1, %c0_2] : memref<512x128xbf16, #tpu.memory_space<vmem>>, vector<512x128xbf16>
    %cst = arith.constant dense<0.000000e+00> : vector<128x128xf32>
    %2 = tpu.matmul %0, %1, %cst {dimension_numbers = #tpu.dot_dimension_numbers<[1], [0], [0], [1], [0, 0, 1, 1], [], []>} : vector<128x512xbf16>, vector<512x128xbf16>, vector<128x128xf32> -> vector<128x128xf32>
    %c0_3 = arith.constant 0 : index
    %c0_4 = arith.constant 0 : index
    %3 = vector.load %arg3[%c0_3, %c0_4] : memref<1x128xf32, #tpu.memory_space<vmem>>, vector<1x128xf32>
    %c0_5 = arith.constant 0 : index
    %c0_6 = arith.constant 0 : index
    %4 = vector.load %arg4[%c0_5, %c0_6] : memref<1x128xf32, #tpu.memory_space<vmem>>, vector<1x128xf32>
    %cst_7 = arith.constant dense<0.000000e+00> : vector<128xf32>
    %5 = vector.multi_reduction <add>, %2, %cst_7 [0] : vector<128x128xf32> to vector<128xf32>
    %6 = vector.shape_cast %5 : vector<128xf32> to vector<1x128xf32>
    %cst_8 = arith.constant 7.812500e-03 : f32
    %7 = vector.broadcast %cst_8 : f32 to vector<1x128xf32>
    %8 = arith.mulf %6, %7 : vector<1x128xf32>
    %9 = vector.broadcast %8 : vector<1x128xf32> to vector<128x128xf32>
    %10 = arith.subf %2, %9 : vector<128x128xf32>
    %11 = arith.mulf %10, %10 : vector<128x128xf32>
    %cst_9 = arith.constant dense<0.000000e+00> : vector<128xf32>
    %12 = vector.multi_reduction <add>, %11, %cst_9 [0] : vector<128x128xf32> to vector<128xf32>
    %13 = vector.shape_cast %12 : vector<128xf32> to vector<1x128xf32>
    %cst_10 = arith.constant 7.812500e-03 : f32
    %14 = vector.broadcast %cst_10 : f32 to vector<1x128xf32>
    %15 = arith.mulf %13, %14 : vector<1x128xf32>
    %cst_11 = arith.constant 9.99999974E-6 : f32
    %16 = vector.broadcast %cst_11 : f32 to vector<1x128xf32>
    %17 = arith.addf %15, %16 : vector<1x128xf32>
    %18 = math.rsqrt %17 : vector<1x128xf32>
    %19 = vector.broadcast %18 : vector<1x128xf32> to vector<128x128xf32>
    %20 = arith.mulf %10, %19 : vector<128x128xf32>
    %21 = vector.broadcast %3 : vector<1x128xf32> to vector<128x128xf32>
    %22 = arith.mulf %20, %21 : vector<128x128xf32>
    %23 = vector.broadcast %4 : vector<1x128xf32> to vector<128x128xf32>
    %24 = arith.addf %22, %23 : vector<128x128xf32>
    %cst_12 = arith.constant 0.000000e+00 : f32
    %25 = vector.broadcast %cst_12 : f32 to vector<128x128xf32>
    %26 = arith.cmpf oge, %24, %25 : vector<128x128xf32>
    %cst_13 = arith.constant 0.00999999977 : f32
    %27 = vector.broadcast %cst_13 : f32 to vector<128x128xf32>
    %28 = arith.mulf %27, %24 : vector<128x128xf32>
    %29 = arith.select %26, %24, %28 : vector<128x128xi1>, vector<128x128xf32>
    %30 = arith.truncf %29 : vector<128x128xf32> to vector<128x128xbf16>
    %c0_14 = arith.constant 0 : index
    %c0_15 = arith.constant 0 : index
    %31 = vector.load %arg5[%c0_14, %c0_15] : memref<128x128xbf16, #tpu.memory_space<vmem>>, vector<128x128xbf16>
    tpu.vector_store %arg5[%c0_14, %c0_15], %30 {strides = array<i32>} : memref<128x128xbf16, #tpu.memory_space<vmem>>, vector<128x128xbf16>,
    return
  }
  func.func @transform_0(%arg0: i32) -> (i32, i32) {
    %c0_i32 = arith.constant 0 : i32
    %c0_i32_0 = arith.constant 0 : i32
    %c0_i32_1 = arith.constant 0 : i32
    return %c0_i32, %c0_i32_0 : i32, i32
  }
  func.func @transform_1(%arg0: i32) -> (i32, i32) {
    %c0_i32 = arith.constant 0 : i32
    %c0_i32_0 = arith.constant 0 : i32
    %c0_i32_1 = arith.constant 0 : i32
    return %c0_i32, %c0_i32_0 : i32, i32
  }
  func.func @transform_2(%arg0: i32) -> (i32, i32) {
    %c0_i32 = arith.constant 0 : i32
    %c0_i32_0 = arith.constant 0 : i32
    %c0_i32_1 = arith.constant 0 : i32
    return %c0_i32, %c0_i32_0 : i32, i32
  }
  func.func @transform_3(%arg0: i32) -> (i32, i32) {
    %c0_i32 = arith.constant 0 : i32
    %c0_i32_0 = arith.constant 0 : i32
    %c0_i32_1 = arith.constant 0 : i32
    return %c0_i32, %c0_i32_0 : i32, i32
  }
  func.func @transform_4(%arg0: i32) -> (i32, i32) {
    %c0_i32 = arith.constant 0 : i32
    %c0_i32_0 = arith.constant 0 : i32
    %c0_i32_1 = arith.constant 0 : i32
    return %c0_i32, %c0_i32_0 : i32, i32
  }
}

module attributes {stable_mosaic.version = 11 : i64} {
  func.func @_head_kernel(%arg0: i32, %arg1: memref<32x1024xbf16, #tpu.memory_space<vmem>>, %arg2: memref<1024x128xbf16, #tpu.memory_space<vmem>>, %arg3: memref<1x128xf32, #tpu.memory_space<vmem>>, %arg4: memref<1x128xf32, #tpu.memory_space<vmem>>, %arg5: memref<32x128xbf16, #tpu.memory_space<vmem>>, %arg6: memref<128x128xbf16, #tpu.memory_space<vmem>>, %arg7: memref<128x128xbf16, #tpu.memory_space<vmem>>, %arg8: memref<1x128xf32, #tpu.memory_space<vmem>>, %arg9: memref<1x128xf32, #tpu.memory_space<vmem>>, %arg10: memref<16x128xbf16, #tpu.memory_space<vmem>>, %arg11: memref<2x16x128xf32, #tpu.memory_space<vmem>>) attributes {dimension_semantics = [#tpu.dimension_semantics<arbitrary>], iteration_bounds = array<i64: 1>, scalar_prefetch = 0 : i64, scratch_operands = 0 : i64, tpu.core_type = #tpu.core_type<tc>, window_params = [{pipeline_mode = #tpu.pipeline_mode<synchronous>, transform_indices = @transform_0, window_bounds = array<i64: 32, 1024>}, {pipeline_mode = #tpu.pipeline_mode<synchronous>, transform_indices = @transform_1, window_bounds = array<i64: 1024, 128>}, {pipeline_mode = #tpu.pipeline_mode<synchronous>, transform_indices = @transform_2, window_bounds = array<i64: 1, 128>}, {pipeline_mode = #tpu.pipeline_mode<synchronous>, transform_indices = @transform_3, window_bounds = array<i64: 1, 128>}, {pipeline_mode = #tpu.pipeline_mode<synchronous>, transform_indices = @transform_4, window_bounds = array<i64: 32, 128>}, {pipeline_mode = #tpu.pipeline_mode<synchronous>, transform_indices = @transform_5, window_bounds = array<i64: 128, 128>}, {pipeline_mode = #tpu.pipeline_mode<synchronous>, transform_indices = @transform_6, window_bounds = array<i64: 128, 128>}, {pipeline_mode = #tpu.pipeline_mode<synchronous>, transform_indices = @transform_7, window_bounds = array<i64: 1, 128>}, {pipeline_mode = #tpu.pipeline_mode<synchronous>, transform_indices = @transform_8, window_bounds = array<i64: 1, 128>}, {pipeline_mode = #tpu.pipeline_mode<synchronous>, transform_indices = @transform_9, window_bounds = array<i64: 16, 128>}, {pipeline_mode = #tpu.pipeline_mode<synchronous>, transform_indices = @transform_10, window_bounds = array<i64: 2, 16, 128>}]} {
    %c0 = arith.constant 0 : index
    %c0_0 = arith.constant 0 : index
    %0 = vector.load %arg1[%c0, %c0_0] : memref<32x1024xbf16, #tpu.memory_space<vmem>>, vector<32x1024xbf16>
    %c0_1 = arith.constant 0 : index
    %c0_2 = arith.constant 0 : index
    %1 = vector.load %arg2[%c0_1, %c0_2] : memref<1024x128xbf16, #tpu.memory_space<vmem>>, vector<1024x128xbf16>
    %cst = arith.constant dense<0.000000e+00> : vector<32x128xf32>
    %2 = tpu.matmul %0, %1, %cst {dimension_numbers = #tpu.dot_dimension_numbers<[1], [0], [0], [1], [0, 0, 1, 1], [], []>} : vector<32x1024xbf16>, vector<1024x128xbf16>, vector<32x128xf32> -> vector<32x128xf32>
    %c0_3 = arith.constant 0 : index
    %c0_4 = arith.constant 0 : index
    %3 = vector.load %arg3[%c0_3, %c0_4] : memref<1x128xf32, #tpu.memory_space<vmem>>, vector<1x128xf32>
    %c0_5 = arith.constant 0 : index
    %c0_6 = arith.constant 0 : index
    %4 = vector.load %arg4[%c0_5, %c0_6] : memref<1x128xf32, #tpu.memory_space<vmem>>, vector<1x128xf32>
    %cst_7 = arith.constant dense<0.000000e+00> : vector<128xf32>
    %5 = vector.multi_reduction <add>, %2, %cst_7 [0] : vector<32x128xf32> to vector<128xf32>
    %6 = vector.shape_cast %5 : vector<128xf32> to vector<1x128xf32>
    %cst_8 = arith.constant 3.125000e-02 : f32
    %7 = vector.broadcast %cst_8 : f32 to vector<1x128xf32>
    %8 = arith.mulf %6, %7 : vector<1x128xf32>
    %9 = vector.broadcast %8 : vector<1x128xf32> to vector<32x128xf32>
    %10 = arith.subf %2, %9 : vector<32x128xf32>
    %11 = arith.mulf %10, %10 : vector<32x128xf32>
    %cst_9 = arith.constant dense<0.000000e+00> : vector<128xf32>
    %12 = vector.multi_reduction <add>, %11, %cst_9 [0] : vector<32x128xf32> to vector<128xf32>
    %13 = vector.shape_cast %12 : vector<128xf32> to vector<1x128xf32>
    %cst_10 = arith.constant 3.125000e-02 : f32
    %14 = vector.broadcast %cst_10 : f32 to vector<1x128xf32>
    %15 = arith.mulf %13, %14 : vector<1x128xf32>
    %cst_11 = arith.constant 9.99999974E-6 : f32
    %16 = vector.broadcast %cst_11 : f32 to vector<1x128xf32>
    %17 = arith.addf %15, %16 : vector<1x128xf32>
    %18 = math.rsqrt %17 : vector<1x128xf32>
    %19 = vector.broadcast %18 : vector<1x128xf32> to vector<32x128xf32>
    %20 = arith.mulf %10, %19 : vector<32x128xf32>
    %21 = vector.broadcast %3 : vector<1x128xf32> to vector<32x128xf32>
    %22 = arith.mulf %20, %21 : vector<32x128xf32>
    %23 = vector.broadcast %4 : vector<1x128xf32> to vector<32x128xf32>
    %24 = arith.addf %22, %23 : vector<32x128xf32>
    %cst_12 = arith.constant 0.000000e+00 : f32
    %25 = vector.broadcast %cst_12 : f32 to vector<32x128xf32>
    %26 = arith.cmpf oge, %24, %25 : vector<32x128xf32>
    %cst_13 = arith.constant 0.00999999977 : f32
    %27 = vector.broadcast %cst_13 : f32 to vector<32x128xf32>
    %28 = arith.mulf %27, %24 : vector<32x128xf32>
    %29 = arith.select %26, %24, %28 : vector<32x128xi1>, vector<32x128xf32>
    %30 = arith.truncf %29 : vector<32x128xf32> to vector<32x128xbf16>
    %c0_14 = arith.constant 0 : index
    %c0_15 = arith.constant 0 : index
    %31 = vector.load %arg6[%c0_14, %c0_15] : memref<128x128xbf16, #tpu.memory_space<vmem>>, vector<128x128xbf16>
    %cst_16 = arith.constant dense<0.000000e+00> : vector<32x128xf32>
    %32 = tpu.matmul %30, %31, %cst_16 {dimension_numbers = #tpu.dot_dimension_numbers<[1], [0], [0], [1], [0, 0, 1, 1], [], []>} : vector<32x128xbf16>, vector<128x128xbf16>, vector<32x128xf32> -> vector<32x128xf32>
    %c0_17 = arith.constant 0 : index
    %c0_18 = arith.constant 0 : index
    %33 = vector.load %arg5[%c0_17, %c0_18] : memref<32x128xbf16, #tpu.memory_space<vmem>>, vector<32x128xbf16>
    %c0_19 = arith.constant 0 : index
    %c0_20 = arith.constant 0 : index
    %34 = vector.load %arg7[%c0_19, %c0_20] : memref<128x128xbf16, #tpu.memory_space<vmem>>, vector<128x128xbf16>
    %cst_21 = arith.constant dense<0.000000e+00> : vector<32x128xf32>
    %35 = tpu.matmul %33, %34, %cst_21 {dimension_numbers = #tpu.dot_dimension_numbers<[1], [0], [0], [1], [0, 0, 1, 1], [], []>} : vector<32x128xbf16>, vector<128x128xbf16>, vector<32x128xf32> -> vector<32x128xf32>
    %36 = arith.addf %32, %35 : vector<32x128xf32>
    %c0_22 = arith.constant 0 : index
    %c0_23 = arith.constant 0 : index
    %37 = vector.load %arg8[%c0_22, %c0_23] : memref<1x128xf32, #tpu.memory_space<vmem>>, vector<1x128xf32>
    %c0_24 = arith.constant 0 : index
    %c0_25 = arith.constant 0 : index
    %38 = vector.load %arg9[%c0_24, %c0_25] : memref<1x128xf32, #tpu.memory_space<vmem>>, vector<1x128xf32>
    %cst_26 = arith.constant dense<0.000000e+00> : vector<128xf32>
    %39 = vector.multi_reduction <add>, %36, %cst_26 [0] : vector<32x128xf32> to vector<128xf32>
    %40 = vector.shape_cast %39 : vector<128xf32> to vector<1x128xf32>
    %cst_27 = arith.constant 3.125000e-02 : f32
    %41 = vector.broadcast %cst_27 : f32 to vector<1x128xf32>
    %42 = arith.mulf %40, %41 : vector<1x128xf32>
    %43 = vector.broadcast %42 : vector<1x128xf32> to vector<32x128xf32>
    %44 = arith.subf %36, %43 : vector<32x128xf32>
    %45 = arith.mulf %44, %44 : vector<32x128xf32>
    %cst_28 = arith.constant dense<0.000000e+00> : vector<128xf32>
    %46 = vector.multi_reduction <add>, %45, %cst_28 [0] : vector<32x128xf32> to vector<128xf32>
    %47 = vector.shape_cast %46 : vector<128xf32> to vector<1x128xf32>
    %cst_29 = arith.constant 3.125000e-02 : f32
    %48 = vector.broadcast %cst_29 : f32 to vector<1x128xf32>
    %49 = arith.mulf %47, %48 : vector<1x128xf32>
    %cst_30 = arith.constant 9.99999974E-6 : f32
    %50 = vector.broadcast %cst_30 : f32 to vector<1x128xf32>
    %51 = arith.addf %49, %50 : vector<1x128xf32>
    %52 = math.rsqrt %51 : vector<1x128xf32>
    %53 = vector.broadcast %52 : vector<1x128xf32> to vector<32x128xf32>
    %54 = arith.mulf %44, %53 : vector<32x128xf32>
    %55 = vector.broadcast %37 : vector<1x128xf32> to vector<32x128xf32>
    %56 = arith.mulf %54, %55 : vector<32x128xf32>
    %57 = vector.broadcast %38 : vector<1x128xf32> to vector<32x128xf32>
    %58 = arith.addf %56, %57 : vector<32x128xf32>
    %cst_31 = arith.constant 0.000000e+00 : f32
    %59 = vector.broadcast %cst_31 : f32 to vector<32x128xf32>
    %60 = arith.cmpf oge, %58, %59 : vector<32x128xf32>
    %cst_32 = arith.constant 0.00999999977 : f32
    %61 = vector.broadcast %cst_32 : f32 to vector<32x128xf32>
    %62 = arith.mulf %61, %58 : vector<32x128xf32>
    %63 = arith.select %60, %58, %62 : vector<32x128xi1>, vector<32x128xf32>
    %c0_33 = arith.constant 0 : index
    %c0_34 = arith.constant 0 : index
    %64 = vector.load %arg10[%c0_33, %c0_34] : memref<16x128xbf16, #tpu.memory_space<vmem>>, vector<16x128xbf16>
    %65 = arith.extf %64 : vector<16x128xbf16> to vector<16x128xf32>
    %66 = vector.extract_strided_slice %63 {offsets = [0, 0], sizes = [16, 128], strides = [1, 1]} : vector<32x128xf32> to vector<16x128xf32>
    %67 = arith.mulf %66, %65 : vector<16x128xf32>
    %cst_35 = arith.constant dense<0.000000e+00> : vector<16xf32>
    %68 = vector.multi_reduction <add>, %67, %cst_35 [1] : vector<16x128xf32> to vector<16xf32>
    %69 = vector.shape_cast %68 : vector<16xf32> to vector<16x1xf32>
    %cst_36 = arith.constant dense<0.000000e+00> : vector<1xf32>
    %70 = vector.multi_reduction <add>, %69, %cst_36 [0] : vector<16x1xf32> to vector<1xf32>
    %71 = vector.shape_cast %70 : vector<1xf32> to vector<1x1xf32>
    %72 = arith.negf %71 : vector<1x1xf32>
    %73 = math.exp %72 : vector<1x1xf32>
    %cst_37 = arith.constant 1.000000e+00 : f32
    %74 = vector.broadcast %cst_37 : f32 to vector<1x1xf32>
    %75 = arith.addf %74, %73 : vector<1x1xf32>
    %76 = arith.divf %74, %75 : vector<1x1xf32>
    %77 = vector.shape_cast %76 : vector<1x1xf32> to vector<1x1xf32>
    %78 = vector.broadcast %77 : vector<1x1xf32> to vector<16x128xf32>
    %c0_38 = arith.constant 0 : index
    %c0_39 = arith.constant 0 : index
    %c0_40 = arith.constant 0 : index
    %79 = vector.load %arg11[%c0_38, %c0_39, %c0_40] : memref<2x16x128xf32, #tpu.memory_space<vmem>>, vector<1x16x128xf32>
    %80 = vector.shape_cast %79 : vector<1x16x128xf32> to vector<16x128xf32>
    %81 = vector.shape_cast %78 : vector<16x128xf32> to vector<1x16x128xf32>
    tpu.vector_store %arg11[%c0_38, %c0_39, %c0_40], %81 {strides = array<i32>} : memref<2x16x128xf32, #tpu.memory_space<vmem>>, vector<1x16x128xf32>,
    %82 = vector.extract_strided_slice %63 {offsets = [16, 0], sizes = [16, 128], strides = [1, 1]} : vector<32x128xf32> to vector<16x128xf32>
    %83 = arith.mulf %82, %65 : vector<16x128xf32>
    %cst_41 = arith.constant dense<0.000000e+00> : vector<16xf32>
    %84 = vector.multi_reduction <add>, %83, %cst_41 [1] : vector<16x128xf32> to vector<16xf32>
    %85 = vector.shape_cast %84 : vector<16xf32> to vector<16x1xf32>
    %cst_42 = arith.constant dense<0.000000e+00> : vector<1xf32>
    %86 = vector.multi_reduction <add>, %85, %cst_42 [0] : vector<16x1xf32> to vector<1xf32>
    %87 = vector.shape_cast %86 : vector<1xf32> to vector<1x1xf32>
    %88 = arith.negf %87 : vector<1x1xf32>
    %89 = math.exp %88 : vector<1x1xf32>
    %cst_43 = arith.constant 1.000000e+00 : f32
    %90 = vector.broadcast %cst_43 : f32 to vector<1x1xf32>
    %91 = arith.addf %90, %89 : vector<1x1xf32>
    %92 = arith.divf %90, %91 : vector<1x1xf32>
    %93 = vector.shape_cast %92 : vector<1x1xf32> to vector<1x1xf32>
    %94 = vector.broadcast %93 : vector<1x1xf32> to vector<16x128xf32>
    %c1 = arith.constant 1 : index
    %c0_44 = arith.constant 0 : index
    %c0_45 = arith.constant 0 : index
    %95 = vector.load %arg11[%c1, %c0_44, %c0_45] : memref<2x16x128xf32, #tpu.memory_space<vmem>>, vector<1x16x128xf32>
    %96 = vector.shape_cast %95 : vector<1x16x128xf32> to vector<16x128xf32>
    %97 = vector.shape_cast %94 : vector<16x128xf32> to vector<1x16x128xf32>
    tpu.vector_store %arg11[%c1, %c0_44, %c0_45], %97 {strides = array<i32>} : memref<2x16x128xf32, #tpu.memory_space<vmem>>, vector<1x16x128xf32>,
    return
  }
  func.func @transform_0(%arg0: i32) -> (i32, i32) {
    %c0_i32 = arith.constant 0 : i32
    %c0_i32_0 = arith.constant 0 : i32
    %c0_i32_1 = arith.constant 0 : i32
    return %c0_i32, %c0_i32_0 : i32, i32
  }
  func.func @transform_1(%arg0: i32) -> (i32, i32) {
    %c0_i32 = arith.constant 0 : i32
    %c0_i32_0 = arith.constant 0 : i32
    %c0_i32_1 = arith.constant 0 : i32
    return %c0_i32, %c0_i32_0 : i32, i32
  }
  func.func @transform_2(%arg0: i32) -> (i32, i32) {
    %c0_i32 = arith.constant 0 : i32
    %c0_i32_0 = arith.constant 0 : i32
    %c0_i32_1 = arith.constant 0 : i32
    return %c0_i32, %c0_i32_0 : i32, i32
  }
  func.func @transform_3(%arg0: i32) -> (i32, i32) {
    %c0_i32 = arith.constant 0 : i32
    %c0_i32_0 = arith.constant 0 : i32
    %c0_i32_1 = arith.constant 0 : i32
    return %c0_i32, %c0_i32_0 : i32, i32
  }
  func.func @transform_4(%arg0: i32) -> (i32, i32) {
    %c0_i32 = arith.constant 0 : i32
    %c0_i32_0 = arith.constant 0 : i32
    %c0_i32_1 = arith.constant 0 : i32
    return %c0_i32, %c0_i32_0 : i32, i32
  }
  func.func @transform_5(%arg0: i32) -> (i32, i32) {
    %c0_i32 = arith.constant 0 : i32
    %c0_i32_0 = arith.constant 0 : i32
    %c0_i32_1 = arith.constant 0 : i32
    return %c0_i32, %c0_i32_0 : i32, i32
  }
  func.func @transform_6(%arg0: i32) -> (i32, i32) {
    %c0_i32 = arith.constant 0 : i32
    %c0_i32_0 = arith.constant 0 : i32
    %c0_i32_1 = arith.constant 0 : i32
    return %c0_i32, %c0_i32_0 : i32, i32
  }
  func.func @transform_7(%arg0: i32) -> (i32, i32) {
    %c0_i32 = arith.constant 0 : i32
    %c0_i32_0 = arith.constant 0 : i32
    %c0_i32_1 = arith.constant 0 : i32
    return %c0_i32, %c0_i32_0 : i32, i32
  }
  func.func @transform_8(%arg0: i32) -> (i32, i32) {
    %c0_i32 = arith.constant 0 : i32
    %c0_i32_0 = arith.constant 0 : i32
    %c0_i32_1 = arith.constant 0 : i32
    return %c0_i32, %c0_i32_0 : i32, i32
  }
  func.func @transform_9(%arg0: i32) -> (i32, i32) {
    %c0_i32 = arith.constant 0 : i32
    %c0_i32_0 = arith.constant 0 : i32
    %c0_i32_1 = arith.constant 0 : i32
    return %c0_i32, %c0_i32_0 : i32, i32
  }
  func.func @transform_10(%arg0: i32) -> (i32, i32, i32) {
    %c0_i32 = arith.constant 0 : i32
    %c0_i32_0 = arith.constant 0 : i32
    %c0_i32_1 = arith.constant 0 : i32
    %c0_i32_2 = arith.constant 0 : i32
    return %c0_i32, %c0_i32_0, %c0_i32_1 : i32, i32, i32
  }
}

</mosaic_0001>

<bundles_post_ra>
// kernel: mbs_discriminator_forward.4
= control target key start
LH: loop header
LB: loop body
LE: loop exit
PB: predicated region body
PF: predicated region fallthrough
CT: control target
= control target key end

     0   :  { %s1124_s9 = smov 0   ;;  %s1212_s0 = inlined_call_operand.vmem [shape: bf16[2048,48], index: 0, kind: input, shape index: {}]   ;;  %s1213_s1 = inlined_call_operand.vmem [shape: bf16[48,128], index: 1, kind: input, shape index: {}]   ;;  %s1214_s2 = inlined_call_operand.vmem [shape: bf16[2048,128], index: 2, kind: output, shape index: {}]  }
   0x1 LB: > { %s806_s10 = sadd.s32 4294967295, %s1107_s9   ;;  %p810_p0 = scmp.ge.s32.totalorder %s1107_s9, 1  ;;  %s1107_s9 = sphi %s1124_s9, %s12_s9  }
   0x2   : > { %p113_p1 = scmp.lt.s32.totalorder %s1107_s9, 9 }
   0x4   : > { %p114_p2 = pnand %p810_p0, %p113_p1 }
   0x5   : > { %v1082_v0 = vld [vmem:[%s1213_s1] sm:$0xff] (!%p114_p2)   ;;  %s811_s13 = sshll.u32 (!%p114_p2), %s806_s10, 5  ;;  %v1083_v1 = vld [vmem:[%s1213_s1 + $0x8] sm:$0xff] (!%p114_p2)   ;;  %v1084_v2 = vld [vmem:[%s1213_s1 + $0x10] sm:$0xff] (!%p114_p2)   ;;  %vm284_vm0 = vcmask (!%p114_p2), 392192  }
   0x6   : > { %117 = sbr.rel (%p114_p2) target bundleno = 265 (0x109), region = 28  ;;  %p136_p3 = scmp.lt.s32.totalorder (!%p114_p2), %s811_s13, 255  ;;  %1030 = vmatprep.subr.bf16.mxu0 (!%p114_p2), %v1082_v0  ;;  %1068 = vmatprep.subr.bf16.mxu1 (!%p114_p2), %v1082_v0 }
   0x7   : > { %1031 = vmatpush3.bf16.msra.mxu0 (!%p114_p2), %v1082_v0  ;;  %1071 = vmatpush3.bf16.msra.mxu1 (!%p114_p2), %v1082_v0 }
   0x8   : > { %1032 = vmatprep.subr.bf16.mxu0 (!%p114_p2), %v1083_v1  ;;  %1069 = vmatprep.subr.bf16.mxu1 (!%p114_p2), %v1083_v1 }
   0xb   : > { %1033 = vmatpush3.bf16.msra.mxu0 (!%p114_p2), %v1083_v1  ;;  %1072 = vmatpush3.bf16.msra.mxu1 (!%p114_p2), %v1083_v1 }
   0xc   : > { %1034 = vmatprep.subr.bf16.mxu0 (!%p114_p2), %v1084_v2  ;;  %1070 = vmatprep.subr.bf16.mxu1 (!%p114_p2), %v1084_v2 }
   0xd   : > { %s1216_s13 = smov (!%p136_p3, %s811_s13), 255 }
   0xe   : > { %s812_s18 = sshll.u32 %s1216_s13, 2 }
   0xf   : > { %s1149_s21 = scalar_lea.vmem %s1212_s0, %s812_s18  ;;  %1035 = vmatpush3.bf16.msra.mxu0 %v1084_v2  ;;  %1073 = vmatpush3.bf16.msra.mxu1 %v1084_v2  ;;  %s1188_s24 = scalar_lea.vmem %s1214_s2, %s812_s18 }
  0x10   : > { %v1085_v3 = vld [vmem:[%s1149_s21] sm:$0xff]   ;;  %v1087_v5 = vld [vmem:[%s1149_s21 + $0x8] sm:$0xff]   ;;  %v1089_v7 = vld [vmem:[%s1149_s21 + $0x10] sm:$0xff]  }
  0x11   : > { %v1086_v4 = vld [vmem:[%s1149_s21 + $0x40] sm:$0xff]   ;;  %1036 = vmatprep.mubr.msk.bf16.mxu0 %vm284_vm0, %v1085_v3  ;;  %v1088_v6 = vld [vmem:[%s1149_s21 + $0x48] sm:$0xff]   ;;  %v1090_v8 = vld [vmem:[%s1149_s21 + $0x50] sm:$0xff]  }
  0x12   : > { %1052 = vmatprep.mubr.msk.bf16.mxu1 %vm284_vm0, %v1086_v4  ;;  %1037 = vmatmul.mubr.msk.bf16.vlgmr.msra.gmra.mrb[0].mxu0 %vm284_vm0, %v1087_v5  ;;  %v1091_v9 = vld [vmem:[%s1149_s21 + $0x18] sm:$0xff]   ;;  %v1093_v11 = vld [vmem:[%s1149_s21 + $0x20] sm:$0xff]   ;;  %v1095_v13 = vld [vmem:[%s1149_s21 + $0x28] sm:$0xff]  }
  0x13   : > { %1053 = vmatmul.mubr.msk.bf16.vlgmr.msra.gmra.mrb[0].mxu1 %vm284_vm0, %v1088_v6  ;;  %1040 = vmatprep.mubr.msk.bf16.mxu0 %vm284_vm0, %v1089_v7  ;;  %v1092_v10 = vld [vmem:[%s1149_s21 + $0x58] sm:$0xff]   ;;  %v1094_v12 = vld [vmem:[%s1149_s21 + $0x60] sm:$0xff]   ;;  %v1096_v14 = vld [vmem:[%s1149_s21 + $0x68] sm:$0xff]  }
  0x14   : > { %1056 = vmatprep.mubr.msk.bf16.mxu1 %vm284_vm0, %v1090_v8  ;;  %v1097_v15 = vld [vmem:[%s1149_s21 + $0x30] sm:$0xff]   ;;  %v1099_v17 = vld [vmem:[%s1149_s21 + $0x38] sm:$0xff]  }
  0x15   : > { %v1098_v16 = vld [vmem:[%s1149_s21 + $0x70] sm:$0xff]   ;;  %v1100_v18 = vld [vmem:[%s1149_s21 + $0x78] sm:$0xff]  }
  0x1a   : > { %1041 = vmatmul.mubr.msk.bf16.gmra.mrb[4].mxu0 %vm284_vm0, %v1091_v9 }
  0x1b   : > { %1057 = vmatmul.mubr.msk.bf16.gmra.mrb[4].mxu1 %vm284_vm0, %v1092_v10  ;;  %1044 = vmatprep.mubr.msk.bf16.mxu0 %vm284_vm0, %v1093_v11 }
  0x1c   : > { %1060 = vmatprep.mubr.msk.bf16.mxu1 %vm284_vm0, %v1094_v12 }
  0x22   : > { %1045 = vmatmul.mubr.msk.bf16.gmra.mrb[8].mxu0 %vm284_vm0, %v1095_v13 }
  0x23   : > { %1061 = vmatmul.mubr.msk.bf16.gmra.mrb[8].mxu1 %vm284_vm0, %v1096_v14  ;;  %1048 = vmatprep.mubr.msk.bf16.mxu0 %vm284_vm0, %v1097_v15 }
  0x24   : > { %1064 = vmatprep.mubr.msk.bf16.mxu1 %vm284_vm0, %v1098_v16 }
  0x2a   : > { %1049 = vmatmul.mubr.msk.bf16.gmra.mrb[12].mxu0 %vm284_vm0, %v1099_v17 }
  0x2b   : > { %1065 = vmatmul.mubr.msk.bf16.gmra.mrb[12].mxu1 %vm284_vm0, %v1100_v18 }
  0xe5   : > { %v1038_v19 = vpop.f32.mrb[0].mxu0 }
  0xe6   : > { %v1054_v20 = vpop.f32.mrb[0].mxu1  ;;  %vm496_vm1 = vcmp.ge.f32.partialorder %v1038_v19, 0.0  ;;  %v528_v21 = vmul.f32 0.01, %v1038_v19  ;;  %v367_v23 = vpop.f32.mrb[1].mxu0 }
  0xe7   : > { %v544_v22 = vmul.f32 0.01, %v1054_v20  ;;  %vm512_vm2 = vcmp.ge.f32.partialorder %v1054_v20, 0.0  ;;  %v431_v24 = vpop.f32.mrb[1].mxu1  ;;  %v526_v25 = vmul.f32 0.01, %v367_v23 }
  0xe8   : > { %v1039_v26 = vpop.f32.mrb[2].mxu0  ;;  %v1055_v27 = vpop.f32.mrb[2].mxu1  ;;  %v560_v28 = vsel %vm496_vm1, %v1038_v19, %v528_v21  ;;  %v542_v29 = vmul.f32 0.01, %v431_v24  ;;  %vm494_vm4 = vcmp.ge.f32.partialorder %v367_v23, 0.0  ;;  %vm510_vm6 = vcmp.ge.f32.partialorder %v431_v24, 0.0 }
  0xe9   : > { %vm497_vm3 = vcmp.ge.f32.partialorder %v1039_v26, 0.0  ;;  %v529_v30 = vmul.f32 0.01, %v1039_v26  ;;  %v576_v31 = vsel %vm512_vm2, %v1054_v20, %v544_v22  ;;  %vm513_vm5 = vcmp.ge.f32.partialorder %v1055_v27, 0.0  ;;  %v370_v33 = vpop.f32.mrb[3].mxu0  ;;  %v434_v34 = vpop.f32.mrb[3].mxu1 }
  0xea   : > { %v545_v32 = vmul.f32 0.01, %v1055_v27  ;;  %vm495_vm7 = vcmp.ge.f32.partialorder %v370_v33, 0.0  ;;  %v527_v36 = vmul.f32 0.01, %v370_v33  ;;  %vm511_vm8 = vcmp.ge.f32.partialorder %v434_v34, 0.0 }
  0xeb   : > { %v561_v35 = vsel %vm497_vm3, %v1039_v26, %v529_v30  ;;  %v543_v39 = vmul.f32 0.01, %v434_v34  ;;  %v558_v40 = vsel %vm494_vm4, %v367_v23, %v526_v25  ;;  %v574_v45 = vsel %vm510_vm6, %v431_v24, %v542_v29 }
  0xec   : > { %v924_v37 = vpack.c.bf16 %v561_v35, %v560_v28  ;;  %v577_v38 = vsel %vm513_vm5, %v1055_v27, %v545_v32  ;;  %v559_v42 = vsel %vm495_vm7, %v370_v33, %v527_v36 }
  0xed   : > { %v964_v41 = vpack.c.bf16 %v577_v38, %v576_v31  ;;  %v1042_v43 = vpop.f32.mrb[4].mxu0  ;;  %v919_v46 = vpack.c.bf16 %v559_v42, %v558_v40  ;;  %v575_v47 = vsel %vm511_vm8, %v434_v34, %v543_v39 }
  0xee   : > { %v1058_v44 = vpop.f32.mrb[4].mxu1  ;;  %996 = vst [vmem:[%s1188_s24 + $0x8] sm:$0xff] %v924_v37   ;;  %v532_v48 = vmul.f32 0.01, %v1042_v43  ;;  %v383_v49 = vpop.f32.mrb[5].mxu0  ;;  %v959_v51 = vpack.c.bf16 %v575_v47, %v574_v45  ;;  %vm500_vm9 = vcmp.ge.f32.partialorder %v1042_v43, 0.0 }
  0xef   : > { %v447_v50 = vpop.f32.mrb[5].mxu1  ;;  %1004 = vst [vmem:[%s1188_s24 + $0x48] sm:$0xff] %v964_v41   ;;  %v548_v52 = vmul.f32 0.01, %v1058_v44  ;;  %v1043_v53 = vpop.f32.mrb[6].mxu0  ;;  %920 = vst [vmem:[%s1188_s24] sm:$0xff] %v919_v46   ;;  %vm516_vm10 = vcmp.ge.f32.partialorder %v1058_v44, 0.0 }
  0xf0   : > { %v1059_v54 = vpop.f32.mrb[6].mxu1  ;;  %v530_v55 = vmul.f32 0.01, %v383_v49  ;;  %v546_v56 = vmul.f32 0.01, %v447_v50  ;;  %v386_v57 = vpop.f32.mrb[7].mxu0  ;;  %v564_v60 = vsel %vm500_vm9, %v1042_v43, %v532_v48 }
  0xf1   : > { %1003 = vst [vmem:[%s1188_s24 + $0x40] sm:$0xff] %v959_v51   ;;  %vm498_vm11 = vcmp.ge.f32.partialorder %v383_v49, 0.0  ;;  %vm501_vm12 = vcmp.ge.f32.partialorder %v1043_v53, 0.0  ;;  %v533_v58 = vmul.f32 0.01, %v1043_v53  ;;  %vm517_vm13 = vcmp.ge.f32.partialorder %v1059_v54, 0.0 }
  0xf2   : > { %v450_v59 = vpop.f32.mrb[7].mxu1  ;;  %vm514_vm14 = vcmp.ge.f32.partialorder %v447_v50, 0.0  ;;  %v549_v61 = vmul.f32 0.01, %v1059_v54  ;;  %vm499_vm15 = vcmp.ge.f32.partialorder %v386_v57, 0.0  ;;  %v580_v1 = vsel %vm516_vm10, %v1058_v44, %v548_v52 }
  0xf3   : > { %v565_v62 = vsel %vm501_vm12, %v1043_v53, %v533_v58  ;;  %v531_v63 = vmul.f32 0.01, %v386_v57  ;;  %vm515_vm0 = vcmp.ge.f32.partialorder %v450_v59, 0.0  ;;  %v547_v0 = vmul.f32 0.01, %v450_v59 }
  0xf4   : > { %v562_v2 = vsel %vm498_vm11, %v383_v49, %v530_v55  ;;  %v934_v3 = vpack.c.bf16 %v565_v62, %v564_v60  ;;  %v581_v4 = vsel %vm517_vm13, %v1059_v54, %v549_v61  ;;  %v578_v5 = vsel %vm514_vm14, %v447_v50, %v546_v56 }
  0xf5   : > { %v974_v6 = vpack.c.bf16 %v581_v4, %v580_v1  ;;  %v563_v7 = vsel %vm499_vm15, %v386_v57, %v531_v63  ;;  %v579_v8 = vsel %vm515_vm0, %v450_v59, %v547_v0  ;;  %v1046_v9 = vpop.f32.mrb[8].mxu0 }
  0xf6   : > { %v1062_v10 = vpop.f32.mrb[8].mxu1  ;;  %998 = vst [vmem:[%s1188_s24 + $0x18] sm:$0xff] %v934_v3   ;;  %v929_v11 = vpack.c.bf16 %v563_v7, %v562_v2  ;;  %v969_v12 = vpack.c.bf16 %v579_v8, %v578_v5  ;;  %vm504_vm1 = vcmp.ge.f32.partialorder %v1046_v9, 0.0  ;;  %v536_v13 = vmul.f32 0.01, %v1046_v9  ;;  %v399_v14 = vpop.f32.mrb[9].mxu0 }
  0xf7   : > { %v463_v15 = vpop.f32.mrb[9].mxu1  ;;  %1006 = vst [vmem:[%s1188_s24 + $0x58] sm:$0xff] %v974_v6   ;;  %vm520_vm2 = vcmp.ge.f32.partialorder %v1062_v10, 0.0  ;;  %v552_v16 = vmul.f32 0.01, %v1062_v10  ;;  %v1047_v19 = vpop.f32.mrb[10].mxu0 }
  0xf8   : > { %997 = vst [vmem:[%s1188_s24 + $0x10] sm:$0xff] %v929_v11   ;;  %1005 = vst [vmem:[%s1188_s24 + $0x50] sm:$0xff] %v969_v12   ;;  %v534_v17 = vmul.f32 0.01, %v399_v14  ;;  %v550_v18 = vmul.f32 0.01, %v463_v15  ;;  %v568_v21 = vsel %vm504_vm1, %v1046_v9, %v536_v13 }
  0xf9   : > { %v1063_v20 = vpop.f32.mrb[10].mxu1  ;;  %vm502_vm3 = vcmp.ge.f32.partialorder %v399_v14, 0.0  ;;  %vm505_vm4 = vcmp.ge.f32.partialorder %v1047_v19, 0.0  ;;  %v537_v22 = vmul.f32 0.01, %v1047_v19  ;;  %v402_v23 = vpop.f32.mrb[11].mxu0  ;;  %v584_v29 = vsel %vm520_vm2, %v1062_v10, %v552_v16 }
  0xfa   : > { %v466_v24 = vpop.f32.mrb[11].mxu1  ;;  %vm518_vm5 = vcmp.ge.f32.partialorder %v463_v15, 0.0  ;;  %vm521_vm6 = vcmp.ge.f32.partialorder %v1063_v20, 0.0  ;;  %v553_v25 = vmul.f32 0.01, %v1063_v20  ;;  %vm503_vm7 = vcmp.ge.f32.partialorder %v402_v23, 0.0 }
  0xfb   : > { %v569_v26 = vsel %vm505_vm4, %v1047_v19, %v537_v22  ;;  %v535_v27 = vmul.f32 0.01, %v402_v23  ;;  %vm519_vm8 = vcmp.ge.f32.partialorder %v466_v24, 0.0  ;;  %v551_v28 = vmul.f32 0.01, %v466_v24 }
  0xfc   : > { %v566_v30 = vsel %vm502_vm3, %v399_v14, %v534_v17  ;;  %v944_v31 = vpack.c.bf16 %v569_v26, %v568_v21  ;;  %v585_v32 = vsel %vm521_vm6, %v1063_v20, %v553_v25  ;;  %v582_v33 = vsel %vm518_vm5, %v463_v15, %v550_v18 }
  0xfd   : > { %v984_v34 = vpack.c.bf16 %v585_v32, %v584_v29  ;;  %v567_v35 = vsel %vm503_vm7, %v402_v23, %v535_v27  ;;  %v583_v36 = vsel %vm519_vm8, %v466_v24, %v551_v28  ;;  %v1050_v37 = vpop.f32.mrb[12].mxu0 }
  0xfe   : > { %v1066_v38 = vpop.f32.mrb[12].mxu1  ;;  %1000 = vst [vmem:[%s1188_s24 + $0x28] sm:$0xff] %v944_v31   ;;  %v939_v39 = vpack.c.bf16 %v567_v35, %v566_v30  ;;  %v979_v40 = vpack.c.bf16 %v583_v36, %v582_v33  ;;  %vm508_vm9 = vcmp.ge.f32.partialorder %v1050_v37, 0.0  ;;  %v540_v41 = vmul.f32 0.01, %v1050_v37  ;;  %v415_v42 = vpop.f32.mrb[13].mxu0 }
  0xff   : > { %v479_v43 = vpop.f32.mrb[13].mxu1  ;;  %1008 = vst [vmem:[%s1188_s24 + $0x68] sm:$0xff] %v984_v34   ;;  %vm524_vm10 = vcmp.ge.f32.partialorder %v1066_v38, 0.0  ;;  %v556_v44 = vmul.f32 0.01, %v1066_v38  ;;  %v1051_v47 = vpop.f32.mrb[14].mxu0 }
 0x100   : > { %999 = vst [vmem:[%s1188_s24 + $0x20] sm:$0xff] %v939_v39   ;;  %1007 = vst [vmem:[%s1188_s24 + $0x60] sm:$0xff] %v979_v40   ;;  %v538_v45 = vmul.f32 0.01, %v415_v42  ;;  %v554_v46 = vmul.f32 0.01, %v479_v43  ;;  %v572_v49 = vsel %vm508_vm9, %v1050_v37, %v540_v41 }
 0x101   : > { %v1067_v48 = vpop.f32.mrb[14].mxu1  ;;  %vm506_vm11 = vcmp.ge.f32.partialorder %v415_v42, 0.0  ;;  %vm509_vm12 = vcmp.ge.f32.partialorder %v1051_v47, 0.0  ;;  %v541_v50 = vmul.f32 0.01, %v1051_v47  ;;  %v418_v51 = vpop.f32.mrb[15].mxu0  ;;  %v588_v57 = vsel %vm524_vm10, %v1066_v38, %v556_v44 }
 0x102   : > { %v482_v52 = vpop.f32.mrb[15].mxu1  ;;  %vm522_vm13 = vcmp.ge.f32.partialorder %v479_v43, 0.0  ;;  %vm525_vm14 = vcmp.ge.f32.partialorder %v1067_v48, 0.0  ;;  %v557_v53 = vmul.f32 0.01, %v1067_v48  ;;  %vm507_vm15 = vcmp.ge.f32.partialorder %v418_v51, 0.0 }
 0x103   : > { %v573_v54 = vsel %vm509_vm12, %v1051_v47, %v541_v50  ;;  %v539_v55 = vmul.f32 0.01, %v418_v51  ;;  %vm523_vm0 = vcmp.ge.f32.partialorder %v482_v52, 0.0  ;;  %v555_v56 = vmul.f32 0.01, %v482_v52 }
 0x104   : > { %v570_v58 = vsel %vm506_vm11, %v415_v42, %v538_v45  ;;  %v954_v59 = vpack.c.bf16 %v573_v54, %v572_v49  ;;  %v589_v60 = vsel %vm525_vm14, %v1067_v48, %v557_v53  ;;  %v586_v61 = vsel %vm522_vm13, %v479_v43, %v554_v46 }
 0x105   : > { %v994_v62 = vpack.c.bf16 %v589_v60, %v588_v57  ;;  %v571_v63 = vsel %vm507_vm15, %v418_v51, %v539_v55  ;;  %v587_v0 = vsel %vm523_vm0, %v482_v52, %v555_v56 }
 0x106   : > { %1002 = vst [vmem:[%s1188_s24 + $0x38] sm:$0xff] %v954_v59   ;;  %v949_v1 = vpack.c.bf16 %v571_v63, %v570_v58  ;;  %v989_v2 = vpack.c.bf16 %v587_v0, %v586_v61 }
 0x107   : > { %1010 = vst [vmem:[%s1188_s24 + $0x78] sm:$0xff] %v994_v62  }
 0x108   : > { %1001 = vst [vmem:[%s1188_s24 + $0x30] sm:$0xff] %v949_v1   ;;  %1009 = vst [vmem:[%s1188_s24 + $0x70] sm:$0xff] %v989_v2  }
 0x109 PF: > { %s12_s9 = sadd.s32 1, %s1107_s9  }
 0x10a   : > { %p9_p4 = scmp.ge.s32.totalorder %s12_s9, 10  }
 0x10c   :  { %11 = sbr.rel (!%p9_p4) target bundleno = 1 (0x1), region = 58 }

// kernel: mbs_discriminator_forward.5
= control target key start
LH: loop header
LB: loop body
LE: loop exit
PB: predicated region body
PF: predicated region fallthrough
CT: control target
= control target key end

     0   :  { %v2359_v0 = vmov 0   ;;  %s4602_s1 = inlined_call_operand.vmem [shape: bf16[256,128], index: 1, kind: input, shape index: {}]   ;;  %s4603_s0 = inlined_call_operand.vmem [shape: bf16[512,256], index: 0, kind: input, shape index: {}]   ;;  %s4604_s2 = inlined_call_operand.vmem [shape: f32[1,128], index: 2, kind: input, shape index: {}]   ;;  %s4605_s3 = inlined_call_operand.vmem [shape: f32[1,128], index: 3, kind: input, shape index: {}]   ;;  %s4606_s4 = inlined_call_operand.vmem [shape: bf16[512,128], index: 4, kind: output, shape index: {}]  }
   0x1   :  { %530 = vmatprep.subr.bf16.mxu0 %v2359_v0  ;;  %v2245_v1 = vld [vmem:[%s4602_s1] sm:$0xff]   ;;  %2212 = vmatprep.subr.bf16.mxu1 %v2359_v0  ;;  %v2246_v2 = vld [vmem:[%s4602_s1 + $0x8] sm:$0xff]   ;;  %v2247_v3 = vld [vmem:[%s4602_s1 + $0x10] sm:$0xff]  }
   0x2   :  { %531 = vmatpush1.bf16.msra.mxu0 %v2245_v1  ;;  %2228 = vmatpush1.bf16.msra.mxu1 %v2245_v1  ;;  %v2248_v4 = vld [vmem:[%s4602_s1 + $0x18] sm:$0xff]   ;;  %v2249_v5 = vld [vmem:[%s4602_s1 + $0x20] sm:$0xff]   ;;  %v2250_v7 = vld [vmem:[%s4602_s1 + $0x28] sm:$0xff]  }
   0x3   :  { %532 = vmatprep.subr.bf16.mxu0 %v2359_v0  ;;  %2213 = vmatprep.subr.bf16.mxu1 %v2359_v0  ;;  %v2263_v6 = vld [vmem:[%s4603_s0 + $0x4] ss:$8 sps:$4 sm:$0xff]   ;;  %v2251_v8 = vld [vmem:[%s4602_s1 + $0x30] sm:$0xff]   ;;  %v2252_v9 = vld [vmem:[%s4602_s1 + $0x38] sm:$0xff]  }
   0x4   :  { %562 = vmatprep.mubr.bf16.mxu0 %v2263_v6  ;;  %v2287_v10 = vld [vmem:[%s4603_s0 + $0x104] ss:$8 sps:$4 sm:$0xff]   ;;  %v2255_v13 = vld [vmem:[%s4602_s1 + $0x50] sm:$0xff]   ;;  %v2256_v14 = vld [vmem:[%s4602_s1 + $0x58] sm:$0xff]  }
   0x5   :  { %690 = vmatprep.mubr.bf16.mxu1 %v2287_v10  ;;  %v2253_v11 = vld [vmem:[%s4602_s1 + $0x40] sm:$0xff]   ;;  %v2254_v12 = vld [vmem:[%s4602_s1 + $0x48] sm:$0xff]   ;;  %v2259_v17 = vld [vmem:[%s4602_s1 + $0x70] sm:$0xff]  }
   0x6   :  { %533 = vmatpush1.bf16.msra.mxu0 %v2246_v2  ;;  %2229 = vmatpush1.bf16.msra.mxu1 %v2246_v2  ;;  %v2257_v15 = vld [vmem:[%s4602_s1 + $0x60] sm:$0xff]   ;;  %v2258_v16 = vld [vmem:[%s4602_s1 + $0x68] sm:$0xff]   ;;  %v2260_v18 = vld [vmem:[%s4602_s1 + $0x78] sm:$0xff]  }
   0x7   :  { %534 = vmatprep.subr.bf16.mxu0 %v2359_v0  ;;  %2214 = vmatprep.subr.bf16.mxu1 %v2359_v0  ;;  %v2261_v19 = vld [vmem:[%s4603_s0] ss:$8 sps:$4 sm:$0xff]   ;;  %v2264_v21 = vld [vmem:[%s4603_s0 + $0x14] ss:$8 sps:$4 sm:$0xff]   ;;  %v2266_v23 = vld [vmem:[%s4603_s0 + $0x10] ss:$8 sps:$4 sm:$0xff]  }
   0x8   :  { %v2285_v20 = vld [vmem:[%s4603_s0 + $0x100] ss:$8 sps:$4 sm:$0xff]   ;;  %v2291_v22 = vld [vmem:[%s4603_s0 + $0x114] ss:$8 sps:$4 sm:$0xff]   ;;  %v2293_v24 = vld [vmem:[%s4603_s0 + $0x110] ss:$8 sps:$4 sm:$0xff]  }
   0x9   :  { %v2267_v25 = vld [vmem:[%s4603_s0 + $0x24] ss:$8 sps:$4 sm:$0xff]   ;;  %v2269_v27 = vld [vmem:[%s4603_s0 + $0x20] ss:$8 sps:$4 sm:$0xff]   ;;  %v2270_v29 = vld [vmem:[%s4603_s0 + $0x34] ss:$8 sps:$4 sm:$0xff]  }
   0xa   :  { %535 = vmatpush1.bf16.msra.mxu0 %v2247_v3  ;;  %2230 = vmatpush1.bf16.msra.mxu1 %v2247_v3  ;;  %v2297_v26 = vld [vmem:[%s4603_s0 + $0x124] ss:$8 sps:$4 sm:$0xff]   ;;  %v2299_v28 = vld [vmem:[%s4603_s0 + $0x120] ss:$8 sps:$4 sm:$0xff]   ;;  %v2303_v30 = vld [vmem:[%s4603_s0 + $0x134] ss:$8 sps:$4 sm:$0xff]  }
   0xb   :  { %536 = vmatprep.subr.bf16.mxu0 %v2359_v0  ;;  %2215 = vmatprep.subr.bf16.mxu1 %v2359_v0  ;;  %v2272_v31 = vld [vmem:[%s4603_s0 + $0x30] ss:$8 sps:$4 sm:$0xff]   ;;  %v2273_v33 = vld [vmem:[%s4603_s0 + $0x44] ss:$8 sps:$4 sm:$0xff]   ;;  %v2275_v35 = vld [vmem:[%s4603_s0 + $0x40] ss:$8 sps:$4 sm:$0xff]  }
   0xc   :  { %v2305_v32 = vld [vmem:[%s4603_s0 + $0x130] ss:$8 sps:$4 sm:$0xff]   ;;  %v2309_v34 = vld [vmem:[%s4603_s0 + $0x144] ss:$8 sps:$4 sm:$0xff]   ;;  %v2311_v36 = vld [vmem:[%s4603_s0 + $0x140] ss:$8 sps:$4 sm:$0xff]  }
   0xd   :  { %v2276_v37 = vld [vmem:[%s4603_s0 + $0x54] ss:$8 sps:$4 sm:$0xff]   ;;  %v2278_v39 = vld [vmem:[%s4603_s0 + $0x50] ss:$8 sps:$4 sm:$0xff]   ;;  %v2279_v41 = vld [vmem:[%s4603_s0 + $0x64] ss:$8 sps:$4 sm:$0xff]  }
   0xe   :  { %537 = vmatpush1.bf16.msra.mxu0 %v2248_v4  ;;  %2231 = vmatpush1.bf16.msra.mxu1 %v2248_v4  ;;  %v2315_v38 = vld [vmem:[%s4603_s0 + $0x154] ss:$8 sps:$4 sm:$0xff]   ;;  %v2317_v40 = vld [vmem:[%s4603_s0 + $0x150] ss:$8 sps:$4 sm:$0xff]   ;;  %v2321_v42 = vld [vmem:[%s4603_s0 + $0x164] ss:$8 sps:$4 sm:$0xff]  }
   0xf   :  { %538 = vmatprep.subr.bf16.mxu0 %v2359_v0  ;;  %2216 = vmatprep.subr.bf16.mxu1 %v2359_v0  ;;  %v2281_v43 = vld [vmem:[%s4603_s0 + $0x60] ss:$8 sps:$4 sm:$0xff]   ;;  %v2282_v45 = vld [vmem:[%s4603_s0 + $0x74] ss:$8 sps:$4 sm:$0xff]   ;;  %v2284_v47 = vld [vmem:[%s4603_s0 + $0x70] ss:$8 sps:$4 sm:$0xff]  }
  0x10   :  { %v2323_v44 = vld [vmem:[%s4603_s0 + $0x160] ss:$8 sps:$4 sm:$0xff]   ;;  %v2327_v46 = vld [vmem:[%s4603_s0 + $0x174] ss:$8 sps:$4 sm:$0xff]   ;;  %v2329_v48 = vld [vmem:[%s4603_s0 + $0x170] ss:$8 sps:$4 sm:$0xff]  }
  0x11   :  { %v2288_v49 = vld [vmem:[%s4603_s0 + $0x84] ss:$8 sps:$4 sm:$0xff]   ;;  %v2290_v51 = vld [vmem:[%s4603_s0 + $0x80] ss:$8 sps:$4 sm:$0xff]   ;;  %v2294_v53 = vld [vmem:[%s4603_s0 + $0x94] ss:$8 sps:$4 sm:$0xff]  }
  0x12   :  { %539 = vmatpush1.bf16.msra.mxu0 %v2249_v5  ;;  %2232 = vmatpush1.bf16.msra.mxu1 %v2249_v5  ;;  %v2333_v50 = vld [vmem:[%s4603_s0 + $0x184] ss:$8 sps:$4 sm:$0xff]   ;;  %v2335_v52 = vld [vmem:[%s4603_s0 + $0x180] ss:$8 sps:$4 sm:$0xff]   ;;  %v2336_v54 = vld [vmem:[%s4603_s0 + $0x194] ss:$8 sps:$4 sm:$0xff]  }
  0x13   :  { %540 = vmatprep.subr.bf16.mxu0 %v2359_v0  ;;  %2217 = vmatprep.subr.bf16.mxu1 %v2359_v0  ;;  %v2296_v55 = vld [vmem:[%s4603_s0 + $0x90] ss:$8 sps:$4 sm:$0xff]   ;;  %v2300_v57 = vld [vmem:[%s4603_s0 + $0xa4] ss:$8 sps:$4 sm:$0xff]   ;;  %v2302_v59 = vld [vmem:[%s4603_s0 + $0xa0] ss:$8 sps:$4 sm:$0xff]  }
  0x14   :  { %v2338_v56 = vld [vmem:[%s4603_s0 + $0x190] ss:$8 sps:$4 sm:$0xff]   ;;  %v2339_v58 = vld [vmem:[%s4603_s0 + $0x1a4] ss:$8 sps:$4 sm:$0xff]   ;;  %v2341_v60 = vld [vmem:[%s4603_s0 + $0x1a0] ss:$8 sps:$4 sm:$0xff]  }
  0x15   :  { %v2306_v61 = vld [vmem:[%s4603_s0 + $0xb4] ss:$8 sps:$4 sm:$0xff]   ;;  %v2308_v63 = vld [vmem:[%s4603_s0 + $0xb0] ss:$8 sps:$4 sm:$0xff]   ;;  %v2312_v1 = vld [vmem:[%s4603_s0 + $0xc4] ss:$8 sps:$4 sm:$0xff]  }
  0x16   :  { %541 = vmatpush1.bf16.msra.mxu0 %v2250_v7  ;;  %2233 = vmatpush1.bf16.msra.mxu1 %v2250_v7  ;;  %v2342_v62 = vld [vmem:[%s4603_s0 + $0x1b4] ss:$8 sps:$4 sm:$0xff]   ;;  %v2345_v2 = vld [vmem:[%s4603_s0 + $0x1c4] ss:$8 sps:$4 sm:$0xff]   ;;  %v2314_v3 = vld [vmem:[%s4603_s0 + $0xc0] ss:$8 sps:$4 sm:$0xff]  }
  0x17   :  { %542 = vmatprep.subr.bf16.mxu0 %v2359_v0  ;;  %2218 = vmatprep.subr.bf16.mxu1 %v2359_v0  ;;  %v2347_v4 = vld [vmem:[%s4603_s0 + $0x1c0] ss:$8 sps:$4 sm:$0xff]   ;;  %v2318_v5 = vld [vmem:[%s4603_s0 + $0xd4] ss:$8 sps:$4 sm:$0xff]   ;;  %v2320_v7 = vld [vmem:[%s4603_s0 + $0xd0] ss:$8 sps:$4 sm:$0xff]  }
  0x18   :  { %v2348_v6 = vld [vmem:[%s4603_s0 + $0x1d4] ss:$8 sps:$4 sm:$0xff]   ;;  %v2351_v10 = vld [vmem:[%s4603_s0 + $0x1e4] ss:$8 sps:$4 sm:$0xff]  }
  0x1a   :  { %543 = vmatpush1.bf16.msra.mxu0 %v2251_v8  ;;  %2234 = vmatpush1.bf16.msra.mxu1 %v2251_v8  ;;  %v2350_v8 = vld [vmem:[%s4603_s0 + $0x1d0] ss:$8 sps:$4 sm:$0xff]  }
  0x1b   :  { %544 = vmatprep.subr.bf16.mxu0 %v2359_v0  ;;  %2219 = vmatprep.subr.bf16.mxu1 %v2359_v0 }
  0x1e   :  { %545 = vmatpush1.bf16.msra.mxu0 %v2252_v9  ;;  %2235 = vmatpush1.bf16.msra.mxu1 %v2252_v9  ;;  %v2324_v9 = vld [vmem:[%s4603_s0 + $0xe4] ss:$8 sps:$4 sm:$0xff]  }
  0x1f   :  { %546 = vmatprep.subr.bf16.mxu0 %v2359_v0  ;;  %2220 = vmatprep.subr.bf16.mxu1 %v2359_v0 }
  0x22   :  { %547 = vmatpush1.bf16.msra.mxu0 %v2253_v11  ;;  %2236 = vmatpush1.bf16.msra.mxu1 %v2253_v11  ;;  %v2326_v11 = vld [vmem:[%s4603_s0 + $0xe0] ss:$8 sps:$4 sm:$0xff]  }
  0x23   :  { %548 = vmatprep.subr.bf16.mxu0 %v2359_v0  ;;  %2221 = vmatprep.subr.bf16.mxu1 %v2359_v0 }
  0x26   :  { %549 = vmatpush1.bf16.msra.mxu0 %v2254_v12  ;;  %2237 = vmatpush1.bf16.msra.mxu1 %v2254_v12  ;;  %v2353_v12 = vld [vmem:[%s4603_s0 + $0x1e0] ss:$8 sps:$4 sm:$0xff]  }
  0x27   :  { %550 = vmatprep.subr.bf16.mxu0 %v2359_v0  ;;  %2222 = vmatprep.subr.bf16.mxu1 %v2359_v0 }
  0x2a   :  { %551 = vmatpush1.bf16.msra.mxu0 %v2255_v13  ;;  %2238 = vmatpush1.bf16.msra.mxu1 %v2255_v13  ;;  %v2330_v13 = vld [vmem:[%s4603_s0 + $0xf4] ss:$8 sps:$4 sm:$0xff]  }
  0x2b   :  { %552 = vmatprep.subr.bf16.mxu0 %v2359_v0  ;;  %2223 = vmatprep.subr.bf16.mxu1 %v2359_v0 }
  0x2e   :  { %553 = vmatpush1.bf16.msra.mxu0 %v2256_v14  ;;  %2239 = vmatpush1.bf16.msra.mxu1 %v2256_v14  ;;  %v2354_v14 = vld [vmem:[%s4603_s0 + $0x1f4] ss:$8 sps:$4 sm:$0xff]  }
  0x2f   :  { %554 = vmatprep.subr.bf16.mxu0 %v2359_v0  ;;  %2224 = vmatprep.subr.bf16.mxu1 %v2359_v0 }
  0x32   :  { %555 = vmatpush1.bf16.msra.mxu0 %v2257_v15  ;;  %2240 = vmatpush1.bf16.msra.mxu1 %v2257_v15  ;;  %v2332_v15 = vld [vmem:[%s4603_s0 + $0xf0] ss:$8 sps:$4 sm:$0xff]  }
  0x33   :  { %556 = vmatprep.subr.bf16.mxu0 %v2359_v0  ;;  %2225 = vmatprep.subr.bf16.mxu1 %v2359_v0 }
  0x36   :  { %557 = vmatpush1.bf16.msra.mxu0 %v2258_v16  ;;  %2241 = vmatpush1.bf16.msra.mxu1 %v2258_v16  ;;  %v2356_v16 = vld [vmem:[%s4603_s0 + $0x1f0] ss:$8 sps:$4 sm:$0xff]  }
  0x37   :  { %558 = vmatprep.subr.bf16.mxu0 %v2359_v0  ;;  %2226 = vmatprep.subr.bf16.mxu1 %v2359_v0 }
  0x3a   :  { %559 = vmatpush1.bf16.msra.mxu0 %v2259_v17  ;;  %2242 = vmatpush1.bf16.msra.mxu1 %v2259_v17 }
  0x3b   :  { %560 = vmatprep.subr.bf16.mxu0 %v2359_v0  ;;  %2227 = vmatprep.subr.bf16.mxu1 %v2359_v0  ;;  %v2344_v0 = vld [vmem:[%s4603_s0 + $0x1b0] ss:$8 sps:$4 sm:$0xff]  }
  0x3e   :  { %561 = vmatpush1.bf16.msra.mxu0 %v2260_v18  ;;  %2243 = vmatpush1.bf16.msra.mxu1 %v2260_v18 }
  0x41   :  { %563 = vmatmul.mubr.bf16.vlgmr.msra.gmra.mrb[0].mxu0 %v2261_v19  ;;  %691 = vmatmul.mubr.bf16.vlgmr.msra.gmra.mrb[0].mxu1 %v2285_v20 }
  0x42   :  { %570 = vmatprep.mubr.bf16.mxu0 %v2264_v21  ;;  %698 = vmatprep.mubr.bf16.mxu1 %v2291_v22 }
  0x49   :  { %571 = vmatmul.mubr.bf16.gmra.mrb[4].mxu0 %v2266_v23  ;;  %699 = vmatmul.mubr.bf16.gmra.mrb[4].mxu1 %v2293_v24 }
  0x4a   :  { %578 = vmatprep.mubr.bf16.mxu0 %v2267_v25  ;;  %706 = vmatprep.mubr.bf16.mxu1 %v2297_v26 }
  0x51   :  { %579 = vmatmul.mubr.bf16.gmra.mrb[8].mxu0 %v2269_v27  ;;  %707 = vmatmul.mubr.bf16.gmra.mrb[8].mxu1 %v2299_v28 }
  0x52   :  { %586 = vmatprep.mubr.bf16.mxu0 %v2270_v29  ;;  %714 = vmatprep.mubr.bf16.mxu1 %v2303_v30 }
  0x59   :  { %587 = vmatmul.mubr.bf16.gmra.mrb[12].mxu0 %v2272_v31  ;;  %715 = vmatmul.mubr.bf16.gmra.mrb[12].mxu1 %v2305_v32 }
  0x5a   :  { %594 = vmatprep.mubr.bf16.mxu0 %v2273_v33  ;;  %722 = vmatprep.mubr.bf16.mxu1 %v2309_v34 }
  0x61   :  { %595 = vmatmul.mubr.bf16.gmra.mrb[16].mxu0 %v2275_v35  ;;  %723 = vmatmul.mubr.bf16.gmra.mrb[16].mxu1 %v2311_v36 }
  0x62   :  { %602 = vmatprep.mubr.bf16.mxu0 %v2276_v37  ;;  %730 = vmatprep.mubr.bf16.mxu1 %v2315_v38 }
  0x69   :  { %603 = vmatmul.mubr.bf16.gmra.mrb[20].mxu0 %v2278_v39  ;;  %731 = vmatmul.mubr.bf16.gmra.mrb[20].mxu1 %v2317_v40 }
  0x6a   :  { %610 = vmatprep.mubr.bf16.mxu0 %v2279_v41  ;;  %738 = vmatprep.mubr.bf16.mxu1 %v2321_v42 }
  0x71   :  { %611 = vmatmul.mubr.bf16.gmra.mrb[24].mxu0 %v2281_v43  ;;  %739 = vmatmul.mubr.bf16.gmra.mrb[24].mxu1 %v2323_v44 }
  0x72   :  { %618 = vmatprep.mubr.bf16.mxu0 %v2282_v45  ;;  %746 = vmatprep.mubr.bf16.mxu1 %v2327_v46 }
  0x79   :  { %619 = vmatmul.mubr.bf16.gmra.mrb[28].mxu0 %v2284_v47  ;;  %747 = vmatmul.mubr.bf16.gmra.mrb[28].mxu1 %v2329_v48 }
  0x7a   :  { %626 = vmatprep.mubr.bf16.mxu0 %v2288_v49  ;;  %754 = vmatprep.mubr.bf16.mxu1 %v2333_v50 }
  0x81   :  { %627 = vmatmul.mubr.bf16.gmra.mrb[32].mxu0 %v2290_v51  ;;  %755 = vmatmul.mubr.bf16.gmra.mrb[32].mxu1 %v2335_v52 }
  0x82   :  { %634 = vmatprep.mubr.bf16.mxu0 %v2294_v53  ;;  %762 = vmatprep.mubr.bf16.mxu1 %v2336_v54 }
  0x89   :  { %635 = vmatmul.mubr.bf16.gmra.mrb[36].mxu0 %v2296_v55  ;;  %763 = vmatmul.mubr.bf16.gmra.mrb[36].mxu1 %v2338_v56 }
  0x8a   :  { %642 = vmatprep.mubr.bf16.mxu0 %v2300_v57  ;;  %770 = vmatprep.mubr.bf16.mxu1 %v2339_v58 }
  0x91   :  { %643 = vmatmul.mubr.bf16.gmra.mrb[40].mxu0 %v2302_v59  ;;  %771 = vmatmul.mubr.bf16.gmra.mrb[40].mxu1 %v2341_v60 }
  0x92   :  { %650 = vmatprep.mubr.bf16.mxu0 %v2306_v61  ;;  %778 = vmatprep.mubr.bf16.mxu1 %v2342_v62 }
  0x99   :  { %651 = vmatmul.mubr.bf16.gmra.mrb[44].mxu0 %v2308_v63  ;;  %779 = vmatmul.mubr.bf16.gmra.mrb[44].mxu1 %v2344_v0 }
  0x9a   :  { %658 = vmatprep.mubr.bf16.mxu0 %v2312_v1  ;;  %786 = vmatprep.mubr.bf16.mxu1 %v2345_v2 }
  0xa1   :  { %659 = vmatmul.mubr.bf16.gmra.mrb[48].mxu0 %v2314_v3  ;;  %787 = vmatmul.mubr.bf16.gmra.mrb[48].mxu1 %v2347_v4 }
  0xa2   :  { %666 = vmatprep.mubr.bf16.mxu0 %v2318_v5  ;;  %794 = vmatprep.mubr.bf16.mxu1 %v2348_v6 }
  0xa9   :  { %667 = vmatmul.mubr.bf16.gmra.mrb[52].mxu0 %v2320_v7  ;;  %795 = vmatmul.mubr.bf16.gmra.mrb[52].mxu1 %v2350_v8 }
  0xaa   :  { %674 = vmatprep.mubr.bf16.mxu0 %v2324_v9  ;;  %802 = vmatprep.mubr.bf16.mxu1 %v2351_v10 }
  0xb1   :  { %675 = vmatmul.mubr.bf16.gmra.mrb[56].mxu0 %v2326_v11  ;;  %803 = vmatmul.mubr.bf16.gmra.mrb[56].mxu1 %v2353_v12 }
  0xb2   :  { %682 = vmatprep.mubr.bf16.mxu0 %v2330_v13  ;;  %810 = vmatprep.mubr.bf16.mxu1 %v2354_v14 }
  0xb9   :  { %683 = vmatmul.mubr.bf16.gmra.mrb[60].mxu0 %v2332_v15  ;;  %811 = vmatmul.mubr.bf16.gmra.mrb[60].mxu1 %v2356_v16 }
 0x114   :  { %v2657_v17 = vpop.f32.mrb[0].mxu0  ;;  %v2659_v18 = vpop.f32.mrb[0].mxu1 }
 0x115   :  { %v566_v19 = vpop.f32.mrb[1].mxu0  ;;  %v694_v20 = vpop.f32.mrb[1].mxu1 }
 0x116   :  { %v2661_v21 = vpop.f32.mrb[2].mxu0  ;;  %v2663_v22 = vpop.f32.mrb[2].mxu1 }
 0x117   :  { %v821_v23 = vadd.f32 %v2661_v21, %v2657_v17  ;;  %v569_v24 = vpop.f32.mrb[3].mxu0  ;;  %v697_v25 = vpop.f32.mrb[3].mxu1 }
 0x11c   :  { %v2667_v26 = vpop.f32.mrb[4].mxu0  ;;  %v2669_v27 = vpop.f32.mrb[4].mxu1 }
 0x11d   :  { %v822_v28 = vadd.f32 %v821_v23, %v2667_v26  ;;  %v574_v29 = vpop.f32.mrb[5].mxu0  ;;  %v702_v30 = vpop.f32.mrb[5].mxu1 }
 0x11e   :  { %v2672_v31 = vpop.f32.mrb[6].mxu0  ;;  %v2674_v32 = vpop.f32.mrb[6].mxu1 }
 0x11f   :  { %v823_v33 = vadd.f32 %v822_v28, %v2672_v31  ;;  %v577_v34 = vpop.f32.mrb[7].mxu0  ;;  %v705_v35 = vpop.f32.mrb[7].mxu1 }
 0x124   :  { %v2677_v36 = vpop.f32.mrb[8].mxu0  ;;  %v2679_v37 = vpop.f32.mrb[8].mxu1 }
 0x125   :  { %v824_v38 = vadd.f32 %v823_v33, %v2677_v36  ;;  %v582_v39 = vpop.f32.mrb[9].mxu0  ;;  %v710_v40 = vpop.f32.mrb[9].mxu1 }
 0x126   :  { %v2682_v41 = vpop.f32.mrb[10].mxu0  ;;  %v2684_v42 = vpop.f32.mrb[10].mxu1 }
 0x127   :  { %v825_v43 = vadd.f32 %v824_v38, %v2682_v41  ;;  %v585_v44 = vpop.f32.mrb[11].mxu0  ;;  %v713_v45 = vpop.f32.mrb[11].mxu1 }
 0x12c   :  { %v2687_v46 = vpop.f32.mrb[12].mxu0  ;;  %v2689_v47 = vpop.f32.mrb[12].mxu1 }
 0x12d   :  { %v826_v48 = vadd.f32 %v825_v43, %v2687_v46  ;;  %v590_v49 = vpop.f32.mrb[13].mxu0  ;;  %v718_v50 = vpop.f32.mrb[13].mxu1 }
 0x12e   :  { %v2692_v51 = vpop.f32.mrb[14].mxu0  ;;  %v2694_v52 = vpop.f32.mrb[14].mxu1 }
 0x12f   :  { %v827_v53 = vadd.f32 %v826_v48, %v2692_v51  ;;  %v593_v54 = vpop.f32.mrb[15].mxu0  ;;  %v721_v55 = vpop.f32.mrb[15].mxu1 }
 0x134   :  { %v2697_v56 = vpop.f32.mrb[16].mxu0  ;;  %v2699_v57 = vpop.f32.mrb[16].mxu1 }
 0x135   :  { %v828_v58 = vadd.f32 %v827_v53, %v2697_v56  ;;  %v598_v59 = vpop.f32.mrb[17].mxu0  ;;  %v726_v60 = vpop.f32.mrb[17].mxu1 }
 0x136   :  { %v2702_v61 = vpop.f32.mrb[18].mxu0  ;;  %v2704_v62 = vpop.f32.mrb[18].mxu1 }
 0x137   :  { %v829_v63 = vadd.f32 %v828_v58, %v2702_v61  ;;  %v601_v0 = vpop.f32.mrb[19].mxu0  ;;  %v729_v1 = vpop.f32.mrb[19].mxu1 }
 0x13c   :  { %v2707_v2 = vpop.f32.mrb[20].mxu0  ;;  %v2709_v3 = vpop.f32.mrb[20].mxu1 }
 0x13d   :  { %v830_v4 = vadd.f32 %v829_v63, %v2707_v2  ;;  %v606_v5 = vpop.f32.mrb[21].mxu0  ;;  %v734_v6 = vpop.f32.mrb[21].mxu1 }
 0x13e   :  { %v2712_v7 = vpop.f32.mrb[22].mxu0  ;;  %v2714_v8 = vpop.f32.mrb[22].mxu1 }
 0x13f   :  { %v831_v9 = vadd.f32 %v830_v4, %v2712_v7  ;;  %v609_v10 = vpop.f32.mrb[23].mxu0  ;;  %v737_v11 = vpop.f32.mrb[23].mxu1 }
 0x144   :  { %v2717_v12 = vpop.f32.mrb[24].mxu0  ;;  %v2719_v13 = vpop.f32.mrb[24].mxu1 }
 0x145   :  { %v832_v14 = vadd.f32 %v831_v9, %v2717_v12  ;;  %v614_v15 = vpop.f32.mrb[25].mxu0  ;;  %v742_v16 = vpop.f32.mrb[25].mxu1 }
 0x146   :  { %v2722_v19 = vpop.f32.mrb[26].mxu0  ;;  %v2724_v20 = vpop.f32.mrb[26].mxu1 }
 0x147   :  { %v833_v23 = vadd.f32 %v832_v14, %v2722_v19  ;;  %v617_v24 = vpop.f32.mrb[27].mxu0  ;;  %v745_v25 = vpop.f32.mrb[27].mxu1 }
 0x14c   :  { %v2727_v28 = vpop.f32.mrb[28].mxu0  ;;  %v2729_v29 = vpop.f32.mrb[28].mxu1 }
 0x14d   :  { %v834_v30 = vadd.f32 %v833_v23, %v2727_v28  ;;  %v622_v33 = vpop.f32.mrb[29].mxu0  ;;  %v750_v34 = vpop.f32.mrb[29].mxu1 }
 0x14e   :  { %v2732_v35 = vpop.f32.mrb[30].mxu0  ;;  %v2734_v38 = vpop.f32.mrb[30].mxu1 }
 0x14f   :  { %v835_v39 = vadd.f32 %v834_v30, %v2732_v35  ;;  %v625_v40 = vpop.f32.mrb[31].mxu0  ;;  %v753_v43 = vpop.f32.mrb[31].mxu1 }
 0x154   :  { %v2737_v44 = vpop.f32.mrb[32].mxu0  ;;  %v2739_v45 = vpop.f32.mrb[32].mxu1 }
 0x155   :  { %v836_v48 = vadd.f32 %v835_v39, %v2737_v44  ;;  %v630_v49 = vpop.f32.mrb[33].mxu0  ;;  %v758_v50 = vpop.f32.mrb[33].mxu1 }
 0x156   :  { %v2742_v53 = vpop.f32.mrb[34].mxu0  ;;  %v2744_v54 = vpop.f32.mrb[34].mxu1 }
 0x157   :  { %v837_v55 = vadd.f32 %v836_v48, %v2742_v53  ;;  %v633_v58 = vpop.f32.mrb[35].mxu0  ;;  %v761_v59 = vpop.f32.mrb[35].mxu1 }
 0x15c   :  { %v2747_v60 = vpop.f32.mrb[36].mxu0  ;;  %v2749_v63 = vpop.f32.mrb[36].mxu1 }
 0x15d   :  { %v838_v0 = vadd.f32 %v837_v55, %v2747_v60  ;;  %v638_v1 = vpop.f32.mrb[37].mxu0  ;;  %v766_v4 = vpop.f32.mrb[37].mxu1 }
 0x15e   :  { %v2752_v5 = vpop.f32.mrb[38].mxu0  ;;  %v2754_v6 = vpop.f32.mrb[38].mxu1 }
 0x15f   :  { %4681 = vst [vmem:[#allocation2_spill] sm:$0xff] %v2752_v5  ;;  %v839_v9 = vadd.f32 %v838_v0, %v2752_v5  ;;  %v641_v10 = vpop.f32.mrb[39].mxu0  ;;  %v769_v11 = vpop.f32.mrb[39].mxu1 }
 0x164   :  { %v2757_v14 = vpop.f32.mrb[40].mxu0  ;;  %v2759_v15 = vpop.f32.mrb[40].mxu1 }
 0x165   :  { %4682 = vst [vmem:[#allocation3_spill] sm:$0xff] %v2757_v14  ;;  %v840_v16 = vadd.f32 %v839_v9, %v2757_v14  ;;  %v646_v23 = vpop.f32.mrb[41].mxu0  ;;  %v774_v24 = vpop.f32.mrb[41].mxu1 }
 0x166   :  { %v2762_v25 = vpop.f32.mrb[42].mxu0  ;;  %v2764_v30 = vpop.f32.mrb[42].mxu1 }
 0x167   :  { %4683 = vst [vmem:[#allocation4_spill] sm:$0xff] %v2762_v25  ;;  %v841_v33 = vadd.f32 %v840_v16, %v2762_v25  ;;  %v649_v34 = vpop.f32.mrb[43].mxu0  ;;  %v777_v39 = vpop.f32.mrb[43].mxu1 }
 0x16c   :  { %v2767_v40 = vpop.f32.mrb[44].mxu0  ;;  %v2769_v43 = vpop.f32.mrb[44].mxu1 }
 0x16d   :  { %4684 = vst [vmem:[#allocation5_spill] sm:$0xff] %v2767_v40  ;;  %4685 = vst [vmem:[#allocation6_spill] sm:$0xff] %v2769_v43  ;;  %v842_v48 = vadd.f32 %v841_v33, %v2767_v40  ;;  %v654_v49 = vpop.f32.mrb[45].mxu0  ;;  %v782_v50 = vpop.f32.mrb[45].mxu1 }
 0x16e   :  { %v2772_v55 = vpop.f32.mrb[46].mxu0  ;;  %v2774_v58 = vpop.f32.mrb[46].mxu1 }
 0x16f   :  { %4686 = vst [vmem:[#allocation7_spill] sm:$0xff] %v2772_v55  ;;  %4687 = vst [vmem:[#allocation8_spill] sm:$0xff] %v2774_v58  ;;  %v843_v59 = vadd.f32 %v842_v48, %v2772_v55  ;;  %v657_v0 = vpop.f32.mrb[47].mxu0  ;;  %v785_v1 = vpop.f32.mrb[47].mxu1 }
 0x174   :  { %v2777_v4 = vpop.f32.mrb[48].mxu0  ;;  %v2779_v9 = vpop.f32.mrb[48].mxu1 }
 0x175   :  { %4688 = vst [vmem:[#allocation9_spill] sm:$0xff] %v2777_v4  ;;  %4689 = vst [vmem:[#allocation10_spill] sm:$0xff] %v2779_v9  ;;  %v844_v10 = vadd.f32 %v843_v59, %v2777_v4  ;;  %v662_v11 = vpop.f32.mrb[49].mxu0  ;;  %v790_v16 = vpop.f32.mrb[49].mxu1 }
 0x176   :  { %v2782_v23 = vpop.f32.mrb[50].mxu0  ;;  %v2784_v24 = vpop.f32.mrb[50].mxu1 }
 0x177   :  { %4690 = vst [vmem:[#allocation11_spill] sm:$0xff] %v2782_v23  ;;  %v845_v33 = vadd.f32 %v844_v10, %v2782_v23  ;;  %v665_v34 = vpop.f32.mrb[51].mxu0  ;;  %v793_v39 = vpop.f32.mrb[51].mxu1 }
 0x17c   :  { %v2787_v49 = vpop.f32.mrb[52].mxu0  ;;  %v2789_v48 = vpop.f32.mrb[52].mxu1 }
 0x17d   :  { %4691 = vst [vmem:[#allocation12_spill] sm:$0xff] %v2787_v49  ;;  %v846_v50 = vadd.f32 %v845_v33, %v2787_v49  ;;  %v670_v0 = vpop.f32.mrb[53].mxu0  ;;  %v798_v1 = vpop.f32.mrb[53].mxu1 }
 0x17e   :  { %v2792_v55 = vpop.f32.mrb[54].mxu0  ;;  %v2794_v59 = vpop.f32.mrb[54].mxu1 }
 0x17f   :  { %4692 = vst [vmem:[#allocation13_spill] sm:$0xff] %v2792_v55  ;;  %v847_v11 = vadd.f32 %v846_v50, %v2792_v55  ;;  %v673_v16 = vpop.f32.mrb[55].mxu0  ;;  %v801_v4 = vpop.f32.mrb[55].mxu1 }
 0x184   :  { %v2797_v40 = vpop.f32.mrb[56].mxu0  ;;  %v2799_v10 = vpop.f32.mrb[56].mxu1 }
 0x185   :  { %4693 = vst [vmem:[#allocation14_spill] sm:$0xff] %v2797_v40  ;;  %v848_v34 = vadd.f32 %v847_v11, %v2797_v40  ;;  %v678_v39 = vpop.f32.mrb[57].mxu0  ;;  %v806_v23 = vpop.f32.mrb[57].mxu1 }
 0x186   :  { %v2802_v25 = vpop.f32.mrb[58].mxu0  ;;  %v2804_v33 = vpop.f32.mrb[58].mxu1 }
 0x187   :  { %4694 = vst [vmem:[#allocation15_spill] sm:$0xff] %v2802_v25  ;;  %v849_v0 = vadd.f32 %v848_v34, %v2802_v25  ;;  %v681_v1 = vpop.f32.mrb[59].mxu0  ;;  %v809_v49 = vpop.f32.mrb[59].mxu1 }
 0x18c   :  { %v2807_v14 = vpop.f32.mrb[60].mxu0  ;;  %v2809_v50 = vpop.f32.mrb[60].mxu1 }
 0x18d   :  { %4695 = vst [vmem:[#allocation16_spill] sm:$0xff] %v2807_v14  ;;  %v850_v4 = vadd.f32 %v849_v0, %v2807_v14  ;;  %v686_v16 = vpop.f32.mrb[61].mxu0  ;;  %v814_v55 = vpop.f32.mrb[61].mxu1 }
 0x18e   :  { %v2812_v5 = vpop.f32.mrb[62].mxu0  ;;  %v2814_v11 = vpop.f32.mrb[62].mxu1 }
 0x18f   :  { %v851_v23 = vadd.f32 %v850_v4, %v2812_v5  ;;  %v689_v39 = vpop.f32.mrb[63].mxu0  ;;  %v817_v40 = vpop.f32.mrb[63].mxu1 }
 0x191   :  { %v852_v34 = vadd.f32 %v851_v23, %v2659_v18 }
 0x193   :  { %v853_v49 = vadd.f32 %v852_v34, %v2663_v22 }
 0x195   :  { %v854_v1 = vadd.f32 %v853_v49, %v2669_v27 }
 0x197   :  { %v855_v25 = vadd.f32 %v854_v1, %v2674_v32 }
 0x199   :  { %v856_v0 = vadd.f32 %v855_v25, %v2679_v37 }
 0x19b   :  { %v857_v55 = vadd.f32 %v856_v0, %v2684_v42 }
 0x19d   :  { %v858_v16 = vadd.f32 %v857_v55, %v2689_v47 }
 0x19f   :  { %v859_v14 = vadd.f32 %v858_v16, %v2694_v52 }
 0x1a1   :  { %v860_v4 = vadd.f32 %v859_v14, %v2699_v57 }
 0x1a3   :  { %v861_v40 = vadd.f32 %v860_v4, %v2704_v62 }
 0x1a5   :  { %v862_v23 = vadd.f32 %v861_v40, %v2709_v3 }
 0x1a7   :  { %v863_v39 = vadd.f32 %v862_v23, %v2714_v8 }
 0x1a9   :  { %v864_v34 = vadd.f32 %v863_v39, %v2719_v13 }
 0x1ab   :  { %v865_v49 = vadd.f32 %v864_v34, %v2724_v20 }
 0x1ad   :  { %v866_v25 = vadd.f32 %v865_v49, %v2729_v29 }
 0x1af   :  { %v867_v1 = vadd.f32 %v866_v25, %v2734_v38 }
 0x1b1   :  { %v868_v0 = vadd.f32 %v867_v1, %v2739_v45 }
 0x1b3   :  { %v869_v55 = vadd.f32 %v868_v0, %v2744_v54 }
 0x1b5   :  { %v870_v14 = vadd.f32 %v869_v55, %v2749_v63 }
 0x1b7   :  { %v871_v16 = vadd.f32 %v870_v14, %v2754_v6 }
 0x1b9   :  { %v872_v4 = vadd.f32 %v871_v16, %v2759_v15 }
 0x1bb   :  { %v873_v40 = vadd.f32 %v872_v4, %v2764_v30 }
 0x1bd   :  { %v874_v23 = vadd.f32 %v873_v40, %v2769_v43 }
 0x1bf   :  { %v875_v39 = vadd.f32 %v874_v23, %v2774_v58 }
 0x1c1   :  { %v876_v34 = vadd.f32 %v875_v39, %v2779_v9 }
 0x1c3   :  { %v877_v49 = vadd.f32 %v876_v34, %v2784_v24 }
 0x1c5   :  { %v878_v25 = vadd.f32 %v877_v49, %v2789_v48 }
 0x1c7   :  { %v879_v1 = vadd.f32 %v878_v25, %v2794_v59 }
 0x1c9   :  { %v880_v0 = vadd.f32 %v879_v1, %v2799_v10 }
 0x1cb   :  { %v881_v55 = vadd.f32 %v880_v0, %v2804_v33  ;;  %v4703_v0 = vld [vmem:[#allocation3_spill] sm:$0xff] }
 0x1cd   :  { %v882_v14 = vadd.f32 %v881_v55, %v2809_v50  ;;  %v4704_v55 = vld [vmem:[#allocation4_spill] sm:$0xff] }
 0x1cf   :  { %v883_v16 = vadd.f32 %v882_v14, %v2814_v11  ;;  %v4705_v14 = vld [vmem:[#allocation5_spill] sm:$0xff] }
 0x1d1   :  { %v884_v4 = vrot.slane %v883_v16, 4 }
 0x1d3   :  { %v885_v40 = vadd.f32 %v884_v4, %v883_v16  ;;  %v4707_v16 = vld [vmem:[#allocation7_spill] sm:$0xff]  ;;  %v4709_v4 = vld [vmem:[#allocation9_spill] sm:$0xff] }
 0x1d5   :  { %v886_v43 = vrot.slane %v885_v40, 2 }
 0x1d7   :  { %v887_v23 = vadd.f32 %v886_v43, %v885_v40 }
 0x1d9   :  { %v888_v58 = vrot.slane %v887_v23, 1 }
 0x1db   :  { %v889_v39 = vadd.f32 %v888_v58, %v887_v23  ;;  %v4701_v58 = vld [vmem:[#allocation2_spill] sm:$0xff]  ;;  %v4711_v23 = vld [vmem:[#allocation11_spill] sm:$0xff] }
 0x1dd   :  { %v2849_v9 = vmul.f32 0.001953125, %v889_v39 }
 0x1df   :  { %v2853_v34 = vsub.f32 %v2657_v17, %v2849_v9  ;;  %v2857_v49 = vsub.f32 %v2661_v21, %v2849_v9  ;;  %v2861_v25 = vsub.f32 %v2667_v26, %v2849_v9  ;;  %v2865_v1 = vsub.f32 %v2672_v31, %v2849_v9 }
 0x1e0   :  { %v2869_v43 = vsub.f32 %v2677_v36, %v2849_v9  ;;  %v2873_v17 = vsub.f32 %v2682_v41, %v2849_v9  ;;  %v2877_v21 = vsub.f32 %v2687_v46, %v2849_v9  ;;  %v2881_v26 = vsub.f32 %v2692_v51, %v2849_v9 }
 0x1e1   :  { %4696 = vst [vmem:[#allocation17_spill] sm:$0xff] %v2853_v34  ;;  %4697 = vst [vmem:[#allocation18_spill] sm:$0xff] %v2857_v49  ;;  %v2885_v31 = vsub.f32 %v2697_v56, %v2849_v9  ;;  %v2889_v36 = vsub.f32 %v2702_v61, %v2849_v9  ;;  %v2893_v41 = vsub.f32 %v2707_v2, %v2849_v9 }
 0x1e2   :  { %4698 = vst [vmem:[#allocation19_spill] sm:$0xff] %v2861_v25  ;;  %v2897_v46 = vsub.f32 %v2712_v7, %v2849_v9  ;;  %v2901_v51 = vsub.f32 %v2717_v12, %v2849_v9  ;;  %v2905_v56 = vsub.f32 %v2722_v19, %v2849_v9  ;;  %v2909_v61 = vsub.f32 %v2727_v28, %v2849_v9 }
 0x1e3   :  { %v2913_v2 = vsub.f32 %v2732_v35, %v2849_v9  ;;  %v2917_v7 = vsub.f32 %v2737_v44, %v2849_v9  ;;  %v2921_v12 = vsub.f32 %v2742_v53, %v2849_v9  ;;  %v2925_v19 = vsub.f32 %v2747_v60, %v2849_v9 }
 0x1e4   :  { %v2929_v28 = vsub.f32 %v4701_v58, %v2849_v9  ;;  %v2933_v35 = vsub.f32 %v4703_v0, %v2849_v9  ;;  %v2937_v44 = vsub.f32 %v4704_v55, %v2849_v9  ;;  %v2941_v53 = vsub.f32 %v4705_v14, %v2849_v9  ;;  %v4712_v58 = vld [vmem:[#allocation12_spill] sm:$0xff]  ;;  %v4713_v55 = vld [vmem:[#allocation13_spill] sm:$0xff] }
 0x1e5   :  { %4699 = vst [vmem:[#allocation20_spill] sm:$0xff] %v2921_v12  ;;  %4700 = vst [vmem:[#allocation21_spill] sm:$0xff] %v2925_v19  ;;  %v2945_v60 = vsub.f32 %v4707_v16, %v2849_v9  ;;  %v2949_v40 = vsub.f32 %v4709_v4, %v2849_v9  ;;  %v2953_v39 = vsub.f32 %v4711_v23, %v2849_v9 }
 0x1e6   :  { %4702 = vst [vmem:[#allocation2_spill] sm:$0xff] %v2929_v28  ;;  %4706 = vst [vmem:[#allocation3_spill] sm:$0xff] %v2941_v53  ;;  %v2957_v0 = vsub.f32 %v4712_v58, %v2849_v9  ;;  %v2961_v14 = vsub.f32 %v4713_v55, %v2849_v9  ;;  %v4714_v53 = vld [vmem:[#allocation14_spill] sm:$0xff]  ;;  %v2977_v58 = vsub.f32 %v2812_v5, %v2849_v9 }
 0x1e7   :  { %4708 = vst [vmem:[#allocation4_spill] sm:$0xff] %v2945_v60  ;;  %4710 = vst [vmem:[#allocation5_spill] sm:$0xff] %v2949_v40  ;;  %v2965_v16 = vsub.f32 %v4714_v53, %v2849_v9  ;;  %v4715_v60 = vld [vmem:[#allocation15_spill] sm:$0xff]  ;;  %v4716_v40 = vld [vmem:[#allocation16_spill] sm:$0xff]  ;;  %v2981_v55 = vsub.f32 %v2659_v18, %v2849_v9  ;;  %v2985_v53 = vsub.f32 %v2663_v22, %v2849_v9 }
 0x1e8   :  { %v2969_v4 = vsub.f32 %v4715_v60, %v2849_v9  ;;  %v2973_v23 = vsub.f32 %v4716_v40, %v2849_v9  ;;  %v2989_v60 = vsub.f32 %v2669_v27, %v2849_v9  ;;  %v2993_v40 = vsub.f32 %v2674_v32, %v2849_v9 }
 0x1e9   :  { %v2997_v5 = vsub.f32 %v2679_v37, %v2849_v9  ;;  %v3001_v18 = vsub.f32 %v2684_v42, %v2849_v9  ;;  %v3005_v22 = vsub.f32 %v2689_v47, %v2849_v9  ;;  %v3009_v27 = vsub.f32 %v2694_v52, %v2849_v9 }
 0x1ea   :  { %v3013_v32 = vsub.f32 %v2699_v57, %v2849_v9  ;;  %v3017_v37 = vsub.f32 %v2704_v62, %v2849_v9  ;;  %v3021_v42 = vsub.f32 %v2709_v3, %v2849_v9  ;;  %v3025_v47 = vsub.f32 %v2714_v8, %v2849_v9 }
 0x1eb   :  { %4717 = vst [vmem:[#allocation7_spill] sm:$0xff] %v3005_v22  ;;  %4718 = vst [vmem:[#allocation9_spill] sm:$0xff] %v3009_v27  ;;  %v3029_v52 = vsub.f32 %v2719_v13, %v2849_v9  ;;  %v3033_v57 = vsub.f32 %v2724_v20, %v2849_v9  ;;  %v3037_v62 = vsub.f32 %v2729_v29, %v2849_v9 }
 0x1ec   :  { %4719 = vst [vmem:[#allocation11_spill] sm:$0xff] %v3013_v32  ;;  %4720 = vst [vmem:[#allocation12_spill] sm:$0xff] %v3017_v37  ;;  %v3041_v3 = vsub.f32 %v2734_v38, %v2849_v9  ;;  %v3045_v8 = vsub.f32 %v2739_v45, %v2849_v9  ;;  %v3049_v13 = vsub.f32 %v2744_v54, %v2849_v9 }
 0x1ed   :  { %4721 = vst [vmem:[#allocation13_spill] sm:$0xff] %v3021_v42  ;;  %4722 = vst [vmem:[#allocation14_spill] sm:$0xff] %v3025_v47  ;;  %v3053_v20 = vsub.f32 %v2749_v63, %v2849_v9  ;;  %v3057_v29 = vsub.f32 %v2754_v6, %v2849_v9  ;;  %v3061_v38 = vsub.f32 %v2759_v15, %v2849_v9 }
 0x1ee   :  { %4723 = vst [vmem:[#allocation15_spill] sm:$0xff] %v3029_v52  ;;  %4724 = vst [vmem:[#allocation16_spill] sm:$0xff] %v3033_v57  ;;  %v3065_v45 = vsub.f32 %v2764_v30, %v2849_v9  ;;  %v3081_v15 = vsub.f32 %v2784_v24, %v2849_v9  ;;  %v3085_v30 = vsub.f32 %v2789_v48, %v2849_v9 }
 0x1ef   :  { %4725 = vst [vmem:[#allocation22_spill] sm:$0xff] %v3037_v62  ;;  %4726 = vst [vmem:[#allocation23_spill] sm:$0xff] %v3041_v3  ;;  %v3101_v24 = vsub.f32 %v2809_v50, %v2849_v9  ;;  %v3105_v48 = vsub.f32 %v2814_v11, %v2849_v9  ;;  %v959_v50 = vmul.f32 %v2869_v43, %v2869_v43 }
 0x1f0   :  { %4727 = vst [vmem:[#allocation24_spill] sm:$0xff] %v3045_v8  ;;  %4728 = vst [vmem:[#allocation25_spill] sm:$0xff] %v3049_v13  ;;  %v4730_v8 = vld [vmem:[#allocation6_spill] sm:$0xff]  ;;  %v4731_v13 = vld [vmem:[#allocation8_spill] sm:$0xff] }
 0x1f1   :  { %4729 = vst [vmem:[#allocation26_spill] sm:$0xff] %v3053_v20  ;;  %v3069_v54 = vsub.f32 %v4730_v8, %v2849_v9  ;;  %v3073_v63 = vsub.f32 %v4731_v13, %v2849_v9  ;;  %v4732_v20 = vld [vmem:[#allocation10_spill] sm:$0xff]  ;;  %v3089_v8 = vsub.f32 %v2794_v59, %v2849_v9  ;;  %v3093_v13 = vsub.f32 %v2799_v10, %v2849_v9 }
 0x1f2   :  { %v3077_v6 = vsub.f32 %v4732_v20, %v2849_v9  ;;  %v3097_v20 = vsub.f32 %v2804_v33, %v2849_v9  ;;  %4736 = vst [vmem:[#allocation27_spill] sm:$0xff] %v3101_v24  ;;  %v955_v59 = vmul.f32 %v2853_v34, %v2853_v34  ;;  %v957_v10 = vmul.f32 %v2861_v25, %v2861_v25 }
 0x1f3   :  { %4733 = vst [vmem:[#allocation6_spill] sm:$0xff] %v3089_v8  ;;  %4734 = vst [vmem:[#allocation8_spill] sm:$0xff] %v3093_v13  ;;  %v956_v8 = vmul.f32 %v2857_v49, %v2857_v49  ;;  %v958_v33 = vmul.f32 %v2865_v1, %v2865_v1  ;;  %v960_v9 = vmul.f32 %v2873_v17, %v2873_v17 }
 0x1f4   :  { %4735 = vst [vmem:[#allocation10_spill] sm:$0xff] %v3097_v20  ;;  %v961_v34 = vmul.f32 %v2877_v21, %v2877_v21  ;;  %v962_v25 = vmul.f32 %v2881_v26, %v2881_v26 }
 0x1f5   :  { %v1019_v13 = vadd.f32 %v956_v8, %v955_v59  ;;  %v963_v59 = vmul.f32 %v2885_v31, %v2885_v31 }
 0x1f7   :  { %v1020_v20 = vadd.f32 %v1019_v13, %v957_v10  ;;  %v964_v10 = vmul.f32 %v2889_v36, %v2889_v36 }
 0x1f9   :  { %v1021_v24 = vadd.f32 %v1020_v20, %v958_v33  ;;  %v965_v33 = vmul.f32 %v2893_v41, %v2893_v41 }
 0x1fb   :  { %v1022_v11 = vadd.f32 %v1021_v24, %v959_v50  ;;  %v966_v50 = vmul.f32 %v2897_v46, %v2897_v46 }
 0x1fd   :  { %v1023_v49 = vadd.f32 %v1022_v11, %v960_v9  ;;  %v967_v11 = vmul.f32 %v2901_v51, %v2901_v51 }
 0x1ff   :  { %v1024_v8 = vadd.f32 %v1023_v49, %v961_v34  ;;  %v968_v49 = vmul.f32 %v2905_v56, %v2905_v56 }
 0x201   :  { %v1025_v13 = vadd.f32 %v1024_v8, %v962_v25  ;;  %v969_v8 = vmul.f32 %v2909_v61, %v2909_v61 }
 0x203   :  { %v1026_v20 = vadd.f32 %v1025_v13, %v963_v59  ;;  %v970_v13 = vmul.f32 %v2913_v2, %v2913_v2 }
 0x205   :  { %v1027_v24 = vadd.f32 %v1026_v20, %v964_v10  ;;  %v971_v20 = vmul.f32 %v2917_v7, %v2917_v7 }
 0x207   :  { %v1028_v9 = vadd.f32 %v1027_v24, %v965_v33  ;;  %v972_v24 = vmul.f32 %v2921_v12, %v2921_v12 }
 0x209   :  { %v1029_v34 = vadd.f32 %v1028_v9, %v966_v50  ;;  %v973_v9 = vmul.f32 %v2925_v19, %v2925_v19 }
 0x20b   :  { %v1030_v25 = vadd.f32 %v1029_v34, %v967_v11  ;;  %v974_v34 = vmul.f32 %v2929_v28, %v2929_v28 }
 0x20d   :  { %v1031_v59 = vadd.f32 %v1030_v25, %v968_v49  ;;  %v975_v25 = vmul.f32 %v2933_v35, %v2933_v35 }
 0x20f   :  { %v1032_v10 = vadd.f32 %v1031_v59, %v969_v8  ;;  %v976_v59 = vmul.f32 %v2937_v44, %v2937_v44 }
 0x211   :  { %v1033_v33 = vadd.f32 %v1032_v10, %v970_v13  ;;  %v4737_v10 = vld [vmem:[#allocation3_spill] sm:$0xff] }
 0x212   :  { %v977_v12 = vmul.f32 %v4737_v10, %v4737_v10 }
 0x213   :  { %v1034_v50 = vadd.f32 %v1033_v33, %v971_v20  ;;  %v4738_v33 = vld [vmem:[#allocation4_spill] sm:$0xff] }
 0x214   :  { %v978_v19 = vmul.f32 %v4738_v33, %v4738_v33 }
 0x215   :  { %v1035_v11 = vadd.f32 %v1034_v50, %v972_v24  ;;  %v4739_v50 = vld [vmem:[#allocation5_spill] sm:$0xff] }
 0x216   :  { %v979_v28 = vmul.f32 %v4739_v50, %v4739_v50 }
 0x217   :  { %v1036_v49 = vadd.f32 %v1035_v11, %v973_v9  ;;  %v980_v11 = vmul.f32 %v2953_v39, %v2953_v39 }
 0x219   :  { %v1037_v8 = vadd.f32 %v1036_v49, %v974_v34  ;;  %v981_v49 = vmul.f32 %v2957_v0, %v2957_v0 }
 0x21b   :  { %v1038_v13 = vadd.f32 %v1037_v8, %v975_v25  ;;  %v982_v8 = vmul.f32 %v2961_v14, %v2961_v14 }
 0x21d   :  { %v1039_v20 = vadd.f32 %v1038_v13, %v976_v59  ;;  %v983_v13 = vmul.f32 %v2965_v16, %v2965_v16 }
 0x21f   :  { %v1040_v24 = vadd.f32 %v1039_v20, %v977_v12  ;;  %v984_v20 = vmul.f32 %v2969_v4, %v2969_v4 }
 0x221   :  { %v1041_v9 = vadd.f32 %v1040_v24, %v978_v19  ;;  %v985_v24 = vmul.f32 %v2973_v23, %v2973_v23 }
 0x223   :  { %v1042_v34 = vadd.f32 %v1041_v9, %v979_v28  ;;  %v986_v9 = vmul.f32 %v2977_v58, %v2977_v58 }
 0x225   :  { %v1043_v25 = vadd.f32 %v1042_v34, %v980_v11  ;;  %v987_v34 = vmul.f32 %v2981_v55, %v2981_v55 }
 0x227   :  { %v1044_v59 = vadd.f32 %v1043_v25, %v981_v49  ;;  %v988_v25 = vmul.f32 %v2985_v53, %v2985_v53 }
 0x229   :  { %v1045_v12 = vadd.f32 %v1044_v59, %v982_v8  ;;  %v989_v59 = vmul.f32 %v2989_v60, %v2989_v60 }
 0x22b   :  { %v1046_v19 = vadd.f32 %v1045_v12, %v983_v13  ;;  %v990_v12 = vmul.f32 %v2993_v40, %v2993_v40 }
 0x22d   :  { %v1047_v28 = vadd.f32 %v1046_v19, %v984_v20  ;;  %v991_v19 = vmul.f32 %v2997_v5, %v2997_v5 }
 0x22f   :  { %v1048_v11 = vadd.f32 %v1047_v28, %v985_v24  ;;  %v992_v28 = vmul.f32 %v3001_v18, %v3001_v18 }
 0x231   :  { %v1049_v49 = vadd.f32 %v1048_v11, %v986_v9  ;;  %v993_v11 = vmul.f32 %v3005_v22, %v3005_v22 }
 0x233   :  { %v1050_v8 = vadd.f32 %v1049_v49, %v987_v34  ;;  %v994_v49 = vmul.f32 %v3009_v27, %v3009_v27 }
 0x235   :  { %v1051_v13 = vadd.f32 %v1050_v8, %v988_v25  ;;  %v995_v8 = vmul.f32 %v3013_v32, %v3013_v32 }
 0x237   :  { %v1052_v20 = vadd.f32 %v1051_v13, %v989_v59  ;;  %v996_v13 = vmul.f32 %v3017_v37, %v3017_v37 }
 0x239   :  { %v1053_v24 = vadd.f32 %v1052_v20, %v990_v12  ;;  %v997_v20 = vmul.f32 %v3021_v42, %v3021_v42 }
 0x23b   :  { %v1054_v9 = vadd.f32 %v1053_v24, %v991_v19  ;;  %v998_v24 = vmul.f32 %v3025_v47, %v3025_v47 }
 0x23d   :  { %v1055_v34 = vadd.f32 %v1054_v9, %v992_v28  ;;  %v999_v9 = vmul.f32 %v3029_v52, %v3029_v52 }
 0x23f   :  { %v1056_v25 = vadd.f32 %v1055_v34, %v993_v11  ;;  %v1000_v34 = vmul.f32 %v3033_v57, %v3033_v57 }
 0x241   :  { %v1057_v59 = vadd.f32 %v1056_v25, %v994_v49  ;;  %v1001_v25 = vmul.f32 %v3037_v62, %v3037_v62 }
 0x243   :  { %v1058_v12 = vadd.f32 %v1057_v59, %v995_v8  ;;  %v1002_v59 = vmul.f32 %v3041_v3, %v3041_v3 }
 0x245   :  { %v1059_v19 = vadd.f32 %v1058_v12, %v996_v13  ;;  %v4740_v12 = vld [vmem:[#allocation24_spill] sm:$0xff] }
 0x246   :  { %v1003_v47 = vmul.f32 %v4740_v12, %v4740_v12 }
 0x247   :  { %v1060_v28 = vadd.f32 %v1059_v19, %v997_v20  ;;  %v4741_v19 = vld [vmem:[#allocation25_spill] sm:$0xff] }
 0x248   :  { %v1004_v52 = vmul.f32 %v4741_v19, %v4741_v19 }
 0x249   :  { %v1061_v11 = vadd.f32 %v1060_v28, %v998_v24  ;;  %v4742_v28 = vld [vmem:[#allocation26_spill] sm:$0xff] }
 0x24a   :  { %v1005_v57 = vmul.f32 %v4742_v28, %v4742_v28 }
 0x24b   :  { %v1062_v49 = vadd.f32 %v1061_v11, %v999_v9  ;;  %v1006_v11 = vmul.f32 %v3057_v29, %v3057_v29 }
 0x24d   :  { %v1063_v8 = vadd.f32 %v1062_v49, %v1000_v34  ;;  %v1007_v49 = vmul.f32 %v3061_v38, %v3061_v38 }
 0x24f   :  { %v1064_v13 = vadd.f32 %v1063_v8, %v1001_v25  ;;  %v1008_v8 = vmul.f32 %v3065_v45, %v3065_v45 }
 0x251   :  { %v1065_v20 = vadd.f32 %v1064_v13, %v1002_v59  ;;  %v1009_v13 = vmul.f32 %v3069_v54, %v3069_v54 }
 0x253   :  { %v1066_v24 = vadd.f32 %v1065_v20, %v1003_v47  ;;  %v1010_v20 = vmul.f32 %v3073_v63, %v3073_v63 }
 0x255   :  { %v1067_v9 = vadd.f32 %v1066_v24, %v1004_v52  ;;  %v1011_v24 = vmul.f32 %v3077_v6, %v3077_v6 }
 0x257   :  { %v1068_v34 = vadd.f32 %v1067_v9, %v1005_v57  ;;  %v1012_v9 = vmul.f32 %v3081_v15, %v3081_v15 }
 0x259   :  { %v1069_v25 = vadd.f32 %v1068_v34, %v1006_v11  ;;  %v1013_v34 = vmul.f32 %v3085_v30, %v3085_v30 }
 0x25b   :  { %v1070_v59 = vadd.f32 %v1069_v25, %v1007_v49  ;;  %v4743_v25 = vld [vmem:[#allocation6_spill] sm:$0xff] }
 0x25c   :  { %v1014_v19 = vmul.f32 %v4743_v25, %v4743_v25 }
 0x25d   :  { %v1071_v47 = vadd.f32 %v1070_v59, %v1008_v8  ;;  %v4744_v59 = vld [vmem:[#allocation8_spill] sm:$0xff] }
 0x25e   :  { %v1015_v12 = vmul.f32 %v4744_v59, %v4744_v59 }
 0x25f   :  { %v1072_v52 = vadd.f32 %v1071_v47, %v1009_v13  ;;  %v4745_v47 = vld [vmem:[#allocation10_spill] sm:$0xff] }
 0x260   :  { %v1016_v3 = vmul.f32 %v4745_v47, %v4745_v47 }
 0x261   :  { %v1073_v57 = vadd.f32 %v1072_v52, %v1010_v20  ;;  %v4746_v52 = vld [vmem:[#allocation27_spill] sm:$0xff] }
 0x262   :  { %v1017_v62 = vmul.f32 %v4746_v52, %v4746_v52 }
 0x263   :  { %v1074_v11 = vadd.f32 %v1073_v57, %v1011_v24  ;;  %v1018_v57 = vmul.f32 %v3105_v48, %v3105_v48 }
 0x265   :  { %v1075_v49 = vadd.f32 %v1074_v11, %v1012_v9 }
 0x267   :  { %v1076_v8 = vadd.f32 %v1075_v49, %v1013_v34 }
 0x269   :  { %v1077_v13 = vadd.f32 %v1076_v8, %v1014_v19 }
 0x26b   :  { %v1078_v20 = vadd.f32 %v1077_v13, %v1015_v12 }
 0x26d   :  { %v1079_v24 = vadd.f32 %v1078_v20, %v1016_v3 }
 0x26f   :  { %v1080_v9 = vadd.f32 %v1079_v24, %v1017_v62 }
 0x271   :  { %v1081_v11 = vadd.f32 %v1080_v9, %v1018_v57 }
 0x273   :  { %v1082_v42 = vrot.slane %v1081_v11, 4 }
 0x275   :  { %v1083_v37 = vadd.f32 %v1082_v42, %v1081_v11 }
 0x277   :  { %v1084_v34 = vrot.slane %v1083_v37, 2 }
 0x279   :  { %v1085_v49 = vadd.f32 %v1084_v34, %v1083_v37  ;;  %v4759_v34 = vld [vmem:[#allocation20_spill] sm:$0xff] }
 0x27b   :  { %v1086_v32 = vrot.slane %v1085_v49, 1 }
 0x27d   :  { %v1087_v27 = vadd.f32 %v1086_v32, %v1085_v49  ;;  %v4760_v49 = vld [vmem:[#allocation21_spill] sm:$0xff] }
 0x27f   :  { %v1088_v19 = vmul.f32 0.001953125, %v1087_v27 }
 0x281   :  { %v1089_v8 = vadd.f32 1e-05, %v1088_v19  ;;  %v4761_v19 = vld [vmem:[#allocation2_spill] sm:$0xff] }
 0x283   :  { %2357 = vrsqrt.f32 %v1089_v8 }
 0x28d   :  { %v3235_v22 = vpop.eup %2357 }
 0x28e   :  { %v3239_v12 = vmul.f32 %v3235_v22, %v4742_v28  ;;  %v3243_v3 = vmul.f32 %v3235_v22, %v3057_v29  ;;  %v3247_v42 = vmul.f32 %v3235_v22, %v3061_v38  ;;  %v3251_v32 = vmul.f32 %v3235_v22, %v3065_v45 }
 0x28f   :  { %v3255_v27 = vmul.f32 %v3235_v22, %v3069_v54  ;;  %v3259_v37 = vmul.f32 %v3235_v22, %v3073_v63  ;;  %v3263_v62 = vmul.f32 %v3235_v22, %v3077_v6  ;;  %v3267_v29 = vmul.f32 %v3235_v22, %v3081_v15 }
 0x290   :  { %v3271_v38 = vmul.f32 %v3235_v22, %v3085_v30  ;;  %v3275_v45 = vmul.f32 %v3235_v22, %v4743_v25  ;;  %v3279_v54 = vmul.f32 %v3235_v22, %v4744_v59  ;;  %v3283_v63 = vmul.f32 %v3235_v22, %v4745_v47  ;;  %v4756_v30 = vld [vmem:[#allocation17_spill] sm:$0xff]  ;;  %v4757_v25 = vld [vmem:[#allocation18_spill] sm:$0xff]  ;;  %v4758_v59 = vld [vmem:[#allocation19_spill] sm:$0xff] }
 0x291   :  { %4747 = vst [vmem:[#allocation3_spill] sm:$0xff] %v3259_v37  ;;  %4748 = vst [vmem:[#allocation4_spill] sm:$0xff] %v3263_v62  ;;  %v3287_v6 = vmul.f32 %v3235_v22, %v4746_v52  ;;  %v3291_v15 = vmul.f32 %v3235_v22, %v3105_v48  ;;  %v1091_v28 = vmul.f32 %v3235_v22, %v4756_v30  ;;  %v4772_v62 = vld [vmem:[#allocation24_spill] sm:$0xff]  ;;  %v4773_v37 = vld [vmem:[#allocation25_spill] sm:$0xff] }
 0x292   :  { %4749 = vst [vmem:[#allocation5_spill] sm:$0xff] %v3267_v29  ;;  %4750 = vst [vmem:[#allocation26_spill] sm:$0xff] %v3271_v38  ;;  %v1092_v13 = vmul.f32 %v3235_v22, %v4757_v25  ;;  %v1093_v20 = vmul.f32 %v3235_v22, %v4758_v59  ;;  %v1094_v47 = vmul.f32 %v3235_v22, %v2865_v1  ;;  %v4763_v59 = vld [vmem:[#allocation9_spill] sm:$0xff]  ;;  %v4770_v38 = vld [vmem:[#allocation22_spill] sm:$0xff] }
 0x293   :  { %4751 = vst [vmem:[#allocation6_spill] sm:$0xff] %v3275_v45  ;;  %4752 = vst [vmem:[#allocation8_spill] sm:$0xff] %v3279_v54  ;;  %v1095_v52 = vmul.f32 %v3235_v22, %v2869_v43  ;;  %v1096_v24 = vmul.f32 %v3235_v22, %v2873_v17  ;;  %v1097_v48 = vmul.f32 %v3235_v22, %v2877_v21  ;;  %v4768_v54 = vld [vmem:[#allocation15_spill] sm:$0xff]  ;;  %v4769_v45 = vld [vmem:[#allocation16_spill] sm:$0xff] }
 0x294   :  { %4753 = vst [vmem:[#allocation10_spill] sm:$0xff] %v3283_v63  ;;  %4754 = vst [vmem:[#allocation27_spill] sm:$0xff] %v3287_v6  ;;  %v1098_v57 = vmul.f32 %v3235_v22, %v2881_v26  ;;  %v1099_v9 = vmul.f32 %v3235_v22, %v2885_v31  ;;  %v1100_v11 = vmul.f32 %v3235_v22, %v2889_v36  ;;  %v4767_v6 = vld [vmem:[#allocation14_spill] sm:$0xff]  ;;  %v4771_v29 = vld [vmem:[#allocation23_spill] sm:$0xff] }
 0x295   :  { %4755 = vst [vmem:[#allocation28_spill] sm:$0xff] %v3291_v15  ;;  %v1101_v1 = vmul.f32 %v3235_v22, %v2893_v41  ;;  %v1102_v43 = vmul.f32 %v3235_v22, %v2897_v46  ;;  %v1103_v17 = vmul.f32 %v3235_v22, %v2901_v51  ;;  %v1104_v21 = vmul.f32 %v3235_v22, %v2905_v56 }
 0x296   :  { %v1105_v26 = vmul.f32 %v3235_v22, %v2909_v61  ;;  %v1106_v31 = vmul.f32 %v3235_v22, %v2913_v2  ;;  %v1107_v36 = vmul.f32 %v3235_v22, %v2917_v7  ;;  %v1108_v41 = vmul.f32 %v3235_v22, %v4759_v34  ;;  %v4764_v34 = vld [vmem:[#allocation11_spill] sm:$0xff] }
 0x297   :  { %v1109_v46 = vmul.f32 %v3235_v22, %v4760_v49  ;;  %v1110_v51 = vmul.f32 %v3235_v22, %v4761_v19  ;;  %v1111_v56 = vmul.f32 %v3235_v22, %v2933_v35  ;;  %v1112_v61 = vmul.f32 %v3235_v22, %v2937_v44  ;;  %v4765_v49 = vld [vmem:[#allocation12_spill] sm:$0xff]  ;;  %v4766_v19 = vld [vmem:[#allocation13_spill] sm:$0xff] }
 0x298   :  { %v1113_v2 = vmul.f32 %v3235_v22, %v4737_v10  ;;  %v1114_v7 = vmul.f32 %v3235_v22, %v4738_v33  ;;  %v1115_v8 = vmul.f32 %v3235_v22, %v4739_v50  ;;  %v1116_v30 = vmul.f32 %v3235_v22, %v2953_v39 }
 0x299   :  { %v1117_v25 = vmul.f32 %v3235_v22, %v2957_v0  ;;  %v1118_v35 = vmul.f32 %v3235_v22, %v2961_v14  ;;  %v1119_v44 = vmul.f32 %v3235_v22, %v2965_v16  ;;  %v1120_v10 = vmul.f32 %v3235_v22, %v2969_v4 }
 0x29a   :  { %v1121_v33 = vmul.f32 %v3235_v22, %v2973_v23  ;;  %v1122_v50 = vmul.f32 %v3235_v22, %v2977_v58  ;;  %v1123_v39 = vmul.f32 %v3235_v22, %v2981_v55  ;;  %v1124_v0 = vmul.f32 %v3235_v22, %v2985_v53  ;;  %v3370_v23 = vld [vmem:[%s4604_s2] ss:$0 sm:$0xff]  ;;  %v4762_v55 = vld [vmem:[#allocation7_spill] sm:$0xff] }
 0x29b   :  { %v1125_v14 = vmul.f32 %v3235_v22, %v2989_v60  ;;  %v1126_v16 = vmul.f32 %v3235_v22, %v2993_v40  ;;  %v1127_v4 = vmul.f32 %v3235_v22, %v2997_v5  ;;  %v1128_v58 = vmul.f32 %v3235_v22, %v3001_v18 }
 0x29c   :  { %v1129_v53 = vmul.f32 %v3235_v22, %v4762_v55  ;;  %v1130_v60 = vmul.f32 %v3235_v22, %v4763_v59  ;;  %v1131_v40 = vmul.f32 %v3235_v22, %v4764_v34  ;;  %v1132_v5 = vmul.f32 %v3235_v22, %v4765_v49 }
 0x29d   :  { %v1133_v15 = vmul.f32 %v3235_v22, %v4766_v19  ;;  %v1134_v63 = vmul.f32 %v3235_v22, %v4767_v6  ;;  %v1135_v18 = vmul.f32 %v3235_v22, %v4768_v54  ;;  %v1136_v55 = vmul.f32 %v3235_v22, %v4769_v45 }
 0x29e   :  { %v1137_v59 = vmul.f32 %v3235_v22, %v4770_v38  ;;  %v1138_v34 = vmul.f32 %v3235_v22, %v4771_v29  ;;  %v1139_v49 = vmul.f32 %v3235_v22, %v4772_v62  ;;  %v1140_v19 = vmul.f32 %v3235_v22, %v4773_v37 }
 0x29f   :  { %v3399_v6 = vmul.f32 %v3370_v23, %v1091_v28  ;;  %v3402_v54 = vmul.f32 %v3370_v23, %v1092_v13  ;;  %v3405_v45 = vmul.f32 %v3370_v23, %v1093_v20  ;;  %v3408_v38 = vmul.f32 %v3370_v23, %v1094_v47 }
 0x2a0   :  { %v3411_v29 = vmul.f32 %v3370_v23, %v1095_v52  ;;  %v3414_v62 = vmul.f32 %v3370_v23, %v1096_v24  ;;  %v3417_v22 = vmul.f32 %v3370_v23, %v1097_v48  ;;  %v3420_v37 = vmul.f32 %v3370_v23, %v1098_v57 }
 0x2a1   :  { %v3423_v28 = vmul.f32 %v3370_v23, %v1099_v9  ;;  %v3426_v13 = vmul.f32 %v3370_v23, %v1100_v11  ;;  %v3429_v20 = vmul.f32 %v3370_v23, %v1101_v1  ;;  %v3432_v47 = vmul.f32 %v3370_v23, %v1102_v43 }
 0x2a2   :  { %v3435_v52 = vmul.f32 %v3370_v23, %v1103_v17  ;;  %v3438_v24 = vmul.f32 %v3370_v23, %v1104_v21  ;;  %v3441_v48 = vmul.f32 %v3370_v23, %v1105_v26  ;;  %v3444_v57 = vmul.f32 %v3370_v23, %v1106_v31 }
 0x2a3   :  { %v3447_v9 = vmul.f32 %v3370_v23, %v1107_v36  ;;  %v3450_v11 = vmul.f32 %v3370_v23, %v1108_v41  ;;  %v3453_v1 = vmul.f32 %v3370_v23, %v1109_v46  ;;  %v3456_v43 = vmul.f32 %v3370_v23, %v1110_v51 }
 0x2a4   :  { %v3459_v17 = vmul.f32 %v3370_v23, %v1111_v56  ;;  %v3462_v21 = vmul.f32 %v3370_v23, %v1112_v61  ;;  %v3465_v26 = vmul.f32 %v3370_v23, %v1113_v2  ;;  %v3468_v31 = vmul.f32 %v3370_v23, %v1114_v7 }
 0x2a5   :  { %v3471_v36 = vmul.f32 %v3370_v23, %v1115_v8  ;;  %v3474_v41 = vmul.f32 %v3370_v23, %v1116_v30  ;;  %v3477_v46 = vmul.f32 %v3370_v23, %v1117_v25  ;;  %v3480_v51 = vmul.f32 %v3370_v23, %v1118_v35 }
 0x2a6   :  { %v3483_v56 = vmul.f32 %v3370_v23, %v1119_v44  ;;  %v3486_v61 = vmul.f32 %v3370_v23, %v1120_v10  ;;  %v3489_v2 = vmul.f32 %v3370_v23, %v1121_v33  ;;  %v3492_v7 = vmul.f32 %v3370_v23, %v1122_v50 }
 0x2a7   :  { %v3495_v8 = vmul.f32 %v3370_v23, %v1123_v39  ;;  %v3498_v30 = vmul.f32 %v3370_v23, %v1124_v0  ;;  %v3501_v25 = vmul.f32 %v3370_v23, %v1125_v14  ;;  %v3504_v35 = vmul.f32 %v3370_v23, %v1126_v16 }
 0x2a8   :  { %v3507_v44 = vmul.f32 %v3370_v23, %v1127_v4  ;;  %v3510_v10 = vmul.f32 %v3370_v23, %v1128_v58  ;;  %v3513_v33 = vmul.f32 %v3370_v23, %v1129_v53  ;;  %v3516_v50 = vmul.f32 %v3370_v23, %v1130_v60 }
 0x2a9   :  { %v3519_v39 = vmul.f32 %v3370_v23, %v1131_v40  ;;  %v3522_v0 = vmul.f32 %v3370_v23, %v1132_v5  ;;  %v3525_v14 = vmul.f32 %v3370_v23, %v1133_v15  ;;  %v3528_v16 = vmul.f32 %v3370_v23, %v1134_v63  ;;  %v3555_v5 = vld [vmem:[%s4605_s3] ss:$0 sm:$0xff] }
 0x2aa   :  { %v3531_v4 = vmul.f32 %v3370_v23, %v1135_v18  ;;  %v3534_v58 = vmul.f32 %v3370_v23, %v1136_v55  ;;  %v3537_v53 = vmul.f32 %v3370_v23, %v1137_v59  ;;  %v3540_v60 = vmul.f32 %v3370_v23, %v1138_v34  ;;  %v4778_v34 = vld [vmem:[#allocation3_spill] sm:$0xff] }
 0x2ab   :  { %v3543_v40 = vmul.f32 %v3370_v23, %v1139_v49  ;;  %v3546_v15 = vmul.f32 %v3370_v23, %v1140_v19  ;;  %v3550_v63 = vmul.f32 %v3370_v23, %v3239_v12  ;;  %v3559_v18 = vmul.f32 %v3370_v23, %v3243_v3  ;;  %v4780_v19 = vld [vmem:[#allocation4_spill] sm:$0xff] }
 0x2ac   :  { %v3563_v55 = vmul.f32 %v3370_v23, %v3247_v42  ;;  %v3567_v59 = vmul.f32 %v3370_v23, %v3251_v32  ;;  %v3571_v12 = vmul.f32 %v3370_v23, %v3255_v27  ;;  %v3575_v49 = vmul.f32 %v3370_v23, %v4778_v34 }
 0x2ad   :  { %4774 = vst [vmem:[#allocation17_spill] sm:$0xff] %v3559_v18  ;;  %v3579_v3 = vmul.f32 %v3370_v23, %v4780_v19  ;;  %v4782_v18 = vld [vmem:[#allocation5_spill] sm:$0xff] }
 0x2ae   :  { %4775 = vst [vmem:[#allocation18_spill] sm:$0xff] %v3563_v55  ;;  %4776 = vst [vmem:[#allocation19_spill] sm:$0xff] %v3567_v59  ;;  %v3583_v42 = vmul.f32 %v3370_v23, %v4782_v18  ;;  %v4784_v55 = vld [vmem:[#allocation26_spill] sm:$0xff] }
 0x2af   :  { %4777 = vst [vmem:[#allocation20_spill] sm:$0xff] %v3571_v12  ;;  %4779 = vst [vmem:[#allocation21_spill] sm:$0xff] %v3575_v49  ;;  %v3587_v32 = vmul.f32 %v3370_v23, %v4784_v55  ;;  %v4785_v59 = vld [vmem:[#allocation6_spill] sm:$0xff]  ;;  %v4786_v12 = vld [vmem:[#allocation8_spill] sm:$0xff] }
 0x2b0   :  { %4781 = vst [vmem:[#allocation2_spill] sm:$0xff] %v3579_v3  ;;  %4783 = vst [vmem:[#allocation7_spill] sm:$0xff] %v3583_v42  ;;  %v3591_v27 = vmul.f32 %v3370_v23, %v4785_v59  ;;  %v3595_v34 = vmul.f32 %v3370_v23, %v4786_v12  ;;  %v4787_v49 = vld [vmem:[#allocation10_spill] sm:$0xff]  ;;  %v4788_v3 = vld [vmem:[#allocation27_spill] sm:$0xff]  ;;  %v3611_v59 = vadd.f32 %v3555_v5, %v3399_v6 }
 0x2b1   :  { %v3599_v19 = vmul.f32 %v3370_v23, %v4787_v49  ;;  %v3603_v18 = vmul.f32 %v3370_v23, %v4788_v3  ;;  %v4789_v42 = vld [vmem:[#allocation28_spill] sm:$0xff]  ;;  %v3615_v12 = vadd.f32 %v3555_v5, %v3402_v54  ;;  %v3619_v49 = vadd.f32 %v3555_v5, %v3405_v45 }
 0x2b2   :  { %v3607_v55 = vmul.f32 %v3370_v23, %v4789_v42  ;;  %v3623_v3 = vadd.f32 %v3555_v5, %v3408_v38  ;;  %v3627_v23 = vadd.f32 %v3555_v5, %v3411_v29  ;;  %v3631_v6 = vadd.f32 %v3555_v5, %v3414_v62 }
 0x2b3   :  { %v3635_v54 = vadd.f32 %v3555_v5, %v3417_v22  ;;  %v3639_v45 = vadd.f32 %v3555_v5, %v3420_v37  ;;  %v3643_v38 = vadd.f32 %v3555_v5, %v3423_v28  ;;  %v3647_v29 = vadd.f32 %v3555_v5, %v3426_v13 }
 0x2b4   :  { %v3651_v62 = vadd.f32 %v3555_v5, %v3429_v20  ;;  %v3655_v22 = vadd.f32 %v3555_v5, %v3432_v47  ;;  %v3659_v37 = vadd.f32 %v3555_v5, %v3435_v52  ;;  %v3663_v28 = vadd.f32 %v3555_v5, %v3438_v24  ;;  %v4796_v42 = vld [vmem:[#allocation17_spill] sm:$0xff] }
 0x2b5   :  { %v3667_v13 = vadd.f32 %v3555_v5, %v3441_v48  ;;  %v3671_v20 = vadd.f32 %v3555_v5, %v3444_v57  ;;  %v3675_v47 = vadd.f32 %v3555_v5, %v3447_v9  ;;  %v3679_v52 = vadd.f32 %v3555_v5, %v3450_v11 }
 0x2b6   :  { %v3683_v24 = vadd.f32 %v3555_v5, %v3453_v1  ;;  %v3687_v48 = vadd.f32 %v3555_v5, %v3456_v43  ;;  %v3691_v57 = vadd.f32 %v3555_v5, %v3459_v17  ;;  %v3695_v9 = vadd.f32 %v3555_v5, %v3462_v21 }
 0x2b7   :  { %v3699_v11 = vadd.f32 %v3555_v5, %v3465_v26  ;;  %v3703_v1 = vadd.f32 %v3555_v5, %v3468_v31  ;;  %v3707_v43 = vadd.f32 %v3555_v5, %v3471_v36  ;;  %v3711_v17 = vadd.f32 %v3555_v5, %v3474_v41 }
 0x2b8   :  { %v3715_v21 = vadd.f32 %v3555_v5, %v3477_v46  ;;  %v3719_v26 = vadd.f32 %v3555_v5, %v3480_v51  ;;  %v3723_v31 = vadd.f32 %v3555_v5, %v3483_v56  ;;  %v3727_v36 = vadd.f32 %v3555_v5, %v3486_v61 }
 0x2b9   :  { %v3731_v41 = vadd.f32 %v3555_v5, %v3489_v2  ;;  %v3735_v46 = vadd.f32 %v3555_v5, %v3492_v7  ;;  %v3739_v51 = vadd.f32 %v3555_v5, %v3495_v8  ;;  %v3743_v56 = vadd.f32 %v3555_v5, %v3498_v30 }
 0x2ba   :  { %v3747_v61 = vadd.f32 %v3555_v5, %v3501_v25  ;;  %v3751_v2 = vadd.f32 %v3555_v5, %v3504_v35  ;;  %v3755_v7 = vadd.f32 %v3555_v5, %v3507_v44  ;;  %v3759_v8 = vadd.f32 %v3555_v5, %v3510_v10 }
 0x2bb   :  { %v3763_v30 = vadd.f32 %v3555_v5, %v3513_v33  ;;  %v3767_v25 = vadd.f32 %v3555_v5, %v3516_v50  ;;  %v3771_v35 = vadd.f32 %v3555_v5, %v3519_v39  ;;  %v3775_v44 = vadd.f32 %v3555_v5, %v3522_v0 }
 0x2bc   :  { %v3779_v10 = vadd.f32 %v3555_v5, %v3525_v14  ;;  %v3783_v33 = vadd.f32 %v3555_v5, %v3528_v16  ;;  %v3787_v50 = vadd.f32 %v3555_v5, %v3531_v4  ;;  %v3791_v39 = vadd.f32 %v3555_v5, %v3534_v58 }
 0x2bd   :  { %4790 = vst [vmem:[#allocation9_spill] sm:$0xff] %v3775_v44  ;;  %v3795_v0 = vadd.f32 %v3555_v5, %v3537_v53  ;;  %v3799_v14 = vadd.f32 %v3555_v5, %v3540_v60  ;;  %v3803_v16 = vadd.f32 %v3555_v5, %v3543_v40  ;;  %v3807_v4 = vadd.f32 %v3555_v5, %v3546_v15 }
 0x2be   :  { %v3811_v58 = vadd.f32 %v3555_v5, %v3550_v63  ;;  %v3815_v53 = vadd.f32 %v3555_v5, %v4796_v42  ;;  %vm1295_vm0 = vcmp.ge.f32.partialorder %v3611_v59, 0.0  ;;  %vm1296_vm1 = vcmp.ge.f32.partialorder %v3615_v12, 0.0 }
 0x2bf   :  { %4791 = vst [vmem:[#allocation11_spill] sm:$0xff] %v3795_v0  ;;  %4792 = vst [vmem:[#allocation12_spill] sm:$0xff] %v3799_v14  ;;  %v4798_v0 = vld [vmem:[#allocation18_spill] sm:$0xff]  ;;  %v4800_v14 = vld [vmem:[#allocation19_spill] sm:$0xff]  ;;  %vm1297_vm2 = vcmp.ge.f32.partialorder %v3619_v49, 0.0  ;;  %vm1298_vm3 = vcmp.ge.f32.partialorder %v3623_v3, 0.0 }
 0x2c0   :  { %4793 = vst [vmem:[#allocation13_spill] sm:$0xff] %v3803_v16  ;;  %4794 = vst [vmem:[#allocation14_spill] sm:$0xff] %v3807_v4  ;;  %v3819_v60 = vadd.f32 %v3555_v5, %v4798_v0  ;;  %v3823_v40 = vadd.f32 %v3555_v5, %v4800_v14  ;;  %v4802_v16 = vld [vmem:[#allocation20_spill] sm:$0xff]  ;;  %v4804_v4 = vld [vmem:[#allocation21_spill] sm:$0xff]  ;;  %v3843_v14 = vadd.f32 %v3555_v5, %v3587_v32  ;;  %vm1299_vm4 = vcmp.ge.f32.partialorder %v3627_v23, 0.0 }
 0x2c1   :  { %4795 = vst [vmem:[#allocation15_spill] sm:$0xff] %v3811_v58  ;;  %4797 = vst [vmem:[#allocation16_spill] sm:$0xff] %v3815_v53  ;;  %v3827_v15 = vadd.f32 %v3555_v5, %v4802_v16  ;;  %v3831_v63 = vadd.f32 %v3555_v5, %v4804_v4  ;;  %v4806_v58 = vld [vmem:[#allocation2_spill] sm:$0xff]  ;;  %v4808_v53 = vld [vmem:[#allocation7_spill] sm:$0xff]  ;;  %v3847_v16 = vadd.f32 %v3555_v5, %v3591_v27  ;;  %vm1300_vm5 = vcmp.ge.f32.partialorder %v3631_v6, 0.0 }
 0x2c2   :  { %4799 = vst [vmem:[#allocation22_spill] sm:$0xff] %v3819_v60  ;;  %4801 = vst [vmem:[#allocation23_spill] sm:$0xff] %v3823_v40  ;;  %v3835_v42 = vadd.f32 %v3555_v5, %v4806_v58  ;;  %v3839_v0 = vadd.f32 %v3555_v5, %v4808_v53  ;;  %v3851_v4 = vadd.f32 %v3555_v5, %v3595_v34  ;;  %vm1301_vm6 = vcmp.ge.f32.partialorder %v3635_v54, 0.0 }
 0x2c3   :  { %4803 = vst [vmem:[#allocation24_spill] sm:$0xff] %v3827_v15  ;;  %4805 = vst [vmem:[#allocation25_spill] sm:$0xff] %v3831_v63  ;;  %v3855_v58 = vadd.f32 %v3555_v5, %v3599_v19  ;;  %vm1302_vm7 = vcmp.ge.f32.partialorder %v3639_v45, 0.0  ;;  %vm1303_vm8 = vcmp.ge.f32.partialorder %v3643_v38, 0.0  ;;  %v3868_v32 = vadd.f32 %v3555_v5, %v3603_v18 }
 0x2c4   :  { %4807 = vst [vmem:[#allocation3_spill] sm:$0xff] %v3835_v42  ;;  %4809 = vst [vmem:[#allocation4_spill] sm:$0xff] %v3839_v0  ;;  %vm1304_vm9 = vcmp.ge.f32.partialorder %v3647_v29, 0.0  ;;  %v1359_v27 = vmul.f32 0.01, %v3611_v59  ;;  %v3876_v53 = vadd.f32 %v3555_v5, %v3607_v55  ;;  %vm1305_vm10 = vcmp.ge.f32.partialorder %v3651_v62, 0.0 }
 0x2c5   :  { %4810 = vst [vmem:[#allocation5_spill] sm:$0xff] %v3843_v14  ;;  %4811 = vst [vmem:[#allocation26_spill] sm:$0xff] %v3847_v16  ;;  %v1360_v34 = vmul.f32 0.01, %v3615_v12  ;;  %v1361_v19 = vmul.f32 0.01, %v3619_v49 }
 0x2c6   :  { %4812 = vst [vmem:[#allocation6_spill] sm:$0xff] %v3851_v4  ;;  %4813 = vst [vmem:[#allocation8_spill] sm:$0xff] %v3855_v58  ;;  %v1362_v58 = vmul.f32 0.01, %v3623_v3  ;;  %v1363_v4 = vmul.f32 0.01, %v3627_v23  ;;  %v3889_v5 = vsel %vm1295_vm0, %v3611_v59, %v1359_v27 }
 0x2c7   :  { %4814 = vst [vmem:[#allocation10_spill] sm:$0xff] %v3868_v32  ;;  %4815 = vst [vmem:[#allocation27_spill] sm:$0xff] %v3876_v53  ;;  %v1364_v18 = vmul.f32 0.01, %v3631_v6  ;;  %vm1306_vm11 = vcmp.ge.f32.partialorder %v3655_v22, 0.0  ;;  %vm1307_vm12 = vcmp.ge.f32.partialorder %v3659_v37, 0.0  ;;  %v3900_v42 = vsel %vm1296_vm1, %v3615_v12, %v1360_v34 }
 0x2c8   :  { %v1365_v32 = vmul.f32 0.01, %v3635_v54  ;;  %v1366_v16 = vmul.f32 0.01, %v3639_v45  ;;  %v1367_v14 = vmul.f32 0.01, %v3643_v38  ;;  %v3930_v15 = vsel %vm1298_vm3, %v3623_v3, %v1362_v58 }
 0x2c9   :  { %4816 = vst [vmem:[#allocation28_spill] sm:$0xff] %v3889_v5  ;;  %v1368_v55 = vmul.f32 0.01, %v3647_v29  ;;  %v1369_v53 = vmul.f32 0.01, %v3651_v62  ;;  %4817 = vst [vmem:[#allocation17_spill] sm:$0xff] %v3900_v42  ;;  %v3915_v5 = vsel %vm1297_vm2, %v3619_v49, %v1361_v19 }
 0x2ca   :  { %v3895_v0 = vmul.f32 0.01, %v3655_v22  ;;  %vm1308_vm13 = vcmp.ge.f32.partialorder %v3663_v28, 0.0  ;;  %v3904_v63 = vmul.f32 0.01, %v3659_v37  ;;  %4818 = vst [vmem:[#allocation18_spill] sm:$0xff] %v3915_v5 }
 0x2cb   :  { %v3907_v59 = vmul.f32 0.01, %v3663_v28  ;;  %v3910_v27 = vmul.f32 0.01, %v3667_v13  ;;  %vm1309_vm14 = vcmp.ge.f32.partialorder %v3667_v13, 0.0  ;;  %4820 = vst [vmem:[#allocation20_spill] sm:$0xff] %v3930_v15 }
 0x2cc   :  { %v3919_v12 = vmul.f32 0.01, %v3671_v20  ;;  %v3922_v34 = vmul.f32 0.01, %v3675_v47  ;;  %v3925_v42 = vmul.f32 0.01, %v3679_v52 }
 0x2cd   :  { %vm1310_vm15 = vcmp.ge.f32.partialorder %v3671_v20, 0.0  ;;  %v3934_v49 = vmul.f32 0.01, %v3683_v24  ;;  %v3937_v19 = vmul.f32 0.01, %v3687_v48  ;;  %vm1311_vm0 = vcmp.ge.f32.partialorder %v3675_v47, 0.0 }
 0x2ce   :  { %4819 = vst [vmem:[#allocation19_spill] sm:$0xff] %v3925_v42  ;;  %v3940_v5 = vmul.f32 0.01, %v3691_v57  ;;  %v3945_v42 = vsel %vm1299_vm4, %v3627_v23, %v1363_v4  ;;  %v3949_v3 = vmul.f32 0.01, %v3695_v9  ;;  %vm1312_vm1 = vcmp.ge.f32.partialorder %v3679_v52, 0.0 }
 0x2cf   :  { %4822 = vst [vmem:[#allocation2_spill] sm:$0xff] %v3945_v42  ;;  %v3952_v58 = vmul.f32 0.01, %v3699_v11  ;;  %v3955_v15 = vmul.f32 0.01, %v3703_v1  ;;  %vm1313_vm2 = vcmp.ge.f32.partialorder %v3683_v24, 0.0 }
 0x2d0   :  { %4821 = vst [vmem:[#allocation21_spill] sm:$0xff] %v3940_v5  ;;  %v3960_v5 = vsel %vm1300_vm5, %v3631_v6, %v1364_v18  ;;  %v3964_v23 = vmul.f32 0.01, %v3707_v43  ;;  %v3967_v4 = vmul.f32 0.01, %v3711_v17  ;;  %vm1314_vm3 = vcmp.ge.f32.partialorder %v3687_v48, 0.0 }
 0x2d1   :  { %4823 = vst [vmem:[#allocation7_spill] sm:$0xff] %v3955_v15  ;;  %4824 = vst [vmem:[#allocation29_spill] sm:$0xff] %v3960_v5  ;;  %v3970_v42 = vmul.f32 0.01, %v3715_v21  ;;  %v3975_v15 = vsel %vm1301_vm6, %v3635_v54, %v1365_v32  ;;  %v3979_v6 = vmul.f32 0.01, %v3719_v26 }
 0x2d2   :  { %4826 = vst [vmem:[#allocation31_spill] sm:$0xff] %v3975_v15  ;;  %v3982_v18 = vmul.f32 0.01, %v3723_v31  ;;  %v3985_v5 = vmul.f32 0.01, %v3727_v36  ;;  %vm1317_vm6 = vcmp.ge.f32.partialorder %v3699_v11, 0.0 }
 0x2d3   :  { %4825 = vst [vmem:[#allocation30_spill] sm:$0xff] %v3970_v42  ;;  %v3990_v42 = vsel %vm1302_vm7, %v3639_v45, %v1366_v16  ;;  %v3996_v54 = vmul.f32 0.01, %v3731_v41  ;;  %v3999_v32 = vmul.f32 0.01, %v3735_v46  ;;  %v4007_v45 = vsel %vm1303_vm8, %v3643_v38, %v1367_v14 }
 0x2d4   :  { %4827 = vst [vmem:[#allocation32_spill] sm:$0xff] %v3990_v42  ;;  %v4002_v15 = vmul.f32 0.01, %v3739_v51  ;;  %4829 = vst [vmem:[#allocation34_spill] sm:$0xff] %v4007_v45  ;;  %v4014_v16 = vmul.f32 0.01, %v3743_v56  ;;  %v4025_v38 = vsel %vm1304_vm9, %v3647_v29, %v1368_v55  ;;  %v4043_v29 = vsel %vm1305_vm10, %v3651_v62, %v1369_v53 }
 0x2d5   :  { %v4017_v42 = vmul.f32 0.01, %v3747_v61  ;;  %4831 = vst [vmem:[#allocation36_spill] sm:$0xff] %v4025_v38  ;;  %vm1321_vm8 = vcmp.ge.f32.partialorder %v3715_v21, 0.0  ;;  %v4032_v14 = vmul.f32 0.01, %v3755_v7  ;;  %v4062_v62 = vsel %vm1306_vm11, %v3655_v22, %v3895_v0 }
 0x2d6   :  { %4828 = vst [vmem:[#allocation33_spill] sm:$0xff] %v4002_v15  ;;  %v4020_v15 = vmul.f32 0.01, %v3751_v2  ;;  %v4035_v45 = vmul.f32 0.01, %v3759_v8  ;;  %4833 = vst [vmem:[#allocation38_spill] sm:$0xff] %v4043_v29  ;;  %v4081_v22 = vsel %vm1307_vm12, %v3659_v37, %v3904_v63  ;;  %v4100_v37 = vsel %vm1308_vm13, %v3663_v28, %v3907_v59 }
 0x2d7   :  { %vm1325_vm9 = vcmp.ge.f32.partialorder %v3731_v41, 0.0  ;;  %v4050_v55 = vmul.f32 0.01, %v3767_v25  ;;  %v4053_v38 = vmul.f32 0.01, %v3771_v35  ;;  %4835 = vst [vmem:[#allocation40_spill] sm:$0xff] %v4062_v62  ;;  %v4119_v28 = vsel %vm1309_vm14, %v3667_v13, %v3910_v27 }
 0x2d8   :  { %4830 = vst [vmem:[#allocation35_spill] sm:$0xff] %v4020_v15  ;;  %v4038_v15 = vmul.f32 0.01, %v3763_v30  ;;  %vm1329_vm10 = vcmp.ge.f32.partialorder %v3747_v61, 0.0  ;;  %v4069_v53 = vmul.f32 0.01, %v3779_v10  ;;  %v4138_v13 = vsel %vm1310_vm15, %v3671_v20, %v3919_v12 }
 0x2d9   :  { %v4072_v29 = vmul.f32 0.01, %v3783_v33  ;;  %4839 = vst [vmem:[#allocation44_spill] sm:$0xff] %v4081_v22  ;;  %vm1333_vm11 = vcmp.ge.f32.partialorder %v3763_v30, 0.0  ;;  %v4088_v0 = vmul.f32 0.01, %v3791_v39  ;;  %v4151_v20 = vsel %vm1311_vm0, %v3675_v47, %v3922_v34 }
 0x2da   :  { %4832 = vst [vmem:[#allocation37_spill] sm:$0xff] %v4038_v15  ;;  %v4056_v15 = vmul.f32 0.01, %v3775_v44  ;;  %4836 = vst [vmem:[#allocation41_spill] sm:$0xff] %v4069_v53  ;;  %v4841_v62 = vld [vmem:[#allocation11_spill] sm:$0xff]  ;;  %vm1337_vm12 = vcmp.ge.f32.partialorder %v3779_v10, 0.0 }
 0x2db   :  { %4837 = vst [vmem:[#allocation42_spill] sm:$0xff] %v4072_v29  ;;  %4840 = vst [vmem:[#allocation45_spill] sm:$0xff] %v4088_v0  ;;  %v4091_v29 = vmul.f32 0.01, %v4841_v62  ;;  %v4846_v63 = vld [vmem:[#allocation13_spill] sm:$0xff]  ;;  %vm1341_vm13 = vcmp.ge.f32.partialorder %v4841_v62, 0.0 }
 0x2dc   :  { %4834 = vst [vmem:[#allocation39_spill] sm:$0xff] %v4056_v15  ;;  %v4075_v15 = vmul.f32 0.01, %v3787_v50  ;;  %4845 = vst [vmem:[#allocation46_spill] sm:$0xff] %v4100_v37  ;;  %v4107_v22 = vmul.f32 0.01, %v4846_v63 }
 0x2dd   :  { %4842 = vst [vmem:[#allocation11_spill] sm:$0xff] %v4091_v29  ;;  %v4847_v29 = vld [vmem:[#allocation14_spill] sm:$0xff]  ;;  %4851 = vst [vmem:[#allocation49_spill] sm:$0xff] %v4119_v28  ;;  %v4852_v59 = vld [vmem:[#allocation16_spill] sm:$0xff]  ;;  %vm4871_vm7 = vcmp.ge.f32.partialorder %v3691_v57, 0.0 }
 0x2de   :  { %4838 = vst [vmem:[#allocation43_spill] sm:$0xff] %v4075_v15  ;;  %v4843_v15 = vld [vmem:[#allocation12_spill] sm:$0xff]  ;;  %v4110_v0 = vmul.f32 0.01, %v4847_v29  ;;  %v4126_v37 = vmul.f32 0.01, %v4852_v59 }
 0x2df   :  { %v4094_v53 = vmul.f32 0.01, %v4843_v15  ;;  %4856 = vst [vmem:[#allocation53_spill] sm:$0xff] %v4138_v13  ;;  %v4857_v27 = vld [vmem:[#allocation24_spill] sm:$0xff]  ;;  %v4859_v29 = vld [vmem:[#allocation3_spill] sm:$0xff]  ;;  %4860 = vst [vmem:[#allocation54_spill] sm:$0xff] %v4151_v20 }
 0x2e0   :  { %4848 = vst [vmem:[#allocation47_spill] sm:$0xff] %v4110_v0  ;;  %4853 = vst [vmem:[#allocation50_spill] sm:$0xff] %v4126_v37  ;;  %v4129_v0 = vmul.f32 0.01, %v3819_v60  ;;  %v1413_v28 = vmul.f32 0.01, %v4857_v27 }
 0x2e1   :  { %4844 = vst [vmem:[#allocation12_spill] sm:$0xff] %v4094_v53  ;;  %v4849_v53 = vld [vmem:[#allocation15_spill] sm:$0xff]  ;;  %vm1349_vm15 = vcmp.ge.f32.partialorder %v4857_v27, 0.0  ;;  %v4861_v12 = vld [vmem:[#allocation4_spill] sm:$0xff]  ;;  %v4863_v59 = vld [vmem:[#allocation26_spill] sm:$0xff] }
 0x2e2   :  { %v4113_v44 = vmul.f32 0.01, %v4849_v53  ;;  %4854 = vst [vmem:[#allocation51_spill] sm:$0xff] %v4129_v0  ;;  %vm1345_vm14 = vcmp.ge.f32.partialorder %v4849_v53, 0.0  ;;  %v4858_v0 = vld [vmem:[#allocation25_spill] sm:$0xff]  ;;  %v4864_v63 = vld [vmem:[#allocation19_spill] sm:$0xff] }
 0x2e3   :  { %v1414_v37 = vmul.f32 0.01, %v4858_v0  ;;  %v1416_v13 = vmul.f32 0.01, %v4861_v12  ;;  %v1418_v53 = vmul.f32 0.01, %v4863_v59  ;;  %v4164_v47 = vsel %vm1312_vm1, %v3679_v52, %v4864_v63 }
 0x2e4   :  { %4850 = vst [vmem:[#allocation48_spill] sm:$0xff] %v4113_v44  ;;  %v4132_v44 = vmul.f32 0.01, %v3823_v40  ;;  %v4862_v40 = vld [vmem:[#allocation5_spill] sm:$0xff]  ;;  %v4866_v34 = vld [vmem:[#allocation6_spill] sm:$0xff]  ;;  %v4867_v20 = vld [vmem:[#allocation8_spill] sm:$0xff]  ;;  %v4177_v52 = vsel %vm1313_vm2, %v3683_v24, %v3934_v49  ;;  %v4204_v49 = vsel %vm1317_vm6, %v3699_v11, %v3952_v58 }
 0x2e5   :  { %v1417_v60 = vmul.f32 0.01, %v4862_v40  ;;  %4865 = vst [vmem:[#allocation5_spill] sm:$0xff] %v4164_v47  ;;  %vm1353_vm0 = vcmp.ge.f32.partialorder %v4862_v40, 0.0  ;;  %vm1355_vm4 = vcmp.ge.f32.partialorder %v4866_v34, 0.0  ;;  %v4868_v0 = vld [vmem:[#allocation10_spill] sm:$0xff] }
 0x2e6   :  { %4855 = vst [vmem:[#allocation52_spill] sm:$0xff] %v4132_v44  ;;  %v1415_v44 = vmul.f32 0.01, %v4859_v29  ;;  %v1419_v12 = vmul.f32 0.01, %v4866_v34  ;;  %vm1357_vm1 = vcmp.ge.f32.partialorder %v4868_v0, 0.0  ;;  %v4186_v34 = vsel %vm1314_vm3, %v3687_v48, %v3937_v19 }
 0x2e7   :  { %v1420_v29 = vmul.f32 0.01, %v4867_v20  ;;  %v1421_v27 = vmul.f32 0.01, %v4868_v0  ;;  %v4869_v63 = vld [vmem:[#allocation27_spill] sm:$0xff]  ;;  %v4870_v20 = vld [vmem:[#allocation21_spill] sm:$0xff] }
 0x2e8   :  { %vm1358_vm5 = vcmp.ge.f32.partialorder %v4869_v63, 0.0  ;;  %v1422_v47 = vmul.f32 0.01, %v4869_v63  ;;  %v4192_v59 = vsel %vm4871_vm7, %v3691_v57, %v4870_v20  ;;  %vm4872_vm2 = vcmp.ge.f32.partialorder %v3695_v9, 0.0  ;;  %v4873_v48 = vld [vmem:[#allocation7_spill] sm:$0xff]  ;;  %v4877_v11 = vld [vmem:[#allocation30_spill] sm:$0xff] }
 0x2e9   :  { %v4198_v24 = vsel %vm4872_vm2, %v3695_v9, %v3949_v3  ;;  %vm4874_vm3 = vcmp.ge.f32.partialorder %v3703_v1, 0.0  ;;  %vm4875_vm7 = vcmp.ge.f32.partialorder %v3707_v43, 0.0  ;;  %vm4876_vm2 = vcmp.ge.f32.partialorder %v3711_v17, 0.0 }
 0x2ea   :  { %v4210_v19 = vsel %vm4874_vm3, %v3703_v1, %v4873_v48  ;;  %v4216_v57 = vsel %vm4875_vm7, %v3707_v43, %v3964_v23  ;;  %v4222_v9 = vsel %vm4876_vm2, %v3711_v17, %v3967_v4  ;;  %v4228_v3 = vsel %vm1321_vm8, %v3715_v21, %v4877_v11  ;;  %v4893_v23 = vld [vmem:[#allocation9_spill] sm:$0xff]  ;;  %v4911_v48 = vld [vmem:[#allocation15_spill] sm:$0xff] }
 0x2eb   :  { %vm4878_vm6 = vcmp.ge.f32.partialorder %v3719_v26, 0.0  ;;  %vm4879_vm3 = vcmp.ge.f32.partialorder %v3723_v31, 0.0  ;;  %vm4880_vm7 = vcmp.ge.f32.partialorder %v3727_v36, 0.0  ;;  %v4252_v21 = vsel %vm1325_vm9, %v3731_v41, %v3996_v54 }
 0x2ec   :  { %v4234_v1 = vsel %vm4878_vm6, %v3719_v26, %v3979_v6  ;;  %v4240_v43 = vsel %vm4879_vm3, %v3723_v31, %v3982_v18  ;;  %v4246_v17 = vsel %vm4880_vm7, %v3727_v36, %v3985_v5  ;;  %vm4881_vm8 = vcmp.ge.f32.partialorder %v3735_v46, 0.0  ;;  %v4882_v31 = vld [vmem:[#allocation33_spill] sm:$0xff] }
 0x2ed   :  { %v4258_v26 = vsel %vm4881_vm8, %v3735_v46, %v3999_v32  ;;  %vm4883_vm2 = vcmp.ge.f32.partialorder %v3739_v51, 0.0  ;;  %vm4884_vm6 = vcmp.ge.f32.partialorder %v3743_v56, 0.0  ;;  %v4276_v41 = vsel %vm1329_vm10, %v3747_v61, %v4017_v42  ;;  %v4885_v46 = vld [vmem:[#allocation35_spill] sm:$0xff]  ;;  %v4889_v61 = vld [vmem:[#allocation37_spill] sm:$0xff] }
 0x2ee   :  { %v4264_v58 = vsel %vm4883_vm2, %v3739_v51, %v4882_v31  ;;  %v4270_v36 = vsel %vm4884_vm6, %v3743_v56, %v4014_v16  ;;  %vm4886_vm9 = vcmp.ge.f32.partialorder %v3751_v2, 0.0  ;;  %vm4887_vm3 = vcmp.ge.f32.partialorder %v3755_v7, 0.0  ;;  %v4900_v32 = vld [vmem:[#allocation45_spill] sm:$0xff]  ;;  %v4913_v31 = vld [vmem:[#allocation16_spill] sm:$0xff] }
 0x2ef   :  { %v4282_v5 = vsel %vm4886_vm9, %v3751_v2, %v4885_v46  ;;  %v4288_v51 = vsel %vm4887_vm3, %v3755_v7, %v4032_v14  ;;  %vm4888_vm7 = vcmp.ge.f32.partialorder %v3759_v8, 0.0  ;;  %v4300_v42 = vsel %vm1333_vm11, %v3763_v30, %v4889_v61  ;;  %v4895_v30 = vld [vmem:[#allocation41_spill] sm:$0xff]  ;;  %v4916_v61 = vld [vmem:[#allocation22_spill] sm:$0xff] }
 0x2f0   :  { %v4294_v56 = vsel %vm4888_vm7, %v3759_v8, %v4035_v45  ;;  %vm4890_vm10 = vcmp.ge.f32.partialorder %v3767_v25, 0.0  ;;  %vm4891_vm8 = vcmp.ge.f32.partialorder %v3771_v35, 0.0  ;;  %v4892_v8 = vld [vmem:[#allocation39_spill] sm:$0xff]  ;;  %vm4894_vm2 = vcmp.ge.f32.partialorder %v4893_v23, 0.0 }
 0x2f1   :  { %v4306_v2 = vsel %vm4890_vm10, %v3767_v25, %v4050_v55  ;;  %v4312_v7 = vsel %vm4891_vm8, %v3771_v35, %v4053_v38  ;;  %v4318_v4 = vsel %vm4894_vm2, %v4893_v23, %v4892_v8  ;;  %v4324_v6 = vsel %vm1337_vm12, %v3779_v10, %v4895_v30  ;;  %v4896_v25 = vld [vmem:[#allocation42_spill] sm:$0xff]  ;;  %v4898_v35 = vld [vmem:[#allocation43_spill] sm:$0xff]  ;;  %v4918_v23 = vld [vmem:[#allocation52_spill] sm:$0xff] }
 0x2f2   :  { %vm4897_vm11 = vcmp.ge.f32.partialorder %v3783_v33, 0.0  ;;  %vm4899_vm6 = vcmp.ge.f32.partialorder %v3787_v50, 0.0  ;;  %vm4901_vm9 = vcmp.ge.f32.partialorder %v3791_v39, 0.0  ;;  %v4902_v10 = vld [vmem:[#allocation11_spill] sm:$0xff]  ;;  %vm4904_vm12 = vcmp.ge.f32.partialorder %v4843_v15, 0.0  ;;  %v4908_v55 = vld [vmem:[#allocation14_spill] sm:$0xff] }
 0x2f3   :  { %v4330_v18 = vsel %vm4897_vm11, %v3783_v33, %v4896_v25  ;;  %v4336_v54 = vsel %vm4899_vm6, %v3787_v50, %v4898_v35  ;;  %v4342_v45 = vsel %vm4901_vm9, %v3791_v39, %v4900_v32  ;;  %v4348_v16 = vsel %vm1341_vm13, %v4841_v62, %v4902_v10  ;;  %v4903_v33 = vld [vmem:[#allocation12_spill] sm:$0xff]  ;;  %v4905_v50 = vld [vmem:[#allocation13_spill] sm:$0xff]  ;;  %v4907_v39 = vld [vmem:[#allocation47_spill] sm:$0xff] }
 0x2f4   :  { %v4354_v38 = vsel %vm4904_vm12, %v4843_v15, %v4903_v33  ;;  %vm4906_vm3 = vcmp.ge.f32.partialorder %v4905_v50, 0.0  ;;  %vm4909_vm7 = vcmp.ge.f32.partialorder %v4908_v55, 0.0  ;;  %v4910_v62 = vld [vmem:[#allocation48_spill] sm:$0xff]  ;;  %v4912_v15 = vld [vmem:[#allocation50_spill] sm:$0xff]  ;;  %vm4914_vm13 = vcmp.ge.f32.partialorder %v4913_v31, 0.0  ;;  %v4919_v30 = vld [vmem:[#allocation23_spill] sm:$0xff] }
 0x2f5   :  { %v4360_v14 = vsel %vm4906_vm3, %v4905_v50, %v4107_v22  ;;  %v4366_v20 = vsel %vm4909_vm7, %v4908_v55, %v4907_v39  ;;  %v4372_v11 = vsel %vm1345_vm14, %v4911_v48, %v4910_v62  ;;  %v4378_v46 = vsel %vm4914_vm13, %v4913_v31, %v4912_v15  ;;  %v4915_v22 = vld [vmem:[#allocation51_spill] sm:$0xff]  ;;  %v4921_v35 = vld [vmem:[#allocation24_spill] sm:$0xff]  ;;  %v4922_v10 = vld [vmem:[#allocation25_spill] sm:$0xff] }
 0x2f6   :  { %vm4917_vm10 = vcmp.ge.f32.partialorder %v4916_v61, 0.0  ;;  %vm4920_vm8 = vcmp.ge.f32.partialorder %v4919_v30, 0.0  ;;  %v4395_v32 = vsel %vm1349_vm15, %v4921_v35, %v1413_v28  ;;  %vm4923_vm14 = vcmp.ge.f32.partialorder %v4922_v10, 0.0  ;;  %v4924_v50 = vld [vmem:[#allocation3_spill] sm:$0xff]  ;;  %v4926_v55 = vld [vmem:[#allocation4_spill] sm:$0xff]  ;;  %v4928_v48 = vld [vmem:[#allocation26_spill] sm:$0xff] }
 0x2f7   :  { %v4384_v8 = vsel %vm4917_vm10, %v4916_v61, %v4915_v22  ;;  %v4390_v25 = vsel %vm4920_vm8, %v4919_v30, %v4918_v23  ;;  %v4400_v33 = vsel %vm4923_vm14, %v4922_v10, %v1414_v37  ;;  %vm4925_vm2 = vcmp.ge.f32.partialorder %v4924_v50, 0.0  ;;  %v4930_v15 = vld [vmem:[#allocation6_spill] sm:$0xff]  ;;  %v4931_v31 = vld [vmem:[#allocation8_spill] sm:$0xff]  ;;  %v4936_v22 = vld [vmem:[#allocation17_spill] sm:$0xff] }
 0x2f8   :  { %v4405_v39 = vsel %vm4925_vm2, %v4924_v50, %v1415_v44  ;;  %vm4927_vm11 = vcmp.ge.f32.partialorder %v4926_v55, 0.0  ;;  %v4415_v28 = vsel %vm1353_vm0, %v4862_v40, %v1417_v60  ;;  %vm4929_vm15 = vcmp.ge.f32.partialorder %v4928_v48, 0.0  ;;  %v4938_v23 = vld [vmem:[#allocation20_spill] sm:$0xff]  ;;  %v4939_v35 = vld [vmem:[#allocation2_spill] sm:$0xff]  ;;  %v4940_v10 = vld [vmem:[#allocation29_spill] sm:$0xff] }
 0x2f9   :  { %v4410_v62 = vsel %vm4927_vm11, %v4926_v55, %v1416_v13  ;;  %v4420_v37 = vsel %vm4929_vm15, %v4928_v48, %v1418_v53  ;;  %v4425_v44 = vsel %vm1355_vm4, %v4930_v15, %v1419_v12  ;;  %vm4932_vm6 = vcmp.ge.f32.partialorder %v4931_v31, 0.0  ;;  %v4935_v53 = vld [vmem:[#allocation28_spill] sm:$0xff]  ;;  %v4937_v12 = vld [vmem:[#allocation18_spill] sm:$0xff]  ;;  %v4941_v50 = vld [vmem:[#allocation31_spill] sm:$0xff] }
 0x2fa   :  { %v4430_v13 = vsel %vm4932_vm6, %v4931_v31, %v1420_v29  ;;  %v4435_v60 = vsel %vm1357_vm1, %v4868_v0, %v1421_v27  ;;  %v4440_v40 = vsel %vm1358_vm5, %v4869_v63, %v1422_v47  ;;  %v2024_v61 = vpack.c.bf16 %v4936_v22, %v4935_v53  ;;  %v4942_v55 = vld [vmem:[#allocation32_spill] sm:$0xff]  ;;  %v4943_v15 = vld [vmem:[#allocation34_spill] sm:$0xff]  ;;  %v4949_v22 = vld [vmem:[#allocation49_spill] sm:$0xff] }
 0x2fb   :  { %4933 = vst [vmem:[#allocation19_spill] sm:$0xff] %v4430_v13  ;;  %4934 = vst [vmem:[#allocation10_spill] sm:$0xff] %v4435_v60  ;;  %v2029_v30 = vpack.c.bf16 %v4938_v23, %v4937_v12  ;;  %v2034_v29 = vpack.c.bf16 %v4940_v10, %v4939_v35  ;;  %v2039_v48 = vpack.c.bf16 %v4942_v55, %v4941_v50  ;;  %v4944_v0 = vld [vmem:[#allocation36_spill] sm:$0xff]  ;;  %v4945_v31 = vld [vmem:[#allocation38_spill] sm:$0xff] }
 0x2fc   :  { %v2044_v27 = vpack.c.bf16 %v4944_v0, %v4943_v15  ;;  %v4946_v60 = vld [vmem:[#allocation40_spill] sm:$0xff]  ;;  %2025 = vst [vmem:[%s4606_s4] sm:$0xff] %v2024_v61   ;;  %v4948_v63 = vld [vmem:[#allocation46_spill] sm:$0xff]  ;;  %v4950_v12 = vld [vmem:[#allocation53_spill] sm:$0xff]  ;;  %v2074_v61 = vpack.c.bf16 %v4198_v24, %v4192_v59  ;;  %v2094_v59 = vpack.c.bf16 %v4246_v17, %v4240_v43  ;;  %v2099_v24 = vpack.c.bf16 %v4258_v26, %v4252_v21 }
 0x2fd   :  { %v2049_v13 = vpack.c.bf16 %v4946_v60, %v4945_v31  ;;  %2181 = vst [vmem:[%s4606_s4 + $0x8] sm:$0xff] %v2029_v30   ;;  %v4947_v47 = vld [vmem:[#allocation44_spill] sm:$0xff]  ;;  %v2059_v23 = vpack.c.bf16 %v4950_v12, %v4949_v22  ;;  %v4951_v35 = vld [vmem:[#allocation54_spill] sm:$0xff]  ;;  %v4952_v10 = vld [vmem:[#allocation5_spill] sm:$0xff]  ;;  %v2069_v60 = vpack.c.bf16 %v4186_v34, %v4177_v52  ;;  %v2079_v34 = vpack.c.bf16 %v4210_v19, %v4204_v49 }
 0x2fe   :  { %v2054_v53 = vpack.c.bf16 %v4948_v63, %v4947_v47  ;;  %v2064_v50 = vpack.c.bf16 %v4952_v10, %v4951_v35  ;;  %2182 = vst [vmem:[%s4606_s4 + $0x10] sm:$0xff] %v2034_v29   ;;  %2183 = vst [vmem:[%s4606_s4 + $0x18] sm:$0xff] %v2039_v48   ;;  %v2084_v52 = vpack.c.bf16 %v4222_v9, %v4216_v57 }
 0x2ff   :  { %2184 = vst [vmem:[%s4606_s4 + $0x20] sm:$0xff] %v2044_v27   ;;  %2185 = vst [vmem:[%s4606_s4 + $0x28] sm:$0xff] %v2049_v13   ;;  %v2089_v30 = vpack.c.bf16 %v4234_v1, %v4228_v3  ;;  %v2104_v49 = vpack.c.bf16 %v4270_v36, %v4264_v58  ;;  %v2109_v19 = vpack.c.bf16 %v4282_v5, %v4276_v41 }
 0x300   :  { %2186 = vst [vmem:[%s4606_s4 + $0x30] sm:$0xff] %v2054_v53   ;;  %2187 = vst [vmem:[%s4606_s4 + $0x38] sm:$0xff] %v2059_v23   ;;  %v2114_v57 = vpack.c.bf16 %v4294_v56, %v4288_v51  ;;  %v2119_v9 = vpack.c.bf16 %v4306_v2, %v4300_v42  ;;  %v2124_v3 = vpack.c.bf16 %v4318_v4, %v4312_v7 }
 0x301   :  { %2188 = vst [vmem:[%s4606_s4 + $0x40] sm:$0xff] %v2064_v50   ;;  %2189 = vst [vmem:[%s4606_s4 + $0x48] sm:$0xff] %v2069_v60   ;;  %v2129_v1 = vpack.c.bf16 %v4330_v18, %v4324_v6  ;;  %v2134_v43 = vpack.c.bf16 %v4342_v45, %v4336_v54  ;;  %v2139_v17 = vpack.c.bf16 %v4354_v38, %v4348_v16 }
 0x302   :  { %2190 = vst [vmem:[%s4606_s4 + $0x50] sm:$0xff] %v2074_v61   ;;  %2191 = vst [vmem:[%s4606_s4 + $0x58] sm:$0xff] %v2079_v34   ;;  %v2144_v21 = vpack.c.bf16 %v4366_v20, %v4360_v14  ;;  %v2149_v26 = vpack.c.bf16 %v4378_v46, %v4372_v11  ;;  %v2154_v58 = vpack.c.bf16 %v4390_v25, %v4384_v8  ;;  %v4953_v51 = vld [vmem:[#allocation19_spill] sm:$0xff]  ;;  %v4954_v42 = vld [vmem:[#allocation10_spill] sm:$0xff] }
 0x303   :  { %2192 = vst [vmem:[%s4606_s4 + $0x60] sm:$0xff] %v2084_v52   ;;  %2193 = vst [vmem:[%s4606_s4 + $0x68] sm:$0xff] %v2089_v30   ;;  %v2159_v36 = vpack.c.bf16 %v4400_v33, %v4395_v32  ;;  %v2164_v41 = vpack.c.bf16 %v4410_v62, %v4405_v39  ;;  %v2169_v5 = vpack.c.bf16 %v4420_v37, %v4415_v28 }
 0x304   :  { %2194 = vst [vmem:[%s4606_s4 + $0x70] sm:$0xff] %v2094_v59   ;;  %2195 = vst [vmem:[%s4606_s4 + $0x78] sm:$0xff] %v2099_v24   ;;  %v2174_v56 = vpack.c.bf16 %v4953_v51, %v4425_v44  ;;  %v2179_v2 = vpack.c.bf16 %v4440_v40, %v4954_v42 }
 0x305   :  { %2196 = vst [vmem:[%s4606_s4 + $0x80] sm:$0xff] %v2104_v49   ;;  %2197 = vst [vmem:[%s4606_s4 + $0x88] sm:$0xff] %v2109_v19  }
 0x306   :  { %2198 = vst [vmem:[%s4606_s4 + $0x90] sm:$0xff] %v2114_v57   ;;  %2199 = vst [vmem:[%s4606_s4 + $0x98] sm:$0xff] %v2119_v9  }
 0x307   :  { %2200 = vst [vmem:[%s4606_s4 + $0xa0] sm:$0xff] %v2124_v3   ;;  %2201 = vst [vmem:[%s4606_s4 + $0xa8] sm:$0xff] %v2129_v1  }
 0x308   :  { %2202 = vst [vmem:[%s4606_s4 + $0xb0] sm:$0xff] %v2134_v43   ;;  %2203 = vst [vmem:[%s4606_s4 + $0xb8] sm:$0xff] %v2139_v17  }
 0x309   :  { %2204 = vst [vmem:[%s4606_s4 + $0xc0] sm:$0xff] %v2144_v21   ;;  %2205 = vst [vmem:[%s4606_s4 + $0xc8] sm:$0xff] %v2149_v26  }
 0x30a   :  { %2206 = vst [vmem:[%s4606_s4 + $0xd0] sm:$0xff] %v2154_v58   ;;  %2207 = vst [vmem:[%s4606_s4 + $0xd8] sm:$0xff] %v2159_v36  }
 0x30b   :  { %2208 = vst [vmem:[%s4606_s4 + $0xe0] sm:$0xff] %v2164_v41   ;;  %2209 = vst [vmem:[%s4606_s4 + $0xe8] sm:$0xff] %v2169_v5  }
 0x30c   :  { %2210 = vst [vmem:[%s4606_s4 + $0xf0] sm:$0xff] %v2174_v56   ;;  %2211 = vst [vmem:[%s4606_s4 + $0xf8] sm:$0xff] %v2179_v2  }

// kernel: mbs_discriminator_forward.6
= control target key start
LH: loop header
LB: loop body
LE: loop exit
PB: predicated region body
PF: predicated region fallthrough
CT: control target
= control target key end

     0   :  { %s1590_s1 = inlined_call_operand.vmem [shape: bf16[512,128], index: 1, kind: input, shape index: {}]   ;;  %s1591_s0 = inlined_call_operand.vmem [shape: bf16[128,512], index: 0, kind: input, shape index: {}]   ;;  %s1592_s2 = inlined_call_operand.vmem [shape: f32[1,128], index: 2, kind: input, shape index: {}]   ;;  %s1593_s3 = inlined_call_operand.vmem [shape: f32[1,128], index: 3, kind: input, shape index: {}]   ;;  %s1594_s4 = inlined_call_operand.vmem [shape: bf16[128,128], index: 4, kind: output, shape index: {}]  }
   0x1   :  { %v1205_v0 = vld [vmem:[%s1590_s1 + $0x40] sm:$0xff]   ;;  %v1209_v4 = vld [vmem:[%s1590_s1 + $0x48] sm:$0xff]   ;;  %v1213_v8 = vld [vmem:[%s1590_s1 + $0x50] sm:$0xff]  }
   0x2   :  { %v1206_v1 = vld [vmem:[%s1590_s1 + $0xc0] sm:$0xff]   ;;  %1077 = vmatprep.subr.bf16.mxu0 %v1205_v0  ;;  %v1210_v5 = vld [vmem:[%s1590_s1 + $0xc8] sm:$0xff]   ;;  %v1214_v9 = vld [vmem:[%s1590_s1 + $0xd0] sm:$0xff]  }
   0x3   :  { %v1207_v2 = vld [vmem:[%s1590_s1] sm:$0xff]   ;;  %1141 = vmatprep.subr.bf16.mxu1 %v1206_v1  ;;  %v1211_v6 = vld [vmem:[%s1590_s1 + $0x8] sm:$0xff]   ;;  %v1215_v10 = vld [vmem:[%s1590_s1 + $0x10] sm:$0xff]  }
   0x4   :  { %v1208_v3 = vld [vmem:[%s1590_s1 + $0x80] sm:$0xff]   ;;  %1078 = vmatpush3.bf16.msra.mxu0 %v1207_v2  ;;  %v1212_v7 = vld [vmem:[%s1590_s1 + $0x88] sm:$0xff]   ;;  %v1216_v11 = vld [vmem:[%s1590_s1 + $0x90] sm:$0xff]  }
   0x5   :  { %1142 = vmatpush3.bf16.msra.mxu1 %v1208_v3  ;;  %1079 = vmatprep.subr.bf16.mxu0 %v1209_v4  ;;  %v1217_v12 = vld [vmem:[%s1590_s1 + $0x58] sm:$0xff]   ;;  %v1221_v16 = vld [vmem:[%s1590_s1 + $0x60] sm:$0xff]   ;;  %v1225_v20 = vld [vmem:[%s1590_s1 + $0x68] sm:$0xff]  }
   0x6   :  { %1143 = vmatprep.subr.bf16.mxu1 %v1210_v5  ;;  %v1218_v13 = vld [vmem:[%s1590_s1 + $0xd8] sm:$0xff]   ;;  %v1222_v17 = vld [vmem:[%s1590_s1 + $0xe0] sm:$0xff]   ;;  %v1226_v21 = vld [vmem:[%s1590_s1 + $0xe8] sm:$0xff]  }
   0x7   :  { %v1219_v14 = vld [vmem:[%s1590_s1 + $0x18] sm:$0xff]   ;;  %v1223_v18 = vld [vmem:[%s1590_s1 + $0x20] sm:$0xff]   ;;  %v1227_v22 = vld [vmem:[%s1590_s1 + $0x28] sm:$0xff]  }
   0x8   :  { %1080 = vmatpush3.bf16.msra.mxu0 %v1211_v6  ;;  %v1220_v15 = vld [vmem:[%s1590_s1 + $0x98] sm:$0xff]   ;;  %v1224_v19 = vld [vmem:[%s1590_s1 + $0xa0] sm:$0xff]   ;;  %v1228_v23 = vld [vmem:[%s1590_s1 + $0xa8] sm:$0xff]  }
   0x9   :  { %1144 = vmatpush3.bf16.msra.mxu1 %v1212_v7  ;;  %1081 = vmatprep.subr.bf16.mxu0 %v1213_v8  ;;  %v1229_v24 = vld [vmem:[%s1590_s1 + $0x70] sm:$0xff]   ;;  %v1233_v28 = vld [vmem:[%s1590_s1 + $0x78] sm:$0xff]  }
   0xa   :  { %1145 = vmatprep.subr.bf16.mxu1 %v1214_v9  ;;  %v1230_v25 = vld [vmem:[%s1590_s1 + $0xf0] sm:$0xff]   ;;  %v1234_v29 = vld [vmem:[%s1590_s1 + $0xf8] sm:$0xff]  }
   0xb   :  { %v1231_v26 = vld [vmem:[%s1590_s1 + $0x30] sm:$0xff]   ;;  %v1235_v30 = vld [vmem:[%s1590_s1 + $0x38] sm:$0xff]  }
   0xc   :  { %1082 = vmatpush3.bf16.msra.mxu0 %v1215_v10  ;;  %v1232_v27 = vld [vmem:[%s1590_s1 + $0xb0] sm:$0xff]   ;;  %v1236_v31 = vld [vmem:[%s1590_s1 + $0xb8] sm:$0xff]  }
   0xd   :  { %1146 = vmatpush3.bf16.msra.mxu1 %v1216_v11  ;;  %1083 = vmatprep.subr.bf16.mxu0 %v1217_v12  ;;  %v1237_v32 = vld [vmem:[%s1591_s0] ss:$16 sps:$4 sm:$0xff]   ;;  %v1239_v33 = vld [vmem:[%s1591_s0 + $0x4] ss:$16 sps:$4 sm:$0xff]   ;;  %v1240_v34 = vld [vmem:[%s1591_s0 + $0x8] ss:$16 sps:$4 sm:$0xff]  }
   0xe   :  { %1147 = vmatprep.subr.bf16.mxu1 %v1218_v13  ;;  %v1242_v35 = vld [vmem:[%s1591_s0 + $0xc] ss:$16 sps:$4 sm:$0xff]   ;;  %498 = vmatprep.mubr.bf16.mxu0 %v1239_v33  ;;  %v1243_v36 = vld [vmem:[%s1591_s0 + $0x24] ss:$16 sps:$4 sm:$0xff]   ;;  %v1247_v38 = vld [vmem:[%s1591_s0 + $0x20] ss:$16 sps:$4 sm:$0xff]  }
   0xf   :  { %595 = vmatprep.mubr.bf16.mxu1 %v1242_v35  ;;  %v1245_v37 = vld [vmem:[%s1591_s0 + $0x2c] ss:$16 sps:$4 sm:$0xff]   ;;  %v1248_v39 = vld [vmem:[%s1591_s0 + $0x28] ss:$16 sps:$4 sm:$0xff]   ;;  %v1249_v40 = vld [vmem:[%s1591_s0 + $0x44] ss:$16 sps:$4 sm:$0xff]  }
  0x10   :  { %1084 = vmatpush3.bf16.msra.mxu0 %v1219_v14  ;;  %v1251_v41 = vld [vmem:[%s1591_s0 + $0x4c] ss:$16 sps:$4 sm:$0xff]   ;;  %v1253_v42 = vld [vmem:[%s1591_s0 + $0x40] ss:$16 sps:$4 sm:$0xff]   ;;  %v1254_v43 = vld [vmem:[%s1591_s0 + $0x48] ss:$16 sps:$4 sm:$0xff]  }
  0x11   :  { %1148 = vmatpush3.bf16.msra.mxu1 %v1220_v15  ;;  %1085 = vmatprep.subr.bf16.mxu0 %v1221_v16  ;;  %v1255_v44 = vld [vmem:[%s1591_s0 + $0x64] ss:$16 sps:$4 sm:$0xff]   ;;  %v1257_v45 = vld [vmem:[%s1591_s0 + $0x6c] ss:$16 sps:$4 sm:$0xff]   ;;  %v1259_v46 = vld [vmem:[%s1591_s0 + $0x60] ss:$16 sps:$4 sm:$0xff]  }
  0x12   :  { %1149 = vmatprep.subr.bf16.mxu1 %v1222_v17  ;;  %v1260_v47 = vld [vmem:[%s1591_s0 + $0x68] ss:$16 sps:$4 sm:$0xff]   ;;  %v1261_v48 = vld [vmem:[%s1591_s0 + $0x84] ss:$16 sps:$4 sm:$0xff]   ;;  %v1263_v49 = vld [vmem:[%s1591_s0 + $0x8c] ss:$16 sps:$4 sm:$0xff]  }
  0x13   :  { %v1265_v50 = vld [vmem:[%s1591_s0 + $0x80] ss:$16 sps:$4 sm:$0xff]   ;;  %v1266_v51 = vld [vmem:[%s1591_s0 + $0x88] ss:$16 sps:$4 sm:$0xff]   ;;  %v1267_v52 = vld [vmem:[%s1591_s0 + $0xa4] ss:$16 sps:$4 sm:$0xff]  }
  0x14   :  { %1086 = vmatpush3.bf16.msra.mxu0 %v1223_v18  ;;  %v1269_v53 = vld [vmem:[%s1591_s0 + $0xac] ss:$16 sps:$4 sm:$0xff]   ;;  %v1271_v54 = vld [vmem:[%s1591_s0 + $0xa0] ss:$16 sps:$4 sm:$0xff]   ;;  %v1272_v55 = vld [vmem:[%s1591_s0 + $0xa8] ss:$16 sps:$4 sm:$0xff]  }
  0x15   :  { %1150 = vmatpush3.bf16.msra.mxu1 %v1224_v19  ;;  %1087 = vmatprep.subr.bf16.mxu0 %v1225_v20  ;;  %v1273_v56 = vld [vmem:[%s1591_s0 + $0xc4] ss:$16 sps:$4 sm:$0xff]   ;;  %v1275_v57 = vld [vmem:[%s1591_s0 + $0xcc] ss:$16 sps:$4 sm:$0xff]   ;;  %v1277_v58 = vld [vmem:[%s1591_s0 + $0xc0] ss:$16 sps:$4 sm:$0xff]  }
  0x16   :  { %1151 = vmatprep.subr.bf16.mxu1 %v1226_v21  ;;  %v1278_v59 = vld [vmem:[%s1591_s0 + $0xc8] ss:$16 sps:$4 sm:$0xff]   ;;  %v1279_v60 = vld [vmem:[%s1591_s0 + $0xe4] ss:$16 sps:$4 sm:$0xff]   ;;  %v1281_v61 = vld [vmem:[%s1591_s0 + $0xec] ss:$16 sps:$4 sm:$0xff]  }
  0x17   :  { %v1283_v62 = vld [vmem:[%s1591_s0 + $0xe0] ss:$16 sps:$4 sm:$0xff]   ;;  %v1284_v63 = vld [vmem:[%s1591_s0 + $0xe8] ss:$16 sps:$4 sm:$0xff]  }
  0x18   :  { %1088 = vmatpush3.bf16.msra.mxu0 %v1227_v22 }
  0x19   :  { %1152 = vmatpush3.bf16.msra.mxu1 %v1228_v23  ;;  %1089 = vmatprep.subr.bf16.mxu0 %v1229_v24 }
  0x1a   :  { %1153 = vmatprep.subr.bf16.mxu1 %v1230_v25 }
  0x1c   :  { %1090 = vmatpush3.bf16.msra.mxu0 %v1231_v26 }
  0x1d   :  { %1154 = vmatpush3.bf16.msra.mxu1 %v1232_v27  ;;  %1091 = vmatprep.subr.bf16.mxu0 %v1233_v28 }
  0x1e   :  { %1155 = vmatprep.subr.bf16.mxu1 %v1234_v29 }
  0x20   :  { %1092 = vmatpush3.bf16.msra.mxu0 %v1235_v30 }
  0x21   :  { %1156 = vmatpush3.bf16.msra.mxu1 %v1236_v31 }
  0x23   :  { %499 = vmatmul.mubr.bf16.vlgmr.msra.gmra.mrb[0].mxu0 %v1237_v32 }
  0x24   :  { %596 = vmatmul.mubr.bf16.vlgmr.msra.gmra.mrb[0].mxu1 %v1240_v34  ;;  %506 = vmatprep.mubr.bf16.mxu0 %v1243_v36 }
  0x25   :  { %603 = vmatprep.mubr.bf16.mxu1 %v1245_v37 }
  0x2b   :  { %507 = vmatmul.mubr.bf16.gmra.mrb[4].mxu0 %v1247_v38 }
  0x2c   :  { %604 = vmatmul.mubr.bf16.gmra.mrb[4].mxu1 %v1248_v39  ;;  %514 = vmatprep.mubr.bf16.mxu0 %v1249_v40 }
  0x2d   :  { %611 = vmatprep.mubr.bf16.mxu1 %v1251_v41 }
  0x33   :  { %515 = vmatmul.mubr.bf16.gmra.mrb[8].mxu0 %v1253_v42 }
  0x34   :  { %612 = vmatmul.mubr.bf16.gmra.mrb[8].mxu1 %v1254_v43  ;;  %522 = vmatprep.mubr.bf16.mxu0 %v1255_v44 }
  0x35   :  { %619 = vmatprep.mubr.bf16.mxu1 %v1257_v45 }
  0x3b   :  { %523 = vmatmul.mubr.bf16.gmra.mrb[12].mxu0 %v1259_v46 }
  0x3c   :  { %620 = vmatmul.mubr.bf16.gmra.mrb[12].mxu1 %v1260_v47  ;;  %530 = vmatprep.mubr.bf16.mxu0 %v1261_v48 }
  0x3d   :  { %627 = vmatprep.mubr.bf16.mxu1 %v1263_v49 }
  0x43   :  { %531 = vmatmul.mubr.bf16.gmra.mrb[16].mxu0 %v1265_v50 }
  0x44   :  { %628 = vmatmul.mubr.bf16.gmra.mrb[16].mxu1 %v1266_v51  ;;  %538 = vmatprep.mubr.bf16.mxu0 %v1267_v52 }
  0x45   :  { %635 = vmatprep.mubr.bf16.mxu1 %v1269_v53 }
  0x4b   :  { %539 = vmatmul.mubr.bf16.gmra.mrb[20].mxu0 %v1271_v54 }
  0x4c   :  { %636 = vmatmul.mubr.bf16.gmra.mrb[20].mxu1 %v1272_v55  ;;  %546 = vmatprep.mubr.bf16.mxu0 %v1273_v56 }
  0x4d   :  { %643 = vmatprep.mubr.bf16.mxu1 %v1275_v57 }
  0x53   :  { %547 = vmatmul.mubr.bf16.gmra.mrb[24].mxu0 %v1277_v58 }
  0x54   :  { %644 = vmatmul.mubr.bf16.gmra.mrb[24].mxu1 %v1278_v59  ;;  %554 = vmatprep.mubr.bf16.mxu0 %v1279_v60 }
  0x55   :  { %651 = vmatprep.mubr.bf16.mxu1 %v1281_v61 }
  0x5b   :  { %555 = vmatmul.mubr.bf16.gmra.mrb[28].mxu0 %v1283_v62 }
  0x5c   :  { %652 = vmatmul.mubr.bf16.gmra.mrb[28].mxu1 %v1284_v63 }
  0xf6   :  { %v1093_v0 = vpop.f32.mrb[0].mxu0 }
  0xf7   :  { %v1157_v1 = vpop.f32.mrb[0].mxu1  ;;  %v1094_v2 = vpop.f32.mrb[1].mxu0 }
  0xf8   :  { %v1095_v3 = vadd.f32 %v1094_v2, %v1093_v0  ;;  %v1158_v4 = vpop.f32.mrb[1].mxu1  ;;  %v1096_v5 = vpop.f32.mrb[2].mxu0 }
  0xf9   :  { %v1159_v6 = vadd.f32 %v1158_v4, %v1157_v1  ;;  %v1160_v7 = vpop.f32.mrb[2].mxu1  ;;  %v1097_v8 = vpop.f32.mrb[3].mxu0 }
  0xfa   :  { %v1098_v9 = vadd.f32 %v1097_v8, %v1096_v5  ;;  %v1161_v10 = vpop.f32.mrb[3].mxu1 }
  0xfb   :  { %v1504_v11 = vadd.f32 %v1159_v6, %v1095_v3  ;;  %v1162_v12 = vadd.f32 %v1161_v10, %v1160_v7 }
  0xfd   :  { %v1506_v13 = vadd.f32 %v1162_v12, %v1098_v9 }
  0xfe   :  { %v1099_v14 = vpop.f32.mrb[4].mxu0 }
  0xff   :  { %v662_v15 = vadd.f32 %v1506_v13, %v1504_v11  ;;  %v1163_v16 = vpop.f32.mrb[4].mxu1  ;;  %v1100_v17 = vpop.f32.mrb[5].mxu0 }
 0x100   :  { %v1101_v18 = vadd.f32 %v1100_v17, %v1099_v14  ;;  %v1164_v19 = vpop.f32.mrb[5].mxu1  ;;  %v1102_v20 = vpop.f32.mrb[6].mxu0 }
 0x101   :  { %v1165_v21 = vadd.f32 %v1164_v19, %v1163_v16  ;;  %v1166_v22 = vpop.f32.mrb[6].mxu1  ;;  %v1103_v23 = vpop.f32.mrb[7].mxu0 }
 0x102   :  { %v1104_v24 = vadd.f32 %v1103_v23, %v1102_v20  ;;  %v1167_v25 = vpop.f32.mrb[7].mxu1 }
 0x103   :  { %v1510_v26 = vadd.f32 %v1165_v21, %v1101_v18  ;;  %v1168_v27 = vadd.f32 %v1167_v25, %v1166_v22 }
 0x105   :  { %v663_v28 = vadd.f32 %v662_v15, %v1510_v26  ;;  %v1513_v29 = vadd.f32 %v1168_v27, %v1104_v24 }
 0x106   :  { %v1105_v30 = vpop.f32.mrb[8].mxu0 }
 0x107   :  { %v664_v31 = vadd.f32 %v663_v28, %v1513_v29  ;;  %v1169_v32 = vpop.f32.mrb[8].mxu1  ;;  %v1106_v33 = vpop.f32.mrb[9].mxu0 }
 0x108   :  { %v1107_v34 = vadd.f32 %v1106_v33, %v1105_v30  ;;  %v1170_v35 = vpop.f32.mrb[9].mxu1  ;;  %v1108_v36 = vpop.f32.mrb[10].mxu0 }
 0x109   :  { %v1171_v37 = vadd.f32 %v1170_v35, %v1169_v32  ;;  %v1172_v38 = vpop.f32.mrb[10].mxu1  ;;  %v1109_v39 = vpop.f32.mrb[11].mxu0 }
 0x10a   :  { %v1110_v40 = vadd.f32 %v1109_v39, %v1108_v36  ;;  %v1173_v41 = vpop.f32.mrb[11].mxu1 }
 0x10b   :  { %v1516_v42 = vadd.f32 %v1171_v37, %v1107_v34  ;;  %v1174_v43 = vadd.f32 %v1173_v41, %v1172_v38 }
 0x10d   :  { %v665_v44 = vadd.f32 %v664_v31, %v1516_v42  ;;  %v1519_v45 = vadd.f32 %v1174_v43, %v1110_v40 }
 0x10e   :  { %v1111_v46 = vpop.f32.mrb[12].mxu0 }
 0x10f   :  { %v666_v47 = vadd.f32 %v665_v44, %v1519_v45  ;;  %v1175_v48 = vpop.f32.mrb[12].mxu1  ;;  %v1112_v49 = vpop.f32.mrb[13].mxu0 }
 0x110   :  { %v1113_v50 = vadd.f32 %v1112_v49, %v1111_v46  ;;  %v1176_v51 = vpop.f32.mrb[13].mxu1  ;;  %v1114_v52 = vpop.f32.mrb[14].mxu0 }
 0x111   :  { %v1177_v53 = vadd.f32 %v1176_v51, %v1175_v48  ;;  %v1178_v54 = vpop.f32.mrb[14].mxu1  ;;  %v1115_v55 = vpop.f32.mrb[15].mxu0 }
 0x112   :  { %v1116_v56 = vadd.f32 %v1115_v55, %v1114_v52  ;;  %v1179_v57 = vpop.f32.mrb[15].mxu1 }
 0x113   :  { %v1522_v58 = vadd.f32 %v1177_v53, %v1113_v50  ;;  %v1180_v59 = vadd.f32 %v1179_v57, %v1178_v54 }
 0x115   :  { %v667_v60 = vadd.f32 %v666_v47, %v1522_v58  ;;  %v1525_v61 = vadd.f32 %v1180_v59, %v1116_v56 }
 0x116   :  { %v1117_v62 = vpop.f32.mrb[16].mxu0 }
 0x117   :  { %v668_v63 = vadd.f32 %v667_v60, %v1525_v61  ;;  %v1181_v0 = vpop.f32.mrb[16].mxu1  ;;  %v1118_v1 = vpop.f32.mrb[17].mxu0 }
 0x118   :  { %v1119_v2 = vadd.f32 %v1118_v1, %v1117_v62  ;;  %v1182_v3 = vpop.f32.mrb[17].mxu1  ;;  %v1120_v4 = vpop.f32.mrb[18].mxu0 }
 0x119   :  { %v1183_v5 = vadd.f32 %v1182_v3, %v1181_v0  ;;  %v1184_v6 = vpop.f32.mrb[18].mxu1  ;;  %v1121_v7 = vpop.f32.mrb[19].mxu0 }
 0x11a   :  { %v1122_v8 = vadd.f32 %v1121_v7, %v1120_v4  ;;  %v1185_v9 = vpop.f32.mrb[19].mxu1 }
 0x11b   :  { %v1528_v10 = vadd.f32 %v1183_v5, %v1119_v2  ;;  %v1186_v12 = vadd.f32 %v1185_v9, %v1184_v6 }
 0x11d   :  { %v669_v14 = vadd.f32 %v668_v63, %v1528_v10  ;;  %v1531_v15 = vadd.f32 %v1186_v12, %v1122_v8 }
 0x11e   :  { %v1123_v16 = vpop.f32.mrb[20].mxu0 }
 0x11f   :  { %v670_v17 = vadd.f32 %v669_v14, %v1531_v15  ;;  %v1187_v18 = vpop.f32.mrb[20].mxu1  ;;  %v1124_v19 = vpop.f32.mrb[21].mxu0 }
 0x120   :  { %v1125_v20 = vadd.f32 %v1124_v19, %v1123_v16  ;;  %v1188_v21 = vpop.f32.mrb[21].mxu1  ;;  %v1126_v22 = vpop.f32.mrb[22].mxu0 }
 0x121   :  { %v1189_v23 = vadd.f32 %v1188_v21, %v1187_v18  ;;  %v1190_v24 = vpop.f32.mrb[22].mxu1  ;;  %v1127_v25 = vpop.f32.mrb[23].mxu0 }
 0x122   :  { %v1128_v27 = vadd.f32 %v1127_v25, %v1126_v22  ;;  %v1191_v28 = vpop.f32.mrb[23].mxu1 }
 0x123   :  { %v638_v30 = vadd.f32 %v1189_v23, %v1125_v20  ;;  %v1192_v31 = vadd.f32 %v1191_v28, %v1190_v24 }
 0x125   :  { %v671_v32 = vadd.f32 %v670_v17, %v638_v30  ;;  %v641_v33 = vadd.f32 %v1192_v31, %v1128_v27 }
 0x126   :  { %v1129_v34 = vpop.f32.mrb[24].mxu0 }
 0x127   :  { %v672_v35 = vadd.f32 %v671_v32, %v641_v33  ;;  %v1193_v36 = vpop.f32.mrb[24].mxu1  ;;  %v1130_v37 = vpop.f32.mrb[25].mxu0 }
 0x128   :  { %v1131_v38 = vadd.f32 %v1130_v37, %v1129_v34  ;;  %v1194_v39 = vpop.f32.mrb[25].mxu1  ;;  %v1132_v40 = vpop.f32.mrb[26].mxu0 }
 0x129   :  { %v1195_v41 = vadd.f32 %v1194_v39, %v1193_v36  ;;  %v1196_v43 = vpop.f32.mrb[26].mxu1  ;;  %v1133_v44 = vpop.f32.mrb[27].mxu0 }
 0x12a   :  { %v1134_v46 = vadd.f32 %v1133_v44, %v1132_v40  ;;  %v1197_v47 = vpop.f32.mrb[27].mxu1 }
 0x12b   :  { %v646_v48 = vadd.f32 %v1195_v41, %v1131_v38  ;;  %v1198_v49 = vadd.f32 %v1197_v47, %v1196_v43 }
 0x12d   :  { %v673_v50 = vadd.f32 %v672_v35, %v646_v48  ;;  %v649_v51 = vadd.f32 %v1198_v49, %v1134_v46 }
 0x12e   :  { %v1135_v52 = vpop.f32.mrb[28].mxu0 }
 0x12f   :  { %v674_v53 = vadd.f32 %v673_v50, %v649_v51  ;;  %v1199_v54 = vpop.f32.mrb[28].mxu1  ;;  %v1136_v55 = vpop.f32.mrb[29].mxu0 }
 0x130   :  { %v1137_v56 = vadd.f32 %v1136_v55, %v1135_v52  ;;  %v1200_v57 = vpop.f32.mrb[29].mxu1  ;;  %v1138_v59 = vpop.f32.mrb[30].mxu0 }
 0x131   :  { %v1201_v60 = vadd.f32 %v1200_v57, %v1199_v54  ;;  %v1202_v62 = vpop.f32.mrb[30].mxu1  ;;  %v1139_v63 = vpop.f32.mrb[31].mxu0 }
 0x132   :  { %v1140_v0 = vadd.f32 %v1139_v63, %v1138_v59  ;;  %v1203_v1 = vpop.f32.mrb[31].mxu1 }
 0x133   :  { %v654_v2 = vadd.f32 %v1201_v60, %v1137_v56  ;;  %v1204_v3 = vadd.f32 %v1203_v1, %v1202_v62 }
 0x135   :  { %v675_v4 = vadd.f32 %v674_v53, %v654_v2  ;;  %v657_v5 = vadd.f32 %v1204_v3, %v1140_v0 }
 0x137   :  { %v676_v6 = vadd.f32 %v675_v4, %v657_v5 }
 0x139   :  { %v677_v7 = vrot.slane %v676_v6, 4 }
 0x13b   :  { %v678_v8 = vadd.f32 %v677_v7, %v676_v6 }
 0x13d   :  { %v679_v9 = vrot.slane %v678_v8, 2 }
 0x13f   :  { %v680_v12 = vadd.f32 %v679_v9, %v678_v8 }
 0x141   :  { %v681_v14 = vrot.slane %v680_v12, 1 }
 0x143   :  { %v682_v16 = vadd.f32 %v681_v14, %v680_v12  ;;  %v996_v12 = vld [vmem:[%s1592_s2] ss:$0 sm:$0xff] }
 0x145   :  { %v683_v17 = vmul.f32 0.0078125, %v682_v16 }
 0x147   :  { %v684_v18 = vsub.f32 %v1504_v11, %v683_v17  ;;  %v685_v19 = vsub.f32 %v1506_v13, %v683_v17  ;;  %v686_v20 = vsub.f32 %v1510_v26, %v683_v17  ;;  %v687_v21 = vsub.f32 %v1513_v29, %v683_v17 }
 0x148   :  { %v688_v22 = vsub.f32 %v1516_v42, %v683_v17  ;;  %v689_v23 = vsub.f32 %v1519_v45, %v683_v17  ;;  %v690_v24 = vsub.f32 %v1522_v58, %v683_v17  ;;  %v691_v25 = vsub.f32 %v1525_v61, %v683_v17 }
 0x149   :  { %v692_v27 = vsub.f32 %v1528_v10, %v683_v17  ;;  %v693_v28 = vsub.f32 %v1531_v15, %v683_v17  ;;  %v694_v31 = vsub.f32 %v638_v30, %v683_v17  ;;  %v695_v11 = vsub.f32 %v641_v33, %v683_v17 }
 0x14a   :  { %v696_v32 = vsub.f32 %v646_v48, %v683_v17  ;;  %v697_v13 = vsub.f32 %v649_v51, %v683_v17  ;;  %v698_v34 = vsub.f32 %v654_v2, %v683_v17  ;;  %v699_v26 = vsub.f32 %v657_v5, %v683_v17 }
 0x14b   :  { %v700_v35 = vmul.f32 %v684_v18, %v684_v18  ;;  %v701_v29 = vmul.f32 %v685_v19, %v685_v19  ;;  %v702_v36 = vmul.f32 %v686_v20, %v686_v20  ;;  %v703_v37 = vmul.f32 %v687_v21, %v687_v21 }
 0x14c   :  { %v704_v38 = vmul.f32 %v688_v22, %v688_v22  ;;  %v705_v39 = vmul.f32 %v689_v23, %v689_v23  ;;  %v706_v40 = vmul.f32 %v690_v24, %v690_v24  ;;  %v707_v41 = vmul.f32 %v691_v25, %v691_v25 }
 0x14d   :  { %v716_v42 = vadd.f32 %v701_v29, %v700_v35  ;;  %v708_v30 = vmul.f32 %v692_v27, %v692_v27  ;;  %v709_v43 = vmul.f32 %v693_v28, %v693_v28  ;;  %v710_v46 = vmul.f32 %v694_v31, %v694_v31 }
 0x14e   :  { %v711_v48 = vmul.f32 %v695_v11, %v695_v11  ;;  %v712_v50 = vmul.f32 %v696_v32, %v696_v32  ;;  %v713_v52 = vmul.f32 %v697_v13, %v697_v13  ;;  %v714_v54 = vmul.f32 %v698_v34, %v698_v34 }
 0x14f   :  { %v717_v45 = vadd.f32 %v716_v42, %v702_v36  ;;  %v715_v56 = vmul.f32 %v699_v26, %v699_v26 }
 0x151   :  { %v718_v58 = vadd.f32 %v717_v45, %v703_v37 }
 0x153   :  { %v719_v61 = vadd.f32 %v718_v58, %v704_v38 }
 0x155   :  { %v720_v10 = vadd.f32 %v719_v61, %v705_v39  ;;  %v997_v61 = vld [vmem:[%s1593_s3] ss:$0 sm:$0xff] }
 0x157   :  { %v721_v15 = vadd.f32 %v720_v10, %v706_v40 }
 0x159   :  { %v722_v33 = vadd.f32 %v721_v15, %v707_v41 }
 0x15b   :  { %v723_v44 = vadd.f32 %v722_v33, %v708_v30 }
 0x15d   :  { %v724_v47 = vadd.f32 %v723_v44, %v709_v43 }
 0x15f   :  { %v725_v49 = vadd.f32 %v724_v47, %v710_v46 }
 0x161   :  { %v726_v51 = vadd.f32 %v725_v49, %v711_v48 }
 0x163   :  { %v727_v53 = vadd.f32 %v726_v51, %v712_v50 }
 0x165   :  { %v728_v55 = vadd.f32 %v727_v53, %v713_v52 }
 0x167   :  { %v729_v57 = vadd.f32 %v728_v55, %v714_v54 }
 0x169   :  { %v730_v59 = vadd.f32 %v729_v57, %v715_v56 }
 0x16b   :  { %v731_v60 = vrot.slane %v730_v59, 4 }
 0x16d   :  { %v732_v62 = vadd.f32 %v731_v60, %v730_v59 }
 0x16f   :  { %v733_v63 = vrot.slane %v732_v62, 2 }
 0x171   :  { %v734_v0 = vadd.f32 %v733_v63, %v732_v62 }
 0x173   :  { %v735_v1 = vrot.slane %v734_v0, 1 }
 0x175   :  { %v736_v2 = vadd.f32 %v735_v1, %v734_v0 }
 0x177   :  { %v737_v3 = vmul.f32 0.0078125, %v736_v2 }
 0x179   :  { %v738_v4 = vadd.f32 1e-05, %v737_v3 }
 0x17b   :  { %1285 = vrsqrt.f32 %v738_v4 }
 0x185   :  { %v1286_v5 = vpop.eup %1285 }
 0x186   :  { %v740_v6 = vmul.f32 %v1286_v5, %v684_v18  ;;  %v741_v7 = vmul.f32 %v1286_v5, %v685_v19  ;;  %v742_v8 = vmul.f32 %v1286_v5, %v686_v20  ;;  %v743_v9 = vmul.f32 %v1286_v5, %v687_v21 }
 0x187   :  { %v744_v14 = vmul.f32 %v1286_v5, %v688_v22  ;;  %v745_v16 = vmul.f32 %v1286_v5, %v689_v23  ;;  %v746_v17 = vmul.f32 %v1286_v5, %v690_v24  ;;  %v747_v35 = vmul.f32 %v1286_v5, %v691_v25 }
 0x188   :  { %v748_v29 = vmul.f32 %v1286_v5, %v692_v27  ;;  %v749_v36 = vmul.f32 %v1286_v5, %v693_v28  ;;  %v750_v42 = vmul.f32 %v1286_v5, %v694_v31  ;;  %v751_v37 = vmul.f32 %v1286_v5, %v695_v11 }
 0x189   :  { %v752_v45 = vmul.f32 %v1286_v5, %v696_v32  ;;  %v753_v38 = vmul.f32 %v1286_v5, %v697_v13  ;;  %v754_v58 = vmul.f32 %v1286_v5, %v698_v34  ;;  %v755_v39 = vmul.f32 %v1286_v5, %v699_v26 }
 0x18a   :  { %v762_v18 = vmul.f32 %v996_v12, %v740_v6  ;;  %v763_v19 = vmul.f32 %v996_v12, %v741_v7  ;;  %v764_v20 = vmul.f32 %v996_v12, %v742_v8  ;;  %v765_v21 = vmul.f32 %v996_v12, %v743_v9 }
 0x18b   :  { %v766_v22 = vmul.f32 %v996_v12, %v744_v14  ;;  %v767_v23 = vmul.f32 %v996_v12, %v745_v16  ;;  %v768_v24 = vmul.f32 %v996_v12, %v746_v17  ;;  %v769_v25 = vmul.f32 %v996_v12, %v747_v35 }
 0x18c   :  { %v770_v27 = vmul.f32 %v996_v12, %v748_v29  ;;  %v771_v28 = vmul.f32 %v996_v12, %v749_v36  ;;  %v772_v31 = vmul.f32 %v996_v12, %v750_v42  ;;  %v773_v11 = vmul.f32 %v996_v12, %v751_v37 }
 0x18d   :  { %v774_v32 = vmul.f32 %v996_v12, %v752_v45  ;;  %v775_v13 = vmul.f32 %v996_v12, %v753_v38  ;;  %v776_v34 = vmul.f32 %v996_v12, %v754_v58  ;;  %v777_v26 = vmul.f32 %v996_v12, %v755_v39 }
 0x18e   :  { %v784_v40 = vadd.f32 %v997_v61, %v762_v18  ;;  %v785_v10 = vadd.f32 %v997_v61, %v763_v19  ;;  %v786_v41 = vadd.f32 %v997_v61, %v764_v20  ;;  %v787_v15 = vadd.f32 %v997_v61, %v765_v21 }
 0x18f   :  { %v788_v30 = vadd.f32 %v997_v61, %v766_v22  ;;  %v789_v33 = vadd.f32 %v997_v61, %v767_v23  ;;  %v790_v43 = vadd.f32 %v997_v61, %v768_v24  ;;  %v791_v44 = vadd.f32 %v997_v61, %v769_v25 }
 0x190   :  { %v792_v46 = vadd.f32 %v997_v61, %v770_v27  ;;  %v793_v47 = vadd.f32 %v997_v61, %v771_v28  ;;  %v794_v48 = vadd.f32 %v997_v61, %v772_v31  ;;  %v795_v49 = vadd.f32 %v997_v61, %v773_v11 }
 0x191   :  { %v796_v50 = vadd.f32 %v997_v61, %v774_v32  ;;  %v797_v51 = vadd.f32 %v997_v61, %v775_v13  ;;  %v798_v52 = vadd.f32 %v997_v61, %v776_v34  ;;  %v799_v53 = vadd.f32 %v997_v61, %v777_v26 }
 0x192   :  { %vm800_vm0 = vcmp.ge.f32.partialorder %v784_v40, 0.0  ;;  %vm801_vm1 = vcmp.ge.f32.partialorder %v785_v10, 0.0  ;;  %vm802_vm2 = vcmp.ge.f32.partialorder %v786_v41, 0.0  ;;  %vm803_vm3 = vcmp.ge.f32.partialorder %v787_v15, 0.0 }
 0x193   :  { %vm804_vm4 = vcmp.ge.f32.partialorder %v788_v30, 0.0  ;;  %vm805_vm5 = vcmp.ge.f32.partialorder %v789_v33, 0.0  ;;  %vm806_vm6 = vcmp.ge.f32.partialorder %v790_v43, 0.0  ;;  %vm807_vm7 = vcmp.ge.f32.partialorder %v791_v44, 0.0 }
 0x194   :  { %vm808_vm8 = vcmp.ge.f32.partialorder %v792_v46, 0.0  ;;  %vm809_vm9 = vcmp.ge.f32.partialorder %v793_v47, 0.0  ;;  %vm810_vm10 = vcmp.ge.f32.partialorder %v794_v48, 0.0  ;;  %vm811_vm11 = vcmp.ge.f32.partialorder %v795_v49, 0.0 }
 0x195   :  { %vm812_vm12 = vcmp.ge.f32.partialorder %v796_v50, 0.0  ;;  %vm813_vm13 = vcmp.ge.f32.partialorder %v797_v51, 0.0  ;;  %vm814_vm14 = vcmp.ge.f32.partialorder %v798_v52, 0.0  ;;  %vm815_vm15 = vcmp.ge.f32.partialorder %v799_v53, 0.0 }
 0x196   :  { %v816_v54 = vmul.f32 0.01, %v784_v40  ;;  %v817_v55 = vmul.f32 0.01, %v785_v10  ;;  %v818_v56 = vmul.f32 0.01, %v786_v41 }
 0x197   :  { %v819_v57 = vmul.f32 0.01, %v787_v15  ;;  %v820_v59 = vmul.f32 0.01, %v788_v30  ;;  %v821_v60 = vmul.f32 0.01, %v789_v33 }
 0x198   :  { %v822_v62 = vmul.f32 0.01, %v790_v43  ;;  %v823_v63 = vmul.f32 0.01, %v791_v44  ;;  %v824_v0 = vmul.f32 0.01, %v792_v46  ;;  %v832_v1 = vsel %vm800_vm0, %v784_v40, %v816_v54 }
 0x199   :  { %v825_v2 = vmul.f32 0.01, %v793_v47  ;;  %v826_v3 = vmul.f32 0.01, %v794_v48  ;;  %v827_v4 = vmul.f32 0.01, %v795_v49  ;;  %v833_v5 = vsel %vm801_vm1, %v785_v10, %v817_v55 }
 0x19a   :  { %v828_v6 = vmul.f32 0.01, %v796_v50  ;;  %v829_v7 = vmul.f32 0.01, %v797_v51  ;;  %v830_v8 = vmul.f32 0.01, %v798_v52  ;;  %v834_v9 = vsel %vm802_vm2, %v786_v41, %v818_v56 }
 0x19b   :  { %v831_v12 = vmul.f32 0.01, %v799_v53  ;;  %v835_v14 = vsel %vm803_vm3, %v787_v15, %v819_v57  ;;  %v836_v16 = vsel %vm804_vm4, %v788_v30, %v820_v59  ;;  %v837_v17 = vsel %vm805_vm5, %v789_v33, %v821_v60 }
 0x19c   :  { %v838_v35 = vsel %vm806_vm6, %v790_v43, %v822_v62  ;;  %v839_v29 = vsel %vm807_vm7, %v791_v44, %v823_v63  ;;  %v840_v36 = vsel %vm808_vm8, %v792_v46, %v824_v0  ;;  %v841_v42 = vsel %vm809_vm9, %v793_v47, %v825_v2 }
 0x19d   :  { %v842_v37 = vsel %vm810_vm10, %v794_v48, %v826_v3  ;;  %v843_v45 = vsel %vm811_vm11, %v795_v49, %v827_v4  ;;  %v844_v38 = vsel %vm812_vm12, %v796_v50, %v828_v6  ;;  %v845_v58 = vsel %vm813_vm13, %v797_v51, %v829_v7 }
 0x19e   :  { %v846_v39 = vsel %vm814_vm14, %v798_v52, %v830_v8  ;;  %v847_v18 = vsel %vm815_vm15, %v799_v53, %v831_v12  ;;  %v1033_v19 = vpack.c.bf16 %v833_v5, %v832_v1  ;;  %v1038_v20 = vpack.c.bf16 %v835_v14, %v834_v9 }
 0x19f   :  { %v1043_v21 = vpack.c.bf16 %v837_v17, %v836_v16  ;;  %v1048_v61 = vpack.c.bf16 %v839_v29, %v838_v35  ;;  %v1053_v22 = vpack.c.bf16 %v841_v42, %v840_v36  ;;  %v1058_v23 = vpack.c.bf16 %v843_v45, %v842_v37 }
 0x1a0   :  { %1034 = vst [vmem:[%s1594_s4] sm:$0xff] %v1033_v19   ;;  %1070 = vst [vmem:[%s1594_s4 + $0x8] sm:$0xff] %v1038_v20   ;;  %v1063_v24 = vpack.c.bf16 %v845_v58, %v844_v38  ;;  %v1068_v25 = vpack.c.bf16 %v847_v18, %v846_v39 }
 0x1a1   :  { %1071 = vst [vmem:[%s1594_s4 + $0x10] sm:$0xff] %v1043_v21   ;;  %1072 = vst [vmem:[%s1594_s4 + $0x18] sm:$0xff] %v1048_v61  }
 0x1a2   :  { %1073 = vst [vmem:[%s1594_s4 + $0x20] sm:$0xff] %v1053_v22   ;;  %1074 = vst [vmem:[%s1594_s4 + $0x28] sm:$0xff] %v1058_v23  }
 0x1a3   :  { %1075 = vst [vmem:[%s1594_s4 + $0x30] sm:$0xff] %v1063_v24   ;;  %1076 = vst [vmem:[%s1594_s4 + $0x38] sm:$0xff] %v1068_v25  }

// kernel: mbs_discriminator_forward.7
= control target key start
LH: loop header
LB: loop body
LE: loop exit
PB: predicated region body
PF: predicated region fallthrough
CT: control target
= control target key end

     0   :  { %s2027_s1 = inlined_call_operand.vmem [shape: bf16[1024,128], index: 1, kind: input, shape index: {}]   ;;  %s2028_s0 = inlined_call_operand.vmem [shape: bf16[32,1024], index: 0, kind: input, shape index: {}]   ;;  %s2029_s6 = inlined_call_operand.vmem [shape: bf16[128,128], index: 6, kind: input, shape index: {}]   ;;  %s2030_s5 = inlined_call_operand.vmem [shape: bf16[128,128], index: 5, kind: input, shape index: {}]   ;;  %s2031_s4 = inlined_call_operand.vmem [shape: bf16[32,128], index: 4, kind: input, shape index: {}]   ;;  %s2032_s2 = inlined_call_operand.vmem [shape: f32[1,128], index: 2, kind: input, shape index: {}]   ;;  %s2033_s3 = inlined_call_operand.vmem [shape: f32[1,128], index: 3, kind: input, shape index: {}]   ;;  %s2034_s7 = inlined_call_operand.vmem [shape: f32[1,128], index: 7, kind: input, shape index: {}]   ;;  %s2035_s8 = inlined_call_operand.vmem [shape: f32[1,128], index: 8, kind: input, shape index: {}]   ;;  %s2036_s9 = inlined_call_operand.vmem [shape: bf16[16,128], index: 9, kind: input, shape index: {}]   ;;  %s2037_s10 = inlined_call_operand.vmem [shape: f32[2,16,128], index: 10, kind: output, shape index: {}]  }
   0x1   :  { %v1557_v0 = vld [vmem:[%s2027_s1 + $0x40] sm:$0xff]   ;;  %v1561_v4 = vld [vmem:[%s2027_s1 + $0x48] sm:$0xff]   ;;  %v1565_v8 = vld [vmem:[%s2027_s1 + $0x50] sm:$0xff]  }
   0x2   :  { %v1558_v1 = vld [vmem:[%s2027_s1 + $0xc0] sm:$0xff]   ;;  %1381 = vmatprep.subr.bf16.mxu0 %v1557_v0  ;;  %v1562_v5 = vld [vmem:[%s2027_s1 + $0xc8] sm:$0xff]   ;;  %v1566_v9 = vld [vmem:[%s2027_s1 + $0xd0] sm:$0xff]  }
   0x3   :  { %v1559_v2 = vld [vmem:[%s2027_s1] sm:$0xff]   ;;  %1409 = vmatprep.subr.bf16.mxu1 %v1558_v1  ;;  %v1563_v6 = vld [vmem:[%s2027_s1 + $0x8] sm:$0xff]   ;;  %v1567_v10 = vld [vmem:[%s2027_s1 + $0x10] sm:$0xff]  }
   0x4   :  { %v1560_v3 = vld [vmem:[%s2027_s1 + $0x80] sm:$0xff]   ;;  %1382 = vmatpush3.bf16.msra.mxu0 %v1559_v2  ;;  %v1564_v7 = vld [vmem:[%s2027_s1 + $0x88] sm:$0xff]   ;;  %v1568_v11 = vld [vmem:[%s2027_s1 + $0x90] sm:$0xff]  }
   0x5   :  { %1410 = vmatpush3.bf16.msra.mxu1 %v1560_v3  ;;  %1383 = vmatprep.subr.bf16.mxu0 %v1561_v4  ;;  %v1569_v12 = vld [vmem:[%s2027_s1 + $0x58] sm:$0xff]   ;;  %v1573_v16 = vld [vmem:[%s2027_s1 + $0x60] sm:$0xff]   ;;  %v1577_v20 = vld [vmem:[%s2027_s1 + $0x68] sm:$0xff]  }
   0x6   :  { %1411 = vmatprep.subr.bf16.mxu1 %v1562_v5  ;;  %v1570_v13 = vld [vmem:[%s2027_s1 + $0xd8] sm:$0xff]   ;;  %v1574_v17 = vld [vmem:[%s2027_s1 + $0xe0] sm:$0xff]   ;;  %v1578_v21 = vld [vmem:[%s2027_s1 + $0xe8] sm:$0xff]  }
   0x7   :  { %v1571_v14 = vld [vmem:[%s2027_s1 + $0x18] sm:$0xff]   ;;  %v1575_v18 = vld [vmem:[%s2027_s1 + $0x20] sm:$0xff]   ;;  %v1579_v22 = vld [vmem:[%s2027_s1 + $0x28] sm:$0xff]  }
   0x8   :  { %1384 = vmatpush3.bf16.msra.mxu0 %v1563_v6  ;;  %v1572_v15 = vld [vmem:[%s2027_s1 + $0x98] sm:$0xff]   ;;  %v1576_v19 = vld [vmem:[%s2027_s1 + $0xa0] sm:$0xff]   ;;  %v1580_v23 = vld [vmem:[%s2027_s1 + $0xa8] sm:$0xff]  }
   0x9   :  { %1412 = vmatpush3.bf16.msra.mxu1 %v1564_v7  ;;  %1385 = vmatprep.subr.bf16.mxu0 %v1565_v8  ;;  %v1581_v24 = vld [vmem:[%s2027_s1 + $0x70] sm:$0xff]   ;;  %v1585_v28 = vld [vmem:[%s2027_s1 + $0x78] sm:$0xff]   ;;  %v36_v32 = vld [vmem:[%s2028_s0] sm:$0xff] }
   0xa   :  { %1413 = vmatprep.subr.bf16.mxu1 %v1566_v9  ;;  %v1582_v25 = vld [vmem:[%s2027_s1 + $0xf0] sm:$0xff]   ;;  %v1586_v29 = vld [vmem:[%s2027_s1 + $0xf8] sm:$0xff]   ;;  %v40_v33 = vld [vmem:[%s2028_s0 + $0x20] sm:$0xff] }
   0xb   :  { %v1583_v26 = vld [vmem:[%s2027_s1 + $0x30] sm:$0xff]   ;;  %v1587_v30 = vld [vmem:[%s2027_s1 + $0x38] sm:$0xff]   ;;  %v37_v34 = vld [vmem:[%s2028_s0 + $0x8] sm:$0xff]  ;;  %v1271_v35 = vcombine.low %v36_v32, %v40_v33  ;;  %v1272_v36 = vcombine.high %v36_v32, %v40_v33 }
   0xc   :  { %1386 = vmatpush3.bf16.msra.mxu0 %v1567_v10  ;;  %v1584_v27 = vld [vmem:[%s2027_s1 + $0xb0] sm:$0xff]   ;;  %v1588_v31 = vld [vmem:[%s2027_s1 + $0xb8] sm:$0xff]   ;;  %v41_v37 = vld [vmem:[%s2028_s0 + $0x28] sm:$0xff] }
   0xd   :  { %1414 = vmatpush3.bf16.msra.mxu1 %v1568_v11  ;;  %1387 = vmatprep.subr.bf16.mxu0 %v1569_v12  ;;  %v1273_v38 = vcombine.low %v37_v34, %v41_v37  ;;  %v1274_v39 = vcombine.high %v37_v34, %v41_v37  ;;  %v1589_v40 = vld [vmem:[%s2027_s1 + $0x140] sm:$0xff]   ;;  %v1593_v44 = vld [vmem:[%s2027_s1 + $0x148] sm:$0xff]   ;;  %v1597_v48 = vld [vmem:[%s2027_s1 + $0x150] sm:$0xff]  }
   0xe   :  { %1415 = vmatprep.subr.bf16.mxu1 %v1570_v13  ;;  %676 = vmatprep.mubr.bf16.mxu0 %v1272_v36  ;;  %v1590_v41 = vld [vmem:[%s2027_s1 + $0x1c0] sm:$0xff]   ;;  %v1594_v45 = vld [vmem:[%s2027_s1 + $0x1c8] sm:$0xff]   ;;  %v1598_v49 = vld [vmem:[%s2027_s1 + $0x1d0] sm:$0xff]  }
   0xf   :  { %725 = vmatprep.mubr.bf16.mxu1 %v1274_v39  ;;  %v1591_v42 = vld [vmem:[%s2027_s1 + $0x100] sm:$0xff]   ;;  %v1595_v46 = vld [vmem:[%s2027_s1 + $0x108] sm:$0xff]   ;;  %v1599_v50 = vld [vmem:[%s2027_s1 + $0x110] sm:$0xff]  }
  0x10   :  { %1388 = vmatpush3.bf16.msra.mxu0 %v1571_v14  ;;  %v1592_v43 = vld [vmem:[%s2027_s1 + $0x180] sm:$0xff]   ;;  %v1596_v47 = vld [vmem:[%s2027_s1 + $0x188] sm:$0xff]   ;;  %v1600_v51 = vld [vmem:[%s2027_s1 + $0x190] sm:$0xff]  }
  0x11   :  { %1416 = vmatpush3.bf16.msra.mxu1 %v1572_v15  ;;  %1389 = vmatprep.subr.bf16.mxu0 %v1573_v16  ;;  %v1601_v52 = vld [vmem:[%s2027_s1 + $0x158] sm:$0xff]   ;;  %v1605_v56 = vld [vmem:[%s2027_s1 + $0x160] sm:$0xff]   ;;  %v45_v63 = vld [vmem:[%s2028_s0 + $0x48] sm:$0xff] }
  0x12   :  { %1417 = vmatprep.subr.bf16.mxu1 %v1574_v17  ;;  %v1602_v53 = vld [vmem:[%s2027_s1 + $0x1d8] sm:$0xff]   ;;  %v1606_v57 = vld [vmem:[%s2027_s1 + $0x1e0] sm:$0xff]   ;;  %v49_v0 = vld [vmem:[%s2028_s0 + $0x68] sm:$0xff] }
  0x13   :  { %v1603_v54 = vld [vmem:[%s2027_s1 + $0x118] sm:$0xff]   ;;  %v1607_v58 = vld [vmem:[%s2027_s1 + $0x120] sm:$0xff]   ;;  %v1282_v2 = vcombine.high %v45_v63, %v49_v0  ;;  %v1609_v3 = vld [vmem:[%s2027_s1 + $0x168] sm:$0xff]   ;;  %v1281_v4 = vcombine.low %v45_v63, %v49_v0 }
  0x14   :  { %1390 = vmatpush3.bf16.msra.mxu0 %v1575_v18  ;;  %v1604_v55 = vld [vmem:[%s2027_s1 + $0x198] sm:$0xff]   ;;  %v1608_v59 = vld [vmem:[%s2027_s1 + $0x1a0] sm:$0xff]   ;;  %v1610_v5 = vld [vmem:[%s2027_s1 + $0x1e8] sm:$0xff]  }
  0x15   :  { %1418 = vmatpush3.bf16.msra.mxu1 %v1576_v19  ;;  %1391 = vmatprep.subr.bf16.mxu0 %v1577_v20  ;;  %v44_v60 = vld [vmem:[%s2028_s0 + $0x40] sm:$0xff]  ;;  %v1611_v6 = vld [vmem:[%s2027_s1 + $0x128] sm:$0xff]   ;;  %v1613_v8 = vld [vmem:[%s2027_s1 + $0x170] sm:$0xff]  }
  0x16   :  { %1419 = vmatprep.subr.bf16.mxu1 %v1578_v21  ;;  %v48_v61 = vld [vmem:[%s2028_s0 + $0x60] sm:$0xff]  ;;  %v1612_v7 = vld [vmem:[%s2027_s1 + $0x1a8] sm:$0xff]   ;;  %v1614_v9 = vld [vmem:[%s2027_s1 + $0x1f0] sm:$0xff]  }
  0x17   :  { %v1280_v62 = vcombine.high %v44_v60, %v48_v61  ;;  %v1279_v1 = vcombine.low %v44_v60, %v48_v61  ;;  %v1615_v10 = vld [vmem:[%s2027_s1 + $0x130] sm:$0xff]   ;;  %v1617_v12 = vld [vmem:[%s2027_s1 + $0x178] sm:$0xff]   ;;  %v1621_v32 = vld [vmem:[%s2029_s6] sm:$0xff]  }
  0x18   :  { %1392 = vmatpush3.bf16.msra.mxu0 %v1579_v22  ;;  %v1616_v11 = vld [vmem:[%s2027_s1 + $0x1b0] sm:$0xff]   ;;  %v1618_v13 = vld [vmem:[%s2027_s1 + $0x1f8] sm:$0xff]   ;;  %v1622_v33 = vld [vmem:[%s2030_s5] sm:$0xff]  }
  0x19   :  { %1420 = vmatpush3.bf16.msra.mxu1 %v1580_v23  ;;  %1393 = vmatprep.subr.bf16.mxu0 %v1581_v24  ;;  %v1619_v14 = vld [vmem:[%s2027_s1 + $0x138] sm:$0xff]   ;;  %v38_v16 = vld [vmem:[%s2028_s0 + $0x10] sm:$0xff]  ;;  %v1623_v34 = vld [vmem:[%s2029_s6 + $0x8] sm:$0xff]  }
  0x1a   :  { %1421 = vmatprep.subr.bf16.mxu1 %v1582_v25  ;;  %v1620_v15 = vld [vmem:[%s2027_s1 + $0x1b8] sm:$0xff]   ;;  %v42_v17 = vld [vmem:[%s2028_s0 + $0x30] sm:$0xff] }
  0x1b   :  { %v39_v18 = vld [vmem:[%s2028_s0 + $0x18] sm:$0xff]  ;;  %v1275_v20 = vcombine.low %v38_v16, %v42_v17  ;;  %v1276_v21 = vcombine.high %v38_v16, %v42_v17  ;;  %v46_v24 = vld [vmem:[%s2028_s0 + $0x50] sm:$0xff] }
  0x1c   :  { %1394 = vmatpush3.bf16.msra.mxu0 %v1583_v26  ;;  %v43_v19 = vld [vmem:[%s2028_s0 + $0x38] sm:$0xff]  ;;  %v50_v25 = vld [vmem:[%s2028_s0 + $0x70] sm:$0xff] }
  0x1d   :  { %1422 = vmatpush3.bf16.msra.mxu1 %v1584_v27  ;;  %1395 = vmatprep.subr.bf16.mxu0 %v1585_v28  ;;  %v1277_v22 = vcombine.low %v39_v18, %v43_v19  ;;  %v1278_v23 = vcombine.high %v39_v18, %v43_v19  ;;  %v47_v26 = vld [vmem:[%s2028_s0 + $0x58] sm:$0xff]  ;;  %v1284_v27 = vcombine.high %v46_v24, %v50_v25  ;;  %v1625_v36 = vld [vmem:[%s2029_s6 + $0x10] sm:$0xff]  }
  0x1e   :  { %1423 = vmatprep.subr.bf16.mxu1 %v1586_v29  ;;  %v51_v28 = vld [vmem:[%s2028_s0 + $0x78] sm:$0xff]  ;;  %v1626_v37 = vld [vmem:[%s2030_s5 + $0x10] sm:$0xff]  }
  0x1f   :  { %v1286_v29 = vcombine.high %v47_v26, %v51_v28  ;;  %v1628_v39 = vld [vmem:[%s2030_s5 + $0x18] sm:$0xff]  }
  0x20   :  { %1396 = vmatpush3.bf16.msra.mxu0 %v1587_v30  ;;  %v1283_v30 = vcombine.low %v46_v24, %v50_v25 }
  0x21   :  { %1424 = vmatpush3.bf16.msra.mxu1 %v1588_v31  ;;  %1437 = vmatprep.subr.bf16.mxu0 %v1589_v40  ;;  %v1285_v31 = vcombine.low %v47_v26, %v51_v28  ;;  %v1629_v40 = vld [vmem:[%s2029_s6 + $0x20] sm:$0xff]  }
  0x22   :  { %1465 = vmatprep.subr.bf16.mxu1 %v1590_v41  ;;  %v1630_v41 = vld [vmem:[%s2030_s5 + $0x20] sm:$0xff]  }
  0x23   :  { %677 = vmatmul.mubr.bf16.vlgmr.msra.gmra.mrb[0].mxu0 %v1271_v35  ;;  %v1624_v35 = vld [vmem:[%s2030_s5 + $0x8] sm:$0xff]  }
  0x24   :  { %726 = vmatmul.mubr.bf16.vlgmr.msra.gmra.mrb[0].mxu1 %v1273_v38  ;;  %1438 = vmatpush3.bf16.msra.mxu0 %v1591_v42  ;;  %v1627_v38 = vld [vmem:[%s2029_s6 + $0x18] sm:$0xff]   ;;  %v1631_v42 = vld [vmem:[%s2029_s6 + $0x28] sm:$0xff]  }
  0x25   :  { %1466 = vmatpush3.bf16.msra.mxu1 %v1592_v43  ;;  %1439 = vmatprep.subr.bf16.mxu0 %v1593_v44  ;;  %v1632_v43 = vld [vmem:[%s2030_s5 + $0x28] sm:$0xff]   ;;  %v1633_v44 = vld [vmem:[%s2029_s6 + $0x30] sm:$0xff]  }
  0x26   :  { %1467 = vmatprep.subr.bf16.mxu1 %v1594_v45  ;;  %684 = vmatprep.mubr.bf16.mxu0 %v1280_v62  ;;  %v1634_v45 = vld [vmem:[%s2030_s5 + $0x30] sm:$0xff]  }
  0x27   :  { %733 = vmatprep.mubr.bf16.mxu1 %v1282_v2 }
  0x28   :  { %1440 = vmatpush3.bf16.msra.mxu0 %v1595_v46  ;;  %v1635_v46 = vld [vmem:[%s2029_s6 + $0x38] sm:$0xff]  }
  0x29   :  { %1468 = vmatpush3.bf16.msra.mxu1 %v1596_v47  ;;  %1441 = vmatprep.subr.bf16.mxu0 %v1597_v48  ;;  %v1636_v47 = vld [vmem:[%s2031_s4] sm:$0xff]   ;;  %v1637_v48 = vld [vmem:[%s2030_s5 + $0x38] sm:$0xff]  }
  0x2a   :  { %1469 = vmatprep.subr.bf16.mxu1 %v1598_v49  ;;  %v1638_v49 = vld [vmem:[%s2031_s4 + $0x8] sm:$0xff]  }
  0x2b   :  { %685 = vmatmul.mubr.bf16.gmra.mrb[4].mxu0 %v1279_v1 }
  0x2c   :  { %1442 = vmatpush3.bf16.msra.mxu0 %v1599_v50  ;;  %734 = vmatmul.mubr.bf16.gmra.mrb[4].mxu1 %v1281_v4 }
  0x2d   :  { %1470 = vmatpush3.bf16.msra.mxu1 %v1600_v51  ;;  %1443 = vmatprep.subr.bf16.mxu0 %v1601_v52 }
  0x2e   :  { %1471 = vmatprep.subr.bf16.mxu1 %v1602_v53  ;;  %774 = vmatprep.mubr.bf16.mxu0 %v1276_v21 }
  0x2f   :  { %823 = vmatprep.mubr.bf16.mxu1 %v1278_v23 }
  0x30   :  { %1444 = vmatpush3.bf16.msra.mxu0 %v1603_v54 }
  0x31   :  { %1472 = vmatpush3.bf16.msra.mxu1 %v1604_v55  ;;  %1445 = vmatprep.subr.bf16.mxu0 %v1605_v56 }
  0x32   :  { %1473 = vmatprep.subr.bf16.mxu1 %v1606_v57 }
  0x34   :  { %1446 = vmatpush3.bf16.msra.mxu0 %v1607_v58 }
  0x35   :  { %1474 = vmatpush3.bf16.msra.mxu1 %v1608_v59  ;;  %1447 = vmatprep.subr.bf16.mxu0 %v1609_v3 }
  0x36   :  { %1475 = vmatprep.subr.bf16.mxu1 %v1610_v5 }
  0x38   :  { %1448 = vmatpush3.bf16.msra.mxu0 %v1611_v6 }
  0x39   :  { %1476 = vmatpush3.bf16.msra.mxu1 %v1612_v7  ;;  %1449 = vmatprep.subr.bf16.mxu0 %v1613_v8 }
  0x3a   :  { %1477 = vmatprep.subr.bf16.mxu1 %v1614_v9 }
  0x3c   :  { %1450 = vmatpush3.bf16.msra.mxu0 %v1615_v10 }
  0x3d   :  { %1478 = vmatpush3.bf16.msra.mxu1 %v1616_v11  ;;  %1451 = vmatprep.subr.bf16.mxu0 %v1617_v12 }
  0x3e   :  { %1479 = vmatprep.subr.bf16.mxu1 %v1618_v13 }
  0x40   :  { %1452 = vmatpush3.bf16.msra.mxu0 %v1619_v14 }
  0x41   :  { %1480 = vmatpush3.bf16.msra.mxu1 %v1620_v15  ;;  %1533 = vmatprep.subr.bf16.mxu0 %v1622_v33 }
  0x42   :  { %1513 = vmatprep.subr.bf16.mxu1 %v1621_v32 }
  0x43   :  { %775 = vmatmul.mubr.bf16.vlgmr.msra.gmra.mrb[8].mxu0 %v1275_v20 }
  0x44   :  { %824 = vmatmul.mubr.bf16.vlgmr.msra.gmra.mrb[8].mxu1 %v1277_v22  ;;  %782 = vmatprep.mubr.bf16.mxu0 %v1284_v27 }
  0x45   :  { %831 = vmatprep.mubr.bf16.mxu1 %v1286_v29  ;;  %1514 = vmatpush3.bf16.msra.mxu1 %v1621_v32 }
  0x46   :  { %1515 = vmatprep.subr.bf16.mxu1 %v1623_v34  ;;  %1534 = vmatpush3.bf16.msra.mxu0 %v1622_v33 }
  0x47   :  { %1535 = vmatprep.subr.bf16.mxu0 %v1624_v35 }
  0x49   :  { %1516 = vmatpush3.bf16.msra.mxu1 %v1623_v34 }
  0x4a   :  { %1517 = vmatprep.subr.bf16.mxu1 %v1625_v36  ;;  %1536 = vmatpush3.bf16.msra.mxu0 %v1624_v35 }
  0x4b   :  { %783 = vmatmul.mubr.bf16.gmra.mrb[12].mxu0 %v1283_v30  ;;  %1537 = vmatprep.subr.bf16.mxu0 %v1626_v37 }
  0x4c   :  { %832 = vmatmul.mubr.bf16.gmra.mrb[12].mxu1 %v1285_v31 }
  0x4d   :  { %1518 = vmatpush3.bf16.msra.mxu1 %v1625_v36  ;;  %1529 = vmatprep.mubr.bf16.mxu1 %v1636_v47 }
  0x4e   :  { %1519 = vmatprep.subr.bf16.mxu1 %v1627_v38  ;;  %1538 = vmatpush3.bf16.msra.mxu0 %v1626_v37 }
  0x4f   :  { %1539 = vmatprep.subr.bf16.mxu0 %v1628_v39 }
  0x51   :  { %1520 = vmatpush3.bf16.msra.mxu1 %v1627_v38 }
  0x52   :  { %1521 = vmatprep.subr.bf16.mxu1 %v1629_v40  ;;  %1540 = vmatpush3.bf16.msra.mxu0 %v1628_v39 }
  0x53   :  { %1541 = vmatprep.subr.bf16.mxu0 %v1630_v41 }
  0x55   :  { %1522 = vmatpush3.bf16.msra.mxu1 %v1629_v40 }
  0x56   :  { %1523 = vmatprep.subr.bf16.mxu1 %v1631_v42  ;;  %1542 = vmatpush3.bf16.msra.mxu0 %v1630_v41 }
  0x57   :  { %1543 = vmatprep.subr.bf16.mxu0 %v1632_v43 }
  0x59   :  { %1524 = vmatpush3.bf16.msra.mxu1 %v1631_v42 }
  0x5a   :  { %1525 = vmatprep.subr.bf16.mxu1 %v1633_v44  ;;  %1544 = vmatpush3.bf16.msra.mxu0 %v1632_v43 }
  0x5b   :  { %1545 = vmatprep.subr.bf16.mxu0 %v1634_v45 }
  0x5d   :  { %1526 = vmatpush3.bf16.msra.mxu1 %v1633_v44 }
  0x5e   :  { %1527 = vmatprep.subr.bf16.mxu1 %v1635_v46  ;;  %1546 = vmatpush3.bf16.msra.mxu0 %v1634_v45 }
  0x5f   :  { %1547 = vmatprep.subr.bf16.mxu0 %v1637_v48 }
  0x61   :  { %1528 = vmatpush3.bf16.msra.mxu1 %v1635_v46 }
  0x62   :  { %1548 = vmatpush3.bf16.msra.mxu0 %v1637_v48 }
  0x64   :  { %1530 = vmatmul.mubr.bf16.vlgmr.msra.gmra.mrb[16].mxu1 %v1638_v49 }
  0xf6   :  { %v1397_v50 = vpop.f32.mrb[0].mxu0 }
  0xf7   :  { %v1425_v51 = vpop.f32.mrb[0].mxu1  ;;  %v1398_v52 = vpop.f32.mrb[1].mxu0 }
  0xf8   :  { %v1399_v53 = vadd.f32 %v1398_v52, %v1397_v50  ;;  %v1426_v54 = vpop.f32.mrb[1].mxu1  ;;  %v1400_v55 = vpop.f32.mrb[2].mxu0 }
  0xf9   :  { %v1427_v56 = vadd.f32 %v1426_v54, %v1425_v51  ;;  %v1428_v57 = vpop.f32.mrb[2].mxu1  ;;  %v1401_v58 = vpop.f32.mrb[3].mxu0 }
  0xfa   :  { %v1402_v59 = vadd.f32 %v1401_v58, %v1400_v55  ;;  %v1429_v60 = vpop.f32.mrb[3].mxu1 }
  0xfb   :  { %v728_v61 = vadd.f32 %v1427_v56, %v1399_v53  ;;  %v1430_v62 = vadd.f32 %v1429_v60, %v1428_v57 }
  0xfd   :  { %v731_v63 = vadd.f32 %v1430_v62, %v1402_v59 }
  0xfe   :  { %v1403_v0 = vpop.f32.mrb[4].mxu0 }
  0xff   :  { %v1431_v1 = vpop.f32.mrb[4].mxu1  ;;  %v1404_v2 = vpop.f32.mrb[5].mxu0 }
 0x100   :  { %v1405_v3 = vadd.f32 %v1404_v2, %v1403_v0  ;;  %v1432_v4 = vpop.f32.mrb[5].mxu1  ;;  %v1406_v5 = vpop.f32.mrb[6].mxu0 }
 0x101   :  { %v1433_v6 = vadd.f32 %v1432_v4, %v1431_v1  ;;  %v1434_v7 = vpop.f32.mrb[6].mxu1  ;;  %v1407_v8 = vpop.f32.mrb[7].mxu0 }
 0x102   :  { %v1408_v9 = vadd.f32 %v1407_v8, %v1406_v5  ;;  %v1435_v10 = vpop.f32.mrb[7].mxu1 }
 0x103   :  { %v736_v11 = vadd.f32 %v1433_v6, %v1405_v3  ;;  %v1436_v12 = vadd.f32 %v1435_v10, %v1434_v7 }
 0x105   :  { %v739_v13 = vadd.f32 %v1436_v12, %v1408_v9  ;;  %v1351_v12 = vld [vmem:[%s2032_s2] ss:$0 sm:$0xff] }
 0x116   :  { %v1453_v14 = vpop.f32.mrb[8].mxu0 }
 0x117   :  { %v1481_v15 = vpop.f32.mrb[8].mxu1  ;;  %v1454_v16 = vpop.f32.mrb[9].mxu0 }
 0x118   :  { %v1482_v17 = vpop.f32.mrb[9].mxu1  ;;  %v1455_v18 = vadd.f32 %v1454_v16, %v1453_v14  ;;  %v1456_v20 = vpop.f32.mrb[10].mxu0 }
 0x119   :  { %v1483_v19 = vadd.f32 %v1482_v17, %v1481_v15  ;;  %v1484_v21 = vpop.f32.mrb[10].mxu1  ;;  %v1457_v22 = vpop.f32.mrb[11].mxu0  ;;  %v1352_v17 = vld [vmem:[%s2033_s3] ss:$0 sm:$0xff] }
 0x11a   :  { %v1485_v23 = vpop.f32.mrb[11].mxu1  ;;  %v777_v24 = vadd.f32 %v1455_v18, %v728_v61  ;;  %v1458_v25 = vadd.f32 %v1457_v22, %v1456_v20 }
 0x11b   :  { %v1486_v26 = vadd.f32 %v1485_v23, %v1484_v21 }
 0x11c   :  { %v826_v27 = vadd.f32 %v1483_v19, %v777_v24  ;;  %v780_v28 = vadd.f32 %v1458_v25, %v731_v63 }
 0x11e   :  { %v829_v29 = vadd.f32 %v1486_v26, %v780_v28  ;;  %v1459_v30 = vpop.f32.mrb[12].mxu0 }
 0x11f   :  { %v1487_v31 = vpop.f32.mrb[12].mxu1  ;;  %v1460_v32 = vpop.f32.mrb[13].mxu0 }
 0x120   :  { %v1488_v33 = vpop.f32.mrb[13].mxu1  ;;  %v842_v34 = vadd.f32 %v829_v29, %v826_v27  ;;  %v1461_v35 = vadd.f32 %v1460_v32, %v1459_v30  ;;  %v1462_v37 = vpop.f32.mrb[14].mxu0 }
 0x121   :  { %v1489_v36 = vadd.f32 %v1488_v33, %v1487_v31  ;;  %v1490_v38 = vpop.f32.mrb[14].mxu1  ;;  %v1463_v39 = vpop.f32.mrb[15].mxu0 }
 0x122   :  { %v1491_v40 = vpop.f32.mrb[15].mxu1  ;;  %v785_v41 = vadd.f32 %v1461_v35, %v736_v11  ;;  %v1464_v42 = vadd.f32 %v1463_v39, %v1462_v37 }
 0x123   :  { %v1492_v43 = vadd.f32 %v1491_v40, %v1490_v38 }
 0x124   :  { %v834_v44 = vadd.f32 %v1489_v36, %v785_v41  ;;  %v788_v45 = vadd.f32 %v1464_v42, %v739_v13 }
 0x126   :  { %v843_v46 = vadd.f32 %v842_v34, %v834_v44  ;;  %v837_v47 = vadd.f32 %v1492_v43, %v788_v45 }
 0x128   :  { %v844_v48 = vadd.f32 %v843_v46, %v837_v47 }
 0x12a   :  { %v845_v49 = vrot.slane %v844_v48, 4 }
 0x12c   :  { %v846_v50 = vadd.f32 %v845_v49, %v844_v48 }
 0x12e   :  { %v847_v51 = vrot.slane %v846_v50, 2 }
 0x130   :  { %v848_v52 = vadd.f32 %v847_v51, %v846_v50 }
 0x132   :  { %v849_v53 = vrot.slane %v848_v52, 1 }
 0x134   :  { %v850_v54 = vadd.f32 %v849_v53, %v848_v52 }
 0x136   :  { %v851_v55 = vmul.f32 0.03125, %v850_v54 }
 0x137   :  { %v1531_v36 = vpop.f32.mrb[16].mxu1 }
 0x138   :  { %v852_v56 = vsub.f32 %v826_v27, %v851_v55  ;;  %v853_v57 = vsub.f32 %v829_v29, %v851_v55  ;;  %v854_v58 = vsub.f32 %v834_v44, %v851_v55  ;;  %v855_v59 = vsub.f32 %v837_v47, %v851_v55  ;;  %v1040_v37 = vpop.f32.mrb[17].mxu1 }
 0x139   :  { %v1532_v38 = vpop.f32.mrb[18].mxu1 }
 0x13a   :  { %v856_v60 = vmul.f32 %v852_v56, %v852_v56  ;;  %v857_v61 = vmul.f32 %v853_v57, %v853_v57  ;;  %v858_v62 = vmul.f32 %v854_v58, %v854_v58  ;;  %v859_v0 = vmul.f32 %v855_v59, %v855_v59  ;;  %v1043_v39 = vpop.f32.mrb[19].mxu1 }
 0x13c   :  { %v860_v63 = vadd.f32 %v857_v61, %v856_v60 }
 0x13e   :  { %v861_v1 = vadd.f32 %v860_v63, %v858_v62 }
 0x140   :  { %v862_v2 = vadd.f32 %v861_v1, %v859_v0 }
 0x142   :  { %v863_v3 = vrot.slane %v862_v2, 4 }
 0x144   :  { %v864_v4 = vadd.f32 %v863_v3, %v862_v2 }
 0x146   :  { %v865_v5 = vrot.slane %v864_v4, 2 }
 0x148   :  { %v866_v6 = vadd.f32 %v865_v5, %v864_v4 }
 0x14a   :  { %v867_v7 = vrot.slane %v866_v6, 1 }
 0x14c   :  { %v868_v8 = vadd.f32 %v867_v7, %v866_v6 }
 0x14e   :  { %v869_v9 = vmul.f32 0.03125, %v868_v8 }
 0x150   :  { %v870_v10 = vadd.f32 1e-05, %v869_v9 }
 0x152   :  { %1639 = vrsqrt.f32 %v870_v10 }
 0x15c   :  { %v1640_v11 = vpop.eup %1639 }
 0x15d   :  { %v874_v13 = vmul.f32 %v1640_v11, %v854_v58  ;;  %v875_v14 = vmul.f32 %v1640_v11, %v855_v59  ;;  %v872_v15 = vmul.f32 %v1640_v11, %v852_v56  ;;  %v873_v16 = vmul.f32 %v1640_v11, %v853_v57 }
 0x15f   :  { %v884_v18 = vmul.f32 %v1351_v12, %v874_v13  ;;  %v885_v19 = vmul.f32 %v1351_v12, %v875_v14  ;;  %v882_v20 = vmul.f32 %v1351_v12, %v872_v15  ;;  %v883_v21 = vmul.f32 %v1351_v12, %v873_v16  ;;  %v1371_v14 = vld [vmem:[%s2034_s7] ss:$0 sm:$0xff] }
 0x161   :  { %v895_v22 = vadd.f32 %v1352_v17, %v885_v19  ;;  %v892_v23 = vadd.f32 %v1352_v17, %v882_v20  ;;  %v893_v24 = vadd.f32 %v1352_v17, %v883_v21  ;;  %v894_v25 = vadd.f32 %v1352_v17, %v884_v18  ;;  %v1372_v19 = vld [vmem:[%s2035_s8] ss:$0 sm:$0xff] }
 0x163   :  { %vm899_vm0 = vcmp.ge.f32.partialorder %v895_v22, 0.0  ;;  %v903_v26 = vmul.f32 0.01, %v895_v22  ;;  %vm896_vm1 = vcmp.ge.f32.partialorder %v892_v23, 0.0  ;;  %vm897_vm2 = vcmp.ge.f32.partialorder %v893_v24, 0.0 }
 0x164   :  { %v900_v27 = vmul.f32 0.01, %v892_v23  ;;  %v901_v28 = vmul.f32 0.01, %v893_v24  ;;  %vm898_vm3 = vcmp.ge.f32.partialorder %v894_v25, 0.0 }
 0x165   :  { %v902_v29 = vmul.f32 0.01, %v894_v25  ;;  %v907_v30 = vsel %vm899_vm0, %v895_v22, %v903_v26  ;;  %v1378_v22 = vld [vmem:[%s2036_s9] sm:$0xff]  }
 0x166   :  { %v904_v31 = vsel %vm896_vm1, %v892_v23, %v900_v27  ;;  %v905_v32 = vsel %vm897_vm2, %v893_v24, %v901_v28 }
 0x167   :  { %v908_v33 = vpack.c.bf16 %v905_v32, %v904_v31  ;;  %v906_v34 = vsel %vm898_vm3, %v894_v25, %v902_v29  ;;  %v1379_v29 = vunpack.c.l.bf16 %v1378_v22 }
 0x168   :  { %v909_v35 = vpack.c.bf16 %v907_v30, %v906_v34 }
 0x169   :  { %1549 = vmatprep.mubr.bf16.mxu0 %v908_v33 }
 0x16a   :  { %1550 = vmatmul.mubr.bf16.vlgmr.msra.gmra.mrb[16].mxu0 %v909_v35 }
 0x23d   :  { %v1551_v40 = vpop.f32.mrb[16].mxu0 }
 0x23e   :  { %v1146_v41 = vadd.f32 %v1551_v40, %v1531_v36  ;;  %v1137_v42 = vpop.f32.mrb[17].mxu0 }
 0x23f   :  { %v1138_v43 = vadd.f32 %v1137_v42, %v1040_v37  ;;  %v1552_v44 = vpop.f32.mrb[18].mxu0 }
 0x240   :  { %v1149_v45 = vadd.f32 %v1552_v44, %v1532_v38  ;;  %v1140_v46 = vpop.f32.mrb[19].mxu0  ;;  %v1380_v38 = vunpack.c.h.bf16 %v1378_v22 }
 0x241   :  { %v1141_v47 = vadd.f32 %v1140_v46, %v1043_v39 }
 0x243   :  { %v1154_v48 = vadd.f32 %v1141_v47, %v1138_v43 }
 0x245   :  { %v1155_v49 = vadd.f32 %v1154_v48, %v1146_v41 }
 0x247   :  { %v1156_v50 = vadd.f32 %v1155_v49, %v1149_v45 }
 0x249   :  { %v1157_v51 = vrot.slane %v1156_v50, 4 }
 0x24b   :  { %v1158_v52 = vadd.f32 %v1157_v51, %v1156_v50 }
 0x24d   :  { %v1159_v53 = vrot.slane %v1158_v52, 2 }
 0x24f   :  { %v1160_v54 = vadd.f32 %v1159_v53, %v1158_v52 }
 0x251   :  { %v1161_v55 = vrot.slane %v1160_v54, 1 }
 0x253   :  { %v1162_v56 = vadd.f32 %v1161_v55, %v1160_v54 }
 0x255   :  { %v1163_v57 = vmul.f32 0.03125, %v1162_v56 }
 0x257   :  { %v1164_v58 = vsub.f32 %v1138_v43, %v1163_v57  ;;  %v1165_v59 = vsub.f32 %v1141_v47, %v1163_v57  ;;  %v1166_v60 = vsub.f32 %v1146_v41, %v1163_v57  ;;  %v1167_v61 = vsub.f32 %v1149_v45, %v1163_v57 }
 0x259   :  { %v1168_v62 = vmul.f32 %v1164_v58, %v1164_v58  ;;  %v1169_v63 = vmul.f32 %v1165_v59, %v1165_v59  ;;  %v1170_v0 = vmul.f32 %v1166_v60, %v1166_v60  ;;  %v1171_v2 = vmul.f32 %v1167_v61, %v1167_v61 }
 0x25b   :  { %v1172_v1 = vadd.f32 %v1169_v63, %v1168_v62 }
 0x25d   :  { %v1173_v3 = vadd.f32 %v1172_v1, %v1170_v0 }
 0x25f   :  { %v1174_v4 = vadd.f32 %v1173_v3, %v1171_v2 }
 0x261   :  { %v1175_v5 = vrot.slane %v1174_v4, 4 }
 0x263   :  { %v1176_v6 = vadd.f32 %v1175_v5, %v1174_v4 }
 0x265   :  { %v1177_v7 = vrot.slane %v1176_v6, 2 }
 0x267   :  { %v1178_v8 = vadd.f32 %v1177_v7, %v1176_v6 }
 0x269   :  { %v1179_v9 = vrot.slane %v1178_v8, 1 }
 0x26b   :  { %v1180_v10 = vadd.f32 %v1179_v9, %v1178_v8 }
 0x26d   :  { %v1181_v11 = vmul.f32 0.03125, %v1180_v10 }
 0x26f   :  { %v1182_v12 = vadd.f32 1e-05, %v1181_v11 }
 0x271   :  { %1641 = vrsqrt.f32 %v1182_v12 }
 0x27b   :  { %v1642_v13 = vpop.eup %1641 }
 0x27c   :  { %v1185_v15 = vmul.f32 %v1642_v13, %v1165_v59  ;;  %v1186_v16 = vmul.f32 %v1642_v13, %v1166_v60  ;;  %v1184_v17 = vmul.f32 %v1642_v13, %v1164_v58  ;;  %v1187_v18 = vmul.f32 %v1642_v13, %v1167_v61 }
 0x27e   :  { %v1195_v20 = vmul.f32 %v1371_v14, %v1185_v15  ;;  %v1196_v21 = vmul.f32 %v1371_v14, %v1186_v16  ;;  %v1194_v23 = vmul.f32 %v1371_v14, %v1184_v17  ;;  %v1197_v24 = vmul.f32 %v1371_v14, %v1187_v18 }
 0x280   :  { %v1206_v25 = vadd.f32 %v1372_v19, %v1196_v21  ;;  %v1204_v26 = vadd.f32 %v1372_v19, %v1194_v23  ;;  %v1207_v27 = vadd.f32 %v1372_v19, %v1197_v24  ;;  %v1205_v28 = vadd.f32 %v1372_v19, %v1195_v20 }
 0x282   :  { %vm1210_vm4 = vcmp.ge.f32.partialorder %v1206_v25, 0.0  ;;  %v1214_v30 = vmul.f32 0.01, %v1206_v25  ;;  %vm1208_vm5 = vcmp.ge.f32.partialorder %v1204_v26, 0.0  ;;  %v1212_v31 = vmul.f32 0.01, %v1204_v26 }
 0x283   :  { %vm1211_vm6 = vcmp.ge.f32.partialorder %v1207_v27, 0.0  ;;  %v1215_v32 = vmul.f32 0.01, %v1207_v27  ;;  %vm1209_vm7 = vcmp.ge.f32.partialorder %v1205_v28, 0.0  ;;  %v1213_v33 = vmul.f32 0.01, %v1205_v28 }
 0x284   :  { %v1218_v34 = vsel %vm1210_vm4, %v1206_v25, %v1214_v30  ;;  %v1216_v35 = vsel %vm1208_vm5, %v1204_v26, %v1212_v31 }
 0x285   :  { %v1245_v36 = vmul.f32 %v1379_v29, %v1218_v34  ;;  %v1224_v37 = vmul.f32 %v1379_v29, %v1216_v35  ;;  %v1219_v39 = vsel %vm1211_vm6, %v1207_v27, %v1215_v32  ;;  %v1217_v40 = vsel %vm1209_vm7, %v1205_v28, %v1213_v33 }
 0x286   :  { %v1246_v41 = vmul.f32 %v1380_v38, %v1219_v39  ;;  %v1225_v42 = vmul.f32 %v1380_v38, %v1217_v40 }
 0x287   :  { %1247 = vadd.xlane.f32.xlu1 %v1245_v36  ;;  %1226 = vadd.xlane.f32.xlu0 %v1224_v37 }
 0x28b   :  { %1249 = vadd.xlane.f32.xlu1 %v1246_v41  ;;  %1228 = vadd.xlane.f32.xlu0 %v1225_v42 }
 0x314   :  { %v1248_v43 = vpop.xlane.xlu1 %1247  ;;  %v1227_v44 = vpop.xlane.xlu0 %1226 }
 0x318   :  { %v1250_v45 = vpop.xlane.xlu1 %1249  ;;  %v1229_v46 = vpop.xlane.xlu0 %1228 }
 0x319   :  { %v1251_v47 = vadd.f32 %v1250_v45, %v1248_v43  ;;  %v1230_v48 = vadd.f32 %v1229_v46, %v1227_v44 }
 0x31b   :  { %v1252_v49 = vrot.slane %v1251_v47, 4  ;;  %v1231_v50 = vrot.slane %v1230_v48, 4 }
 0x31d   :  { %v1253_v51 = vadd.f32 %v1252_v49, %v1251_v47  ;;  %v1232_v52 = vadd.f32 %v1231_v50, %v1230_v48 }
 0x31f   :  { %v1254_v53 = vrot.slane %v1253_v51, 2  ;;  %v1233_v54 = vrot.slane %v1232_v52, 2 }
 0x321   :  { %v1255_v55 = vadd.f32 %v1254_v53, %v1253_v51  ;;  %v1234_v56 = vadd.f32 %v1233_v54, %v1232_v52 }
 0x323   :  { %v1256_v57 = vrot.slane %v1255_v55, 1  ;;  %v1235_v58 = vrot.slane %v1234_v56, 1 }
 0x325   :  { %v1257_v59 = vadd.f32 %v1256_v57, %v1255_v55  ;;  %v1236_v60 = vadd.f32 %v1235_v58, %v1234_v56 }
 0x327   :  { %v1374_v61 = vmul.f32 -1.442695, %v1257_v59  ;;  %v1373_v62 = vmul.f32 -1.442695, %v1236_v60 }
 0x329   :  { %1643 = vpow2.f32 %v1374_v61 }
 0x32a   :  { %1645 = vpow2.f32 %v1373_v62 }
 0x333   :  { %v1644_v63 = vpop.eup %1643 }
 0x334   :  { %v1646_v0 = vpop.eup %1645  ;;  %v1261_v1 = vadd.f32 1.0, %v1644_v63 }
 0x335   :  { %v1240_v2 = vadd.f32 1.0, %v1646_v0 }
 0x336   :  { %1647 = vrcp.f32 %v1261_v1 }
 0x337   :  { %1649 = vrcp.f32 %v1240_v2 }
 0x340   :  { %v1648_v3 = vpop.eup %1647 }
 0x341   :  { %v1650_v4 = vpop.eup %1649  ;;  %1375 = vst [vmem:[%s2037_s10 + $0x10] sm:$0xff] %v1648_v3  ;;  %1376 = vst [vmem:[%s2037_s10 + $0x18] sm:$0xff] %v1648_v3 }
 0x342   :  { %1243 = vst [vmem:[%s2037_s10] sm:$0xff] %v1650_v4  ;;  %1244 = vst [vmem:[%s2037_s10 + $0x8] sm:$0xff] %v1650_v4 }

</bundles_post_ra>
